<compile_context>
chip_gen: v7x
topology: tpu7x:2x2x1
jax: 0.10.0
libtpu: 0.0.40
codegen_flags: <defaults>
</compile_context>

<pallas_src>
import jax
import jax.numpy as jnp
import numpy as np
from jax.experimental import pallas as pl
from jax.experimental.pallas import tpu as pltpu

# ----- module-level constants referenced by LSRE.__init__ (small, synthetic)
NUM_ASSETS = 4
NUM_LATENTS = 8
LATENT_DIM = 32
NUM_CROSS_HEADS = 2
CROSS_HEAD_DIM = 16
NUM_SELF_HEADS = 2
SELF_HEAD_DIM = 16
DEPTH = 1
FF_MULT = 4          # Perceiver FeedForward expansion (GEGLU)
LN_EPS = 1e-5

_SLAB_COLS = 128                      # lane width of the packed weight slab
_FF_HALF = FF_MULT * LATENT_DIM       # 128 : GEGLU value / gate half width


# ---------------------------------------------------------------------------
# Weight packing: all params -> one (R, 128) f32 slab, 8-aligned row offsets
# ---------------------------------------------------------------------------
def _pack_weights(entries):
    layout = {}
    cursor = 0
    for key, w in entries:
        r, c = w.shape
        assert c <= _SLAB_COLS, (key, w.shape)
        off = ((cursor + 7) // 8) * 8
        layout[key] = (off, r, c)
        cursor = off + r
    total = ((cursor + 7) // 8) * 8
    slab = jnp.zeros((total, _SLAB_COLS), jnp.float32)
    for key, w in entries:
        off, r, c = layout[key]
        slab = slab.at[off:off + r, :c].set(w.astype(jnp.float32))
    return slab, layout


def _pack_params(params):
    scale_c = CROSS_HEAD_DIM ** -0.5
    scale_s = SELF_HEAD_DIM ** -0.5
    entries = []

    c = params["cross"]
    entries += [
        ("c.lnq_g", c["lnq_g"]), ("c.lnq_b", c["lnq_b"]),
        ("c.lnc_g", c["lnc_g"]), ("c.lnc_b", c["lnc_b"]),
        ("c.wq", c["wq"] * scale_c),          # softmax scale folded into wq
        ("c.wkv", c["wkv"]),
        ("c.wo", c["wo"]), ("c.bo", c["bo"]),
        ("c.lnf_g", c["lnf_g"]), ("c.lnf_b", c["lnf_b"]),
        ("c.wf1v", c["wf1"][:, :_FF_HALF]), ("c.wf1g", c["wf1"][:, _FF_HALF:]),
        ("c.bf1v", c["bf1"][:, :_FF_HALF]), ("c.bf1g", c["bf1"][:, _FF_HALF:]),
        ("c.wf2", c["wf2"]), ("c.bf2", c["bf2"]),
    ]
    for i, s in enumerate(params["self"]):
        p = "s%d" % i
        entries += [
            (p + ".lnq_g", s["lnq_g"]), (p + ".lnq_b", s["lnq_b"]),
            # fused q|k|v projection (one (D, 3*hh) matmul in-kernel)
            (p + ".wqkv", jnp.concatenate([s["wq"] * scale_s, s["wkv"]], axis=1)),
            (p + ".wo", s["wo"]), (p + ".bo", s["bo"]),
            (p + ".lnf_g", s["lnf_g"]), (p + ".lnf_b", s["lnf_b"]),
            (p + ".wf1v", s["wf1"][:, :_FF_HALF]), (p + ".wf1g", s["wf1"][:, _FF_HALF:]),
            (p + ".bf1v", s["bf1"][:, :_FF_HALF]), (p + ".bf1g", s["bf1"][:, _FF_HALF:]),
            (p + ".wf2", s["wf2"]), (p + ".bf2", s["bf2"]),
        ]
    entries += [("w_out", params["w_out"].reshape(NUM_LATENTS, 1)),
                ("b_out", params["b_out"])]
    return _pack_weights(entries)


# ---------------------------------------------------------------------------
# Fused kernel (single invocation, whole problem resident in VMEM)
# ---------------------------------------------------------------------------
def _make_kernel(layout, depth, ba, n_lat, d_lat, win, feat,
                 cross_heads, cross_hdim, self_heads, self_hdim,
                 out_rows, out_cols):
    hh_c = cross_heads * cross_hdim
    hh_s = self_heads * self_hdim
    lane_dense = (out_rows, out_cols) != (ba, d_lat)

    def kernel(z_ref, x_ref, w_ref, out_ref):
        def W(key):                      # static, sublane-aligned slab slice
            off, r, c = layout[key]
            return w_ref[off:off + r, 0:c]

        def ln(v, gk, bk):
            mu = jnp.mean(v, axis=-1, keepdims=True)
            vc = v - mu
            var = jnp.mean(vc * vc, axis=-1, keepdims=True)
            return vc * jax.lax.rsqrt(var + LN_EPS) * W(gk) + W(bk)

        def mha(q2, k2, v2, m, heads, hdim):
            hh = heads * hdim
            q3 = q2.reshape(ba, n_lat, hh)
            k3 = k2.reshape(ba, m, hh)
            v3 = v2.reshape(ba, m, hh)
            outs = []
            # static 2-iteration head loop: single-batch-dim einsums
            # (two-batch-dim dot_general is not reliably lowered by Mosaic)
            for h in range(heads):
                sl = slice(h * hdim, (h + 1) * hdim)
                s = jnp.einsum('bnd,bmd->bnm', q3[:, :, sl], k3[:, :, sl],
                               preferred_element_type=jnp.float32)
                s = s - jnp.max(s, axis=-1, keepdims=True)
                p = jnp.exp(s)
                p = p * pl.reciprocal(jnp.sum(p, axis=-1, keepdims=True),
                                      approx=True)
                outs.append(jnp.einsum('bnm,bmd->bnd', p, v3[:, :, sl],
                                       preferred_element_type=jnp.float32))
            o = jnp.concatenate(outs, axis=-1)
            return o.reshape(ba * n_lat, hh)

        def ff(z2, pfx):                 # GEGLU feed-forward (pre-split wf1)
            zn2 = ln(z2, pfx + ".lnf_g", pfx + ".lnf_b")
            hv = jnp.dot(zn2, W(pfx + ".wf1v"),
                         preferred_element_type=jnp.float32) + W(pfx + ".bf1v")
            hg = jnp.dot(zn2, W(pfx + ".wf1g"),
                         preferred_element_type=jnp.float32) + W(pfx + ".bf1g")
            h = hv * jax.nn.gelu(hg, approximate=True)
            return z2 + jnp.dot(h, W(pfx + ".wf2"),
                                preferred_element_type=jnp.float32) + W(pfx + ".bf2")

        z2 = z_ref[...]                  # (ba*n, D)
        x2 = x_ref[...]                  # (ba*W, F)

        # ---- cross-attention block over the window context
        zn = ln(z2, "c.lnq_g", "c.lnq_b")
        xn = ln(x2, "c.lnc_g", "c.lnc_b")
        q = jnp.dot(zn, W("c.wq"), preferred_element_type=jnp.float32)
        kv = jnp.dot(xn, W("c.wkv"), preferred_element_type=jnp.float32)
        o = mha(q, kv[:, :hh_c], kv[:, hh_c:], win, cross_heads, cross_hdim)
        z2 = z2 + (jnp.dot(o, W("c.wo"), preferred_element_type=jnp.float32)
                   + W("c.bo"))
        z2 = ff(z2, "c")

        # ---- self-attention stack (fused qkv projection)
        for i in range(depth):
            pfx = "s%d" % i
            zn = ln(z2, pfx + ".lnq_g", pfx + ".lnq_b")
            qkv = jnp.dot(zn, W(pfx + ".wqkv"),
                          preferred_element_type=jnp.float32)
            o = mha(qkv[:, :hh_s], qkv[:, hh_s:2 * hh_s], qkv[:, 2 * hh_s:3 * hh_s],
                    n_lat, self_heads, self_hdim)
            z2 = z2 + (jnp.dot(o, W(pfx + ".wo"),
                               preferred_element_type=jnp.float32) + W(pfx + ".bo"))
            z2 = ff(z2, pfx)

        # ---- output projection across latents: out[ba, d] = sum_n z * w_out[n]
        z3 = z2.reshape(ba, n_lat, d_lat)
        w_out = W("w_out")                                     # (n_lat, 1)
        proj = jnp.sum(z3 * w_out[None, :, :], axis=1) + W("b_out")  # (ba, D)

        if lane_dense:
            # repack (ba, D) -> (ba*D/128, 128) with slices + concats only
            # (ops with guaranteed Mosaic lowering); enables unmasked stores
            # and a dense HBM writeback DMA.
            per = out_cols // d_lat
            rows = []
            for r in range(out_rows):
                pieces = [proj[r * per + j: r * per + j + 1, :]
                          for j in range(per)]
                rows.append(jnp.concatenate(pieces, axis=1))
            out_ref[...] = jnp.concatenate(rows, axis=0)
        else:
            out_ref[...] = proj

    return kernel


def lsre_forward(x, params):
    B, A, W_, F = x.shape
    BA = B * A
    z0 = jnp.broadcast_to(params["z"][None], (B, A, NUM_LATENTS, LATENT_DIM))
    z0 = z0.reshape(BA * NUM_LATENTS, LATENT_DIM).astype(jnp.float32)
    xf = x.reshape(BA * W_, F).astype(jnp.float32)

    slab, layout = _pack_params(params)

    total = BA * LATENT_DIM
    if (total % 128 == 0 and LATENT_DIM <= 128 and 128 % LATENT_DIM == 0
            and BA % (128 // LATENT_DIM) == 0):
        out_rows, out_cols = total // 128, 128     # lane-dense output slab
    else:
        out_rows, out_cols = BA, LATENT_DIM

    kernel = _make_kernel(layout, DEPTH, BA, NUM_LATENTS, LATENT_DIM, W_, F,
                          NUM_CROSS_HEADS, CROSS_HEAD_DIM,
                          NUM_SELF_HEADS, SELF_HEAD_DIM, out_rows, out_cols)

    vmem_spec = pl.BlockSpec(memory_space=pltpu.MemorySpace.VMEM)
    # No grid: a single invocation with 3 dense HBM->VMEM DMAs (z, x, weight
    # slab, ~350 KB total) and one dense writeback; no pipeline machinery.
    out = pl.pallas_call(
        kernel,
        in_specs=[vmem_spec, vmem_spec, vmem_spec],
        out_specs=vmem_spec,
        out_shape=jax.ShapeDtypeStruct((out_rows, out_cols), jnp.float32),
    )(z0, xf, slab)
    return out.reshape(B, A, LATENT_DIM)


# ---------------------------------------------------------------------------
# Deterministic parameter init (synthetic; not a checkpoint load)
# ---------------------------------------------------------------------------
def init_params(key, feat_dim):
    kit = iter(jax.random.split(key, 64))

    def nrm(shape, scale=0.05):
        return scale * jax.random.normal(next(kit), shape, dtype=jnp.float32)

    def attn_params(ctx_dim, heads, hdim):
        D = LATENT_DIM
        hh = heads * hdim
        cdim = ctx_dim if ctx_dim is not None else D
        p = {
            "lnq_g": jnp.ones((1, D), jnp.float32),
            "lnq_b": jnp.zeros((1, D), jnp.float32),
            "wq": nrm((D, hh)),
            "wkv": nrm((cdim, 2 * hh)),
            "wo": nrm((hh, D)),
            "bo": jnp.zeros((1, D), jnp.float32),
            "lnf_g": jnp.ones((1, D), jnp.float32),
            "lnf_b": jnp.zeros((1, D), jnp.float32),
            "wf1": nrm((D, 2 * FF_MULT * D)),
            "bf1": jnp.zeros((1, 2 * FF_MULT * D), jnp.float32),
            "wf2": nrm((FF_MULT * D, D)),
            "bf2": jnp.zeros((1, D), jnp.float32),
        }
        if ctx_dim is not None:
            p["lnc_g"] = jnp.ones((1, ctx_dim), jnp.float32)
            p["lnc_b"] = jnp.zeros((1, ctx_dim), jnp.float32)
        return p

    return {
        "z": jax.random.normal(next(kit), (NUM_ASSETS, NUM_LATENTS, LATENT_DIM),
                               dtype=jnp.float32),
        "cross": attn_params(feat_dim, NUM_CROSS_HEADS, CROSS_HEAD_DIM),
        "self": [attn_params(None, NUM_SELF_HEADS, SELF_HEAD_DIM)
                 for _ in range(DEPTH)],
        "w_out": nrm((1, NUM_LATENTS)),
        "b_out": jnp.zeros((1, 1), jnp.float32),
    }


# ---------------------------------------------------------------------------
# Pure-JAX reference (for correctness check)
# ---------------------------------------------------------------------------
def _ref_ln(x, g, b):
    mu = x.mean(-1, keepdims=True)
    var = ((x - mu) ** 2).mean(-1, keepdims=True)
    return (x - mu) / jnp.sqrt(var + LN_EPS) * g + b


def _ref_block(z, p, heads, hdim, context=None):
    zn = _ref_ln(z, p["lnq_g"][0], p["lnq_b"][0])
    cn = _ref_ln(context, p["lnc_g"][0], p["lnc_b"][0]) if context is not None else zn
    q = zn @ p["wq"]
    kv = cn @ p["wkv"]
    k, v = jnp.split(kv, 2, axis=-1)
    BA, N, _ = q.shape
    M = k.shape[1]
    q = q.reshape(BA, N, heads, hdim)
    k = k.reshape(BA, M, heads, hdim)
    v = v.reshape(BA, M, heads, hdim)
    s = jnp.einsum('bnhd,bmhd->bhnm', q, k) * (hdim ** -0.5)
    a = jax.nn.softmax(s, axis=-1)
    o = jnp.einsum('bhnm,bmhd->bnhd', a, v).reshape(BA, N, heads * hdim)
    z = z + o @ p["wo"] + p["bo"][0]
    zn2 = _ref_ln(z, p["lnf_g"][0], p["lnf_b"][0])
    h = zn2 @ p["wf1"] + p["bf1"][0]
    d = h.shape[-1] // 2
    h = h[..., :d] * jax.nn.gelu(h[..., d:], approximate=False)
    return z + h @ p["wf2"] + p["bf2"][0]


def lsre_ref(x, params):
    B, A, W, F = x.shape
    z = jnp.broadcast_to(params["z"][None], (B, A, NUM_LATENTS, LATENT_DIM))
    z = z.reshape(B * A, NUM_LATENTS, LATENT_DIM)
    xf = x.reshape(B * A, W, F)
    z = _ref_block(z, params["cross"], NUM_CROSS_HEADS, CROSS_HEAD_DIM, context=xf)
    for d in range(DEPTH):
        z = _ref_block(z, params["self"][d], NUM_SELF_HEADS, SELF_HEAD_DIM)
    zt = jnp.swapaxes(z, 1, 2)                         # (BA, D, N)
    out = zt @ params["w_out"][0] + params["b_out"][0, 0]
    return out.reshape(B, A, LATENT_DIM)


# ---------------------------------------------------------------------------
if __name__ == "__main__":
    key = jax.random.PRNGKey(0)
    kx, kp = jax.random.split(key)
    B, W, feat_dim = 2, 16, 8
    x = jax.random.normal(kx, (B, NUM_ASSETS, W, feat_dim), dtype=jnp.float32)
    params = init_params(kp, feat_dim)

    out = jax.block_until_ready(lsre_forward(x, params))
    ref = jax.block_until_ready(lsre_ref(x, params))

    assert out.shape == (B, NUM_ASSETS, LATENT_DIM)
    # tolerance absorbs the EUP approximate reciprocal (softmax denominator)
    # and tanh-GELU vs exact erf-GELU; both are well under 2e-3 at these scales.
    np.testing.assert_allclose(np.asarray(out), np.asarray(ref),
                               rtol=2e-3, atol=2e-3)
    print("KERNEL_OK")
</pallas_src>

<mosaic_0001>
module attributes {stable_mosaic.version = 11 : i64} {
  func.func @kernel(%arg0: memref<64x32xf32, #tpu.memory_space<vmem>>, %arg1: memref<128x8xf32, #tpu.memory_space<vmem>>, %arg2: memref<680x128xf32, #tpu.memory_space<vmem>>, %arg3: memref<2x128xf32, #tpu.memory_space<vmem>>) attributes {dimension_semantics = [], scalar_prefetch = 0 : i64, scratch_operands = 0 : i64, tpu.core_type = #tpu.core_type<tc>} {
    %c0 = arith.constant 0 : index
    %c0_0 = arith.constant 0 : index
    %0 = vector.load %arg0[%c0, %c0_0] : memref<64x32xf32, #tpu.memory_space<vmem>>, vector<64x32xf32>
    %c0_1 = arith.constant 0 : index
    %c0_2 = arith.constant 0 : index
    %1 = vector.load %arg1[%c0_1, %c0_2] : memref<128x8xf32, #tpu.memory_space<vmem>>, vector<128x8xf32>
    %cst = arith.constant dense<0.000000e+00> : vector<64xf32>
    %2 = vector.multi_reduction <add>, %0, %cst [1] : vector<64x32xf32> to vector<64xf32>
    %3 = vector.shape_cast %2 : vector<64xf32> to vector<64x1xf32>
    %cst_3 = arith.constant 3.200000e+01 : f32
    %4 = vector.broadcast %cst_3 : f32 to vector<64x1xf32>
    %5 = arith.divf %3, %4 : vector<64x1xf32>
    %6 = vector.broadcast %5 : vector<64x1xf32> to vector<64x32xf32>
    %7 = arith.subf %0, %6 : vector<64x32xf32>
    %8 = arith.mulf %7, %7 : vector<64x32xf32>
    %cst_4 = arith.constant dense<0.000000e+00> : vector<64xf32>
    %9 = vector.multi_reduction <add>, %8, %cst_4 [1] : vector<64x32xf32> to vector<64xf32>
    %10 = vector.shape_cast %9 : vector<64xf32> to vector<64x1xf32>
    %cst_5 = arith.constant 3.200000e+01 : f32
    %11 = vector.broadcast %cst_5 : f32 to vector<64x1xf32>
    %12 = arith.divf %10, %11 : vector<64x1xf32>
    %cst_6 = arith.constant 9.99999974E-6 : f32
    %13 = vector.broadcast %cst_6 : f32 to vector<64x1xf32>
    %14 = arith.addf %12, %13 : vector<64x1xf32>
    %15 = math.rsqrt %14 : vector<64x1xf32>
    %16 = vector.broadcast %15 : vector<64x1xf32> to vector<64x32xf32>
    %17 = arith.mulf %7, %16 : vector<64x32xf32>
    %c0_7 = arith.constant 0 : index
    %c0_8 = arith.constant 0 : index
    %18 = vector.load %arg2[%c0_7, %c0_8] : memref<680x128xf32, #tpu.memory_space<vmem>>, vector<1x32xf32>
    %19 = vector.broadcast %18 : vector<1x32xf32> to vector<64x32xf32>
    %20 = arith.mulf %17, %19 : vector<64x32xf32>
    %c8 = arith.constant 8 : index
    %c0_9 = arith.constant 0 : index
    %21 = vector.load %arg2[%c8, %c0_9] : memref<680x128xf32, #tpu.memory_space<vmem>>, vector<1x32xf32>
    %22 = vector.broadcast %21 : vector<1x32xf32> to vector<64x32xf32>
    %23 = arith.addf %20, %22 : vector<64x32xf32>
    %cst_10 = arith.constant dense<0.000000e+00> : vector<128xf32>
    %24 = vector.multi_reduction <add>, %1, %cst_10 [1] : vector<128x8xf32> to vector<128xf32>
    %25 = vector.shape_cast %24 : vector<128xf32> to vector<128x1xf32>
    %cst_11 = arith.constant 8.000000e+00 : f32
    %26 = vector.broadcast %cst_11 : f32 to vector<128x1xf32>
    %27 = arith.divf %25, %26 : vector<128x1xf32>
    %28 = vector.broadcast %27 : vector<128x1xf32> to vector<128x8xf32>
    %29 = arith.subf %1, %28 : vector<128x8xf32>
    %30 = arith.mulf %29, %29 : vector<128x8xf32>
    %cst_12 = arith.constant dense<0.000000e+00> : vector<128xf32>
    %31 = vector.multi_reduction <add>, %30, %cst_12 [1] : vector<128x8xf32> to vector<128xf32>
    %32 = vector.shape_cast %31 : vector<128xf32> to vector<128x1xf32>
    %cst_13 = arith.constant 8.000000e+00 : f32
    %33 = vector.broadcast %cst_13 : f32 to vector<128x1xf32>
    %34 = arith.divf %32, %33 : vector<128x1xf32>
    %cst_14 = arith.constant 9.99999974E-6 : f32
    %35 = vector.broadcast %cst_14 : f32 to vector<128x1xf32>
    %36 = arith.addf %34, %35 : vector<128x1xf32>
    %37 = math.rsqrt %36 : vector<128x1xf32>
    %38 = vector.broadcast %37 : vector<128x1xf32> to vector<128x8xf32>
    %39 = arith.mulf %29, %38 : vector<128x8xf32>
    %c16 = arith.constant 16 : index
    %c0_15 = arith.constant 0 : index
    %40 = vector.load %arg2[%c16, %c0_15] : memref<680x128xf32, #tpu.memory_space<vmem>>, vector<1x8xf32>
    %41 = vector.broadcast %40 : vector<1x8xf32> to vector<128x8xf32>
    %42 = arith.mulf %39, %41 : vector<128x8xf32>
    %c24 = arith.constant 24 : index
    %c0_16 = arith.constant 0 : index
    %43 = vector.load %arg2[%c24, %c0_16] : memref<680x128xf32, #tpu.memory_space<vmem>>, vector<1x8xf32>
    %44 = vector.broadcast %43 : vector<1x8xf32> to vector<128x8xf32>
    %45 = arith.addf %42, %44 : vector<128x8xf32>
    %c32 = arith.constant 32 : index
    %c0_17 = arith.constant 0 : index
    %46 = vector.load %arg2[%c32, %c0_17] : memref<680x128xf32, #tpu.memory_space<vmem>>, vector<32x32xf32>
    %cst_18 = arith.constant dense<0.000000e+00> : vector<64x32xf32>
    %47 = tpu.matmul %23, %46, %cst_18 {dimension_numbers = #tpu.dot_dimension_numbers<[1], [0], [0], [1], [0, 0, 1, 1], [], []>} : vector<64x32xf32>, vector<32x32xf32>, vector<64x32xf32> -> vector<64x32xf32>
    %c64 = arith.constant 64 : index
    %c0_19 = arith.constant 0 : index
    %48 = vector.load %arg2[%c64, %c0_19] : memref<680x128xf32, #tpu.memory_space<vmem>>, vector<8x64xf32>
    %cst_20 = arith.constant dense<0.000000e+00> : vector<128x64xf32>
    %49 = tpu.matmul %45, %48, %cst_20 {dimension_numbers = #tpu.dot_dimension_numbers<[1], [0], [0], [1], [0, 0, 1, 1], [], []>} : vector<128x8xf32>, vector<8x64xf32>, vector<128x64xf32> -> vector<128x64xf32>
    %50 = vector.extract_strided_slice %49 {offsets = [0, 0], sizes = [128, 32], strides = [1, 1]} : vector<128x64xf32> to vector<128x32xf32>
    %51 = vector.extract_strided_slice %49 {offsets = [0, 32], sizes = [128, 32], strides = [1, 1]} : vector<128x64xf32> to vector<128x32xf32>
    %52 = vector.shape_cast %47 : vector<64x32xf32> to vector<8x8x32xf32>
    %53 = vector.shape_cast %50 : vector<128x32xf32> to vector<8x16x32xf32>
    %54 = vector.shape_cast %51 : vector<128x32xf32> to vector<8x16x32xf32>
    %55 = vector.extract_strided_slice %52 {offsets = [0, 0, 0], sizes = [8, 8, 16], strides = [1, 1, 1]} : vector<8x8x32xf32> to vector<8x8x16xf32>
    %56 = vector.extract_strided_slice %53 {offsets = [0, 0, 0], sizes = [8, 16, 16], strides = [1, 1, 1]} : vector<8x16x32xf32> to vector<8x16x16xf32>
    "tpu.trace_start"() <{level = 10 : i32, message = "bnd,bmd->bnm"}> : () -> ()
    %cst_21 = arith.constant dense<0.000000e+00> : vector<8x8x16xf32>
    %57 = tpu.matmul %55, %56, %cst_21 {dimension_numbers = #tpu.dot_dimension_numbers<[2], [2], [1], [1], [0, 0, 0, 1, 1, 1], [0], [0]>} : vector<8x8x16xf32>, vector<8x16x16xf32>, vector<8x8x16xf32> -> vector<8x8x16xf32>
    "tpu.trace_stop"() : () -> ()
    %cst_22 = arith.constant dense<0xFF800000> : vector<8x8xf32>
    %58 = vector.multi_reduction <maximumf>, %57, %cst_22 [2] : vector<8x8x16xf32> to vector<8x8xf32>
    %59 = vector.shape_cast %58 : vector<8x8xf32> to vector<8x8x1xf32>
    %60 = vector.broadcast %59 : vector<8x8x1xf32> to vector<8x8x16xf32>
    %61 = arith.subf %57, %60 : vector<8x8x16xf32>
    %62 = math.exp %61 : vector<8x8x16xf32>
    %cst_23 = arith.constant dense<0.000000e+00> : vector<8x8xf32>
    %63 = vector.multi_reduction <add>, %62, %cst_23 [2] : vector<8x8x16xf32> to vector<8x8xf32>
    %64 = vector.shape_cast %63 : vector<8x8xf32> to vector<8x8x1xf32>
    %65 = tpu.reciprocal %64 {approx = true} : vector<8x8x1xf32> -> vector<8x8x1xf32>
    %66 = vector.broadcast %65 : vector<8x8x1xf32> to vector<8x8x16xf32>
    %67 = arith.mulf %62, %66 : vector<8x8x16xf32>
    %68 = vector.extract_strided_slice %54 {offsets = [0, 0, 0], sizes = [8, 16, 16], strides = [1, 1, 1]} : vector<8x16x32xf32> to vector<8x16x16xf32>
    "tpu.trace_start"() <{level = 10 : i32, message = "bnm,bmd->bnd"}> : () -> ()
    %cst_24 = arith.constant dense<0.000000e+00> : vector<8x8x16xf32>
    %69 = tpu.matmul %67, %68, %cst_24 {dimension_numbers = #tpu.dot_dimension_numbers<[2], [1], [1], [2], [0, 0, 0, 1, 1, 2], [0], [0]>} : vector<8x8x16xf32>, vector<8x16x16xf32>, vector<8x8x16xf32> -> vector<8x8x16xf32>
    "tpu.trace_stop"() : () -> ()
    %70 = vector.extract_strided_slice %52 {offsets = [0, 0, 16], sizes = [8, 8, 16], strides = [1, 1, 1]} : vector<8x8x32xf32> to vector<8x8x16xf32>
    %71 = vector.extract_strided_slice %53 {offsets = [0, 0, 16], sizes = [8, 16, 16], strides = [1, 1, 1]} : vector<8x16x32xf32> to vector<8x16x16xf32>
    "tpu.trace_start"() <{level = 10 : i32, message = "bnd,bmd->bnm"}> : () -> ()
    %cst_25 = arith.constant dense<0.000000e+00> : vector<8x8x16xf32>
    %72 = tpu.matmul %70, %71, %cst_25 {dimension_numbers = #tpu.dot_dimension_numbers<[2], [2], [1], [1], [0, 0, 0, 1, 1, 1], [0], [0]>} : vector<8x8x16xf32>, vector<8x16x16xf32>, vector<8x8x16xf32> -> vector<8x8x16xf32>
    "tpu.trace_stop"() : () -> ()
    %cst_26 = arith.constant dense<0xFF800000> : vector<8x8xf32>
    %73 = vector.multi_reduction <maximumf>, %72, %cst_26 [2] : vector<8x8x16xf32> to vector<8x8xf32>
    %74 = vector.shape_cast %73 : vector<8x8xf32> to vector<8x8x1xf32>
    %75 = vector.broadcast %74 : vector<8x8x1xf32> to vector<8x8x16xf32>
    %76 = arith.subf %72, %75 : vector<8x8x16xf32>
    %77 = math.exp %76 : vector<8x8x16xf32>
    %cst_27 = arith.constant dense<0.000000e+00> : vector<8x8xf32>
    %78 = vector.multi_reduction <add>, %77, %cst_27 [2] : vector<8x8x16xf32> to vector<8x8xf32>
    %79 = vector.shape_cast %78 : vector<8x8xf32> to vector<8x8x1xf32>
    %80 = tpu.reciprocal %79 {approx = true} : vector<8x8x1xf32> -> vector<8x8x1xf32>
    %81 = vector.broadcast %80 : vector<8x8x1xf32> to vector<8x8x16xf32>
    %82 = arith.mulf %77, %81 : vector<8x8x16xf32>
    %83 = vector.extract_strided_slice %54 {offsets = [0, 0, 16], sizes = [8, 16, 16], strides = [1, 1, 1]} : vector<8x16x32xf32> to vector<8x16x16xf32>
    "tpu.trace_start"() <{level = 10 : i32, message = "bnm,bmd->bnd"}> : () -> ()
    %cst_28 = arith.constant dense<0.000000e+00> : vector<8x8x16xf32>
    %84 = tpu.matmul %82, %83, %cst_28 {dimension_numbers = #tpu.dot_dimension_numbers<[2], [1], [1], [2], [0, 0, 0, 1, 1, 2], [0], [0]>} : vector<8x8x16xf32>, vector<8x16x16xf32>, vector<8x8x16xf32> -> vector<8x8x16xf32>
    "tpu.trace_stop"() : () -> ()
    %85 = tpu.concatenate %69, %84 in 2 : vector<8x8x16xf32>, vector<8x8x16xf32> -> vector<8x8x32xf32>
    %86 = vector.shape_cast %85 : vector<8x8x32xf32> to vector<64x32xf32>
    %c72 = arith.constant 72 : index
    %c0_29 = arith.constant 0 : index
    %87 = vector.load %arg2[%c72, %c0_29] : memref<680x128xf32, #tpu.memory_space<vmem>>, vector<32x32xf32>
    %cst_30 = arith.constant dense<0.000000e+00> : vector<64x32xf32>
    %88 = tpu.matmul %86, %87, %cst_30 {dimension_numbers = #tpu.dot_dimension_numbers<[1], [0], [0], [1], [0, 0, 1, 1], [], []>} : vector<64x32xf32>, vector<32x32xf32>, vector<64x32xf32> -> vector<64x32xf32>
    %c104 = arith.constant 104 : index
    %c0_31 = arith.constant 0 : index
    %89 = vector.load %arg2[%c104, %c0_31] : memref<680x128xf32, #tpu.memory_space<vmem>>, vector<1x32xf32>
    %90 = vector.broadcast %89 : vector<1x32xf32> to vector<64x32xf32>
    %91 = arith.addf %88, %90 : vector<64x32xf32>
    %92 = arith.addf %0, %91 : vector<64x32xf32>
    %cst_32 = arith.constant dense<0.000000e+00> : vector<64xf32>
    %93 = vector.multi_reduction <add>, %92, %cst_32 [1] : vector<64x32xf32> to vector<64xf32>
    %94 = vector.shape_cast %93 : vector<64xf32> to vector<64x1xf32>
    %cst_33 = arith.constant 3.200000e+01 : f32
    %95 = vector.broadcast %cst_33 : f32 to vector<64x1xf32>
    %96 = arith.divf %94, %95 : vector<64x1xf32>
    %97 = vector.broadcast %96 : vector<64x1xf32> to vector<64x32xf32>
    %98 = arith.subf %92, %97 : vector<64x32xf32>
    %99 = arith.mulf %98, %98 : vector<64x32xf32>
    %cst_34 = arith.constant dense<0.000000e+00> : vector<64xf32>
    %100 = vector.multi_reduction <add>, %99, %cst_34 [1] : vector<64x32xf32> to vector<64xf32>
    %101 = vector.shape_cast %100 : vector<64xf32> to vector<64x1xf32>
    %cst_35 = arith.constant 3.200000e+01 : f32
    %102 = vector.broadcast %cst_35 : f32 to vector<64x1xf32>
    %103 = arith.divf %101, %102 : vector<64x1xf32>
    %cst_36 = arith.constant 9.99999974E-6 : f32
    %104 = vector.broadcast %cst_36 : f32 to vector<64x1xf32>
    %105 = arith.addf %103, %104 : vector<64x1xf32>
    %106 = math.rsqrt %105 : vector<64x1xf32>
    %107 = vector.broadcast %106 : vector<64x1xf32> to vector<64x32xf32>
    %108 = arith.mulf %98, %107 : vector<64x32xf32>
    %c112 = arith.constant 112 : index
    %c0_37 = arith.constant 0 : index
    %109 = vector.load %arg2[%c112, %c0_37] : memref<680x128xf32, #tpu.memory_space<vmem>>, vector<1x32xf32>
    %110 = vector.broadcast %109 : vector<1x32xf32> to vector<64x32xf32>
    %111 = arith.mulf %108, %110 : vector<64x32xf32>
    %c120 = arith.constant 120 : index
    %c0_38 = arith.constant 0 : index
    %112 = vector.load %arg2[%c120, %c0_38] : memref<680x128xf32, #tpu.memory_space<vmem>>, vector<1x32xf32>
    %113 = vector.broadcast %112 : vector<1x32xf32> to vector<64x32xf32>
    %114 = arith.addf %111, %113 : vector<64x32xf32>
    %c128 = arith.constant 128 : index
    %c0_39 = arith.constant 0 : index
    %115 = vector.load %arg2[%c128, %c0_39] : memref<680x128xf32, #tpu.memory_space<vmem>>, vector<32x128xf32>
    %cst_40 = arith.constant dense<0.000000e+00> : vector<64x128xf32>
    %116 = tpu.matmul %114, %115, %cst_40 {dimension_numbers = #tpu.dot_dimension_numbers<[1], [0], [0], [1], [0, 0, 1, 1], [], []>} : vector<64x32xf32>, vector<32x128xf32>, vector<64x128xf32> -> vector<64x128xf32>
    %c192 = arith.constant 192 : index
    %c0_41 = arith.constant 0 : index
    %117 = vector.load %arg2[%c192, %c0_41] : memref<680x128xf32, #tpu.memory_space<vmem>>, vector<1x128xf32>
    %118 = vector.broadcast %117 : vector<1x128xf32> to vector<64x128xf32>
    %119 = arith.addf %116, %118 : vector<64x128xf32>
    %c160 = arith.constant 160 : index
    %c0_42 = arith.constant 0 : index
    %120 = vector.load %arg2[%c160, %c0_42] : memref<680x128xf32, #tpu.memory_space<vmem>>, vector<32x128xf32>
    %cst_43 = arith.constant dense<0.000000e+00> : vector<64x128xf32>
    %121 = tpu.matmul %114, %120, %cst_43 {dimension_numbers = #tpu.dot_dimension_numbers<[1], [0], [0], [1], [0, 0, 1, 1], [], []>} : vector<64x32xf32>, vector<32x128xf32>, vector<64x128xf32> -> vector<64x128xf32>
    %c200 = arith.constant 200 : index
    %c0_44 = arith.constant 0 : index
    %122 = vector.load %arg2[%c200, %c0_44] : memref<680x128xf32, #tpu.memory_space<vmem>>, vector<1x128xf32>
    %123 = vector.broadcast %122 : vector<1x128xf32> to vector<64x128xf32>
    %124 = arith.addf %121, %123 : vector<64x128xf32>
    %125 = arith.mulf %124, %124 : vector<64x128xf32>
    %126 = arith.mulf %124, %125 : vector<64x128xf32>
    %cst_45 = arith.constant 4.471500e-02 : f32
    %127 = vector.broadcast %cst_45 : f32 to vector<64x128xf32>
    %128 = arith.mulf %127, %126 : vector<64x128xf32>
    %129 = arith.addf %124, %128 : vector<64x128xf32>
    %cst_46 = arith.constant 0.797884583 : f32
    %130 = vector.broadcast %cst_46 : f32 to vector<64x128xf32>
    %131 = arith.mulf %130, %129 : vector<64x128xf32>
    %132 = math.tanh %131 : vector<64x128xf32>
    %cst_47 = arith.constant 1.000000e+00 : f32
    %133 = vector.broadcast %cst_47 : f32 to vector<64x128xf32>
    %134 = arith.addf %133, %132 : vector<64x128xf32>
    %cst_48 = arith.constant 5.000000e-01 : f32
    %135 = vector.broadcast %cst_48 : f32 to vector<64x128xf32>
    %136 = arith.mulf %135, %134 : vector<64x128xf32>
    %137 = arith.mulf %124, %136 : vector<64x128xf32>
    %138 = arith.mulf %119, %137 : vector<64x128xf32>
    %c208 = arith.constant 208 : index
    %c0_49 = arith.constant 0 : index
    %139 = vector.load %arg2[%c208, %c0_49] : memref<680x128xf32, #tpu.memory_space<vmem>>, vector<128x32xf32>
    %cst_50 = arith.constant dense<0.000000e+00> : vector<64x32xf32>
    %140 = tpu.matmul %138, %139, %cst_50 {dimension_numbers = #tpu.dot_dimension_numbers<[1], [0], [0], [1], [0, 0, 1, 1], [], []>} : vector<64x128xf32>, vector<128x32xf32>, vector<64x32xf32> -> vector<64x32xf32>
    %141 = arith.addf %92, %140 : vector<64x32xf32>
    %c336 = arith.constant 336 : index
    %c0_51 = arith.constant 0 : index
    %142 = vector.load %arg2[%c336, %c0_51] : memref<680x128xf32, #tpu.memory_space<vmem>>, vector<1x32xf32>
    %143 = vector.broadcast %142 : vector<1x32xf32> to vector<64x32xf32>
    %144 = arith.addf %141, %143 : vector<64x32xf32>
    %cst_52 = arith.constant dense<0.000000e+00> : vector<64xf32>
    %145 = vector.multi_reduction <add>, %144, %cst_52 [1] : vector<64x32xf32> to vector<64xf32>
    %146 = vector.shape_cast %145 : vector<64xf32> to vector<64x1xf32>
    %cst_53 = arith.constant 3.200000e+01 : f32
    %147 = vector.broadcast %cst_53 : f32 to vector<64x1xf32>
    %148 = arith.divf %146, %147 : vector<64x1xf32>
    %149 = vector.broadcast %148 : vector<64x1xf32> to vector<64x32xf32>
    %150 = arith.subf %144, %149 : vector<64x32xf32>
    %151 = arith.mulf %150, %150 : vector<64x32xf32>
    %cst_54 = arith.constant dense<0.000000e+00> : vector<64xf32>
    %152 = vector.multi_reduction <add>, %151, %cst_54 [1] : vector<64x32xf32> to vector<64xf32>
    %153 = vector.shape_cast %152 : vector<64xf32> to vector<64x1xf32>
    %cst_55 = arith.constant 3.200000e+01 : f32
    %154 = vector.broadcast %cst_55 : f32 to vector<64x1xf32>
    %155 = arith.divf %153, %154 : vector<64x1xf32>
    %cst_56 = arith.constant 9.99999974E-6 : f32
    %156 = vector.broadcast %cst_56 : f32 to vector<64x1xf32>
    %157 = arith.addf %155, %156 : vector<64x1xf32>
    %158 = math.rsqrt %157 : vector<64x1xf32>
    %159 = vector.broadcast %158 : vector<64x1xf32> to vector<64x32xf32>
    %160 = arith.mulf %150, %159 : vector<64x32xf32>
    %c344 = arith.constant 344 : index
    %c0_57 = arith.constant 0 : index
    %161 = vector.load %arg2[%c344, %c0_57] : memref<680x128xf32, #tpu.memory_space<vmem>>, vector<1x32xf32>
    %162 = vector.broadcast %161 : vector<1x32xf32> to vector<64x32xf32>
    %163 = arith.mulf %160, %162 : vector<64x32xf32>
    %c352 = arith.constant 352 : index
    %c0_58 = arith.constant 0 : index
    %164 = vector.load %arg2[%c352, %c0_58] : memref<680x128xf32, #tpu.memory_space<vmem>>, vector<1x32xf32>
    %165 = vector.broadcast %164 : vector<1x32xf32> to vector<64x32xf32>
    %166 = arith.addf %163, %165 : vector<64x32xf32>
    %c360 = arith.constant 360 : index
    %c0_59 = arith.constant 0 : index
    %167 = vector.load %arg2[%c360, %c0_59] : memref<680x128xf32, #tpu.memory_space<vmem>>, vector<32x96xf32>
    %cst_60 = arith.constant dense<0.000000e+00> : vector<64x96xf32>
    %168 = tpu.matmul %166, %167, %cst_60 {dimension_numbers = #tpu.dot_dimension_numbers<[1], [0], [0], [1], [0, 0, 1, 1], [], []>} : vector<64x32xf32>, vector<32x96xf32>, vector<64x96xf32> -> vector<64x96xf32>
    %169 = vector.extract_strided_slice %168 {offsets = [0, 0], sizes = [64, 32], strides = [1, 1]} : vector<64x96xf32> to vector<64x32xf32>
    %170 = vector.extract_strided_slice %168 {offsets = [0, 32], sizes = [64, 32], strides = [1, 1]} : vector<64x96xf32> to vector<64x32xf32>
    %171 = vector.extract_strided_slice %168 {offsets = [0, 64], sizes = [64, 32], strides = [1, 1]} : vector<64x96xf32> to vector<64x32xf32>
    %172 = vector.shape_cast %169 : vector<64x32xf32> to vector<8x8x32xf32>
    %173 = vector.shape_cast %170 : vector<64x32xf32> to vector<8x8x32xf32>
    %174 = vector.shape_cast %171 : vector<64x32xf32> to vector<8x8x32xf32>
    %175 = vector.extract_strided_slice %172 {offsets = [0, 0, 0], sizes = [8, 8, 16], strides = [1, 1, 1]} : vector<8x8x32xf32> to vector<8x8x16xf32>
    %176 = vector.extract_strided_slice %173 {offsets = [0, 0, 0], sizes = [8, 8, 16], strides = [1, 1, 1]} : vector<8x8x32xf32> to vector<8x8x16xf32>
    "tpu.trace_start"() <{level = 10 : i32, message = "bnd,bmd->bnm"}> : () -> ()
    %cst_61 = arith.constant dense<0.000000e+00> : vector<8x8x8xf32>
    %177 = tpu.matmul %175, %176, %cst_61 {dimension_numbers = #tpu.dot_dimension_numbers<[2], [2], [1], [1], [0, 0, 0, 1, 1, 1], [0], [0]>} : vector<8x8x16xf32>, vector<8x8x16xf32>, vector<8x8x8xf32> -> vector<8x8x8xf32>
    "tpu.trace_stop"() : () -> ()
    %cst_62 = arith.constant dense<0xFF800000> : vector<8x8xf32>
    %178 = vector.multi_reduction <maximumf>, %177, %cst_62 [2] : vector<8x8x8xf32> to vector<8x8xf32>
    %179 = vector.shape_cast %178 : vector<8x8xf32> to vector<8x8x1xf32>
    %180 = vector.broadcast %179 : vector<8x8x1xf32> to vector<8x8x8xf32>
    %181 = arith.subf %177, %180 : vector<8x8x8xf32>
    %182 = math.exp %181 : vector<8x8x8xf32>
    %cst_63 = arith.constant dense<0.000000e+00> : vector<8x8xf32>
    %183 = vector.multi_reduction <add>, %182, %cst_63 [2] : vector<8x8x8xf32> to vector<8x8xf32>
    %184 = vector.shape_cast %183 : vector<8x8xf32> to vector<8x8x1xf32>
    %185 = tpu.reciprocal %184 {approx = true} : vector<8x8x1xf32> -> vector<8x8x1xf32>
    %186 = vector.broadcast %185 : vector<8x8x1xf32> to vector<8x8x8xf32>
    %187 = arith.mulf %182, %186 : vector<8x8x8xf32>
    %188 = vector.extract_strided_slice %174 {offsets = [0, 0, 0], sizes = [8, 8, 16], strides = [1, 1, 1]} : vector<8x8x32xf32> to vector<8x8x16xf32>
    "tpu.trace_start"() <{level = 10 : i32, message = "bnm,bmd->bnd"}> : () -> ()
    %cst_64 = arith.constant dense<0.000000e+00> : vector<8x8x16xf32>
    %189 = tpu.matmul %187, %188, %cst_64 {dimension_numbers = #tpu.dot_dimension_numbers<[2], [1], [1], [2], [0, 0, 0, 1, 1, 2], [0], [0]>} : vector<8x8x8xf32>, vector<8x8x16xf32>, vector<8x8x16xf32> -> vector<8x8x16xf32>
    "tpu.trace_stop"() : () -> ()
    %190 = vector.extract_strided_slice %172 {offsets = [0, 0, 16], sizes = [8, 8, 16], strides = [1, 1, 1]} : vector<8x8x32xf32> to vector<8x8x16xf32>
    %191 = vector.extract_strided_slice %173 {offsets = [0, 0, 16], sizes = [8, 8, 16], strides = [1, 1, 1]} : vector<8x8x32xf32> to vector<8x8x16xf32>
    "tpu.trace_start"() <{level = 10 : i32, message = "bnd,bmd->bnm"}> : () -> ()
    %cst_65 = arith.constant dense<0.000000e+00> : vector<8x8x8xf32>
    %192 = tpu.matmul %190, %191, %cst_65 {dimension_numbers = #tpu.dot_dimension_numbers<[2], [2], [1], [1], [0, 0, 0, 1, 1, 1], [0], [0]>} : vector<8x8x16xf32>, vector<8x8x16xf32>, vector<8x8x8xf32> -> vector<8x8x8xf32>
    "tpu.trace_stop"() : () -> ()
    %cst_66 = arith.constant dense<0xFF800000> : vector<8x8xf32>
    %193 = vector.multi_reduction <maximumf>, %192, %cst_66 [2] : vector<8x8x8xf32> to vector<8x8xf32>
    %194 = vector.shape_cast %193 : vector<8x8xf32> to vector<8x8x1xf32>
    %195 = vector.broadcast %194 : vector<8x8x1xf32> to vector<8x8x8xf32>
    %196 = arith.subf %192, %195 : vector<8x8x8xf32>
    %197 = math.exp %196 : vector<8x8x8xf32>
    %cst_67 = arith.constant dense<0.000000e+00> : vector<8x8xf32>
    %198 = vector.multi_reduction <add>, %197, %cst_67 [2] : vector<8x8x8xf32> to vector<8x8xf32>
    %199 = vector.shape_cast %198 : vector<8x8xf32> to vector<8x8x1xf32>
    %200 = tpu.reciprocal %199 {approx = true} : vector<8x8x1xf32> -> vector<8x8x1xf32>
    %201 = vector.broadcast %200 : vector<8x8x1xf32> to vector<8x8x8xf32>
    %202 = arith.mulf %197, %201 : vector<8x8x8xf32>
    %203 = vector.extract_strided_slice %174 {offsets = [0, 0, 16], sizes = [8, 8, 16], strides = [1, 1, 1]} : vector<8x8x32xf32> to vector<8x8x16xf32>
    "tpu.trace_start"() <{level = 10 : i32, message = "bnm,bmd->bnd"}> : () -> ()
    %cst_68 = arith.constant dense<0.000000e+00> : vector<8x8x16xf32>
    %204 = tpu.matmul %202, %203, %cst_68 {dimension_numbers = #tpu.dot_dimension_numbers<[2], [1], [1], [2], [0, 0, 0, 1, 1, 2], [0], [0]>} : vector<8x8x8xf32>, vector<8x8x16xf32>, vector<8x8x16xf32> -> vector<8x8x16xf32>
    "tpu.trace_stop"() : () -> ()
    %205 = tpu.concatenate %189, %204 in 2 : vector<8x8x16xf32>, vector<8x8x16xf32> -> vector<8x8x32xf32>
    %206 = vector.shape_cast %205 : vector<8x8x32xf32> to vector<64x32xf32>
    %c392 = arith.constant 392 : index
    %c0_69 = arith.constant 0 : index
    %207 = vector.load %arg2[%c392, %c0_69] : memref<680x128xf32, #tpu.memory_space<vmem>>, vector<32x32xf32>
    %cst_70 = arith.constant dense<0.000000e+00> : vector<64x32xf32>
    %208 = tpu.matmul %206, %207, %cst_70 {dimension_numbers = #tpu.dot_dimension_numbers<[1], [0], [0], [1], [0, 0, 1, 1], [], []>} : vector<64x32xf32>, vector<32x32xf32>, vector<64x32xf32> -> vector<64x32xf32>
    %c424 = arith.constant 424 : index
    %c0_71 = arith.constant 0 : index
    %209 = vector.load %arg2[%c424, %c0_71] : memref<680x128xf32, #tpu.memory_space<vmem>>, vector<1x32xf32>
    %210 = vector.broadcast %209 : vector<1x32xf32> to vector<64x32xf32>
    %211 = arith.addf %208, %210 : vector<64x32xf32>
    %212 = arith.addf %144, %211 : vector<64x32xf32>
    %cst_72 = arith.constant dense<0.000000e+00> : vector<64xf32>
    %213 = vector.multi_reduction <add>, %212, %cst_72 [1] : vector<64x32xf32> to vector<64xf32>
    %214 = vector.shape_cast %213 : vector<64xf32> to vector<64x1xf32>
    %cst_73 = arith.constant 3.200000e+01 : f32
    %215 = vector.broadcast %cst_73 : f32 to vector<64x1xf32>
    %216 = arith.divf %214, %215 : vector<64x1xf32>
    %217 = vector.broadcast %216 : vector<64x1xf32> to vector<64x32xf32>
    %218 = arith.subf %212, %217 : vector<64x32xf32>
    %219 = arith.mulf %218, %218 : vector<64x32xf32>
    %cst_74 = arith.constant dense<0.000000e+00> : vector<64xf32>
    %220 = vector.multi_reduction <add>, %219, %cst_74 [1] : vector<64x32xf32> to vector<64xf32>
    %221 = vector.shape_cast %220 : vector<64xf32> to vector<64x1xf32>
    %cst_75 = arith.constant 3.200000e+01 : f32
    %222 = vector.broadcast %cst_75 : f32 to vector<64x1xf32>
    %223 = arith.divf %221, %222 : vector<64x1xf32>
    %cst_76 = arith.constant 9.99999974E-6 : f32
    %224 = vector.broadcast %cst_76 : f32 to vector<64x1xf32>
    %225 = arith.addf %223, %224 : vector<64x1xf32>
    %226 = math.rsqrt %225 : vector<64x1xf32>
    %227 = vector.broadcast %226 : vector<64x1xf32> to vector<64x32xf32>
    %228 = arith.mulf %218, %227 : vector<64x32xf32>
    %c432 = arith.constant 432 : index
    %c0_77 = arith.constant 0 : index
    %229 = vector.load %arg2[%c432, %c0_77] : memref<680x128xf32, #tpu.memory_space<vmem>>, vector<1x32xf32>
    %230 = vector.broadcast %229 : vector<1x32xf32> to vector<64x32xf32>
    %231 = arith.mulf %228, %230 : vector<64x32xf32>
    %c440 = arith.constant 440 : index
    %c0_78 = arith.constant 0 : index
    %232 = vector.load %arg2[%c440, %c0_78] : memref<680x128xf32, #tpu.memory_space<vmem>>, vector<1x32xf32>
    %233 = vector.broadcast %232 : vector<1x32xf32> to vector<64x32xf32>
    %234 = arith.addf %231, %233 : vector<64x32xf32>
    %c448 = arith.constant 448 : index
    %c0_79 = arith.constant 0 : index
    %235 = vector.load %arg2[%c448, %c0_79] : memref<680x128xf32, #tpu.memory_space<vmem>>, vector<32x128xf32>
    %cst_80 = arith.constant dense<0.000000e+00> : vector<64x128xf32>
    %236 = tpu.matmul %234, %235, %cst_80 {dimension_numbers = #tpu.dot_dimension_numbers<[1], [0], [0], [1], [0, 0, 1, 1], [], []>} : vector<64x32xf32>, vector<32x128xf32>, vector<64x128xf32> -> vector<64x128xf32>
    %c512 = arith.constant 512 : index
    %c0_81 = arith.constant 0 : index
    %237 = vector.load %arg2[%c512, %c0_81] : memref<680x128xf32, #tpu.memory_space<vmem>>, vector<1x128xf32>
    %238 = vector.broadcast %237 : vector<1x128xf32> to vector<64x128xf32>
    %239 = arith.addf %236, %238 : vector<64x128xf32>
    %c480 = arith.constant 480 : index
    %c0_82 = arith.constant 0 : index
    %240 = vector.load %arg2[%c480, %c0_82] : memref<680x128xf32, #tpu.memory_space<vmem>>, vector<32x128xf32>
    %cst_83 = arith.constant dense<0.000000e+00> : vector<64x128xf32>
    %241 = tpu.matmul %234, %240, %cst_83 {dimension_numbers = #tpu.dot_dimension_numbers<[1], [0], [0], [1], [0, 0, 1, 1], [], []>} : vector<64x32xf32>, vector<32x128xf32>, vector<64x128xf32> -> vector<64x128xf32>
    %c520 = arith.constant 520 : index
    %c0_84 = arith.constant 0 : index
    %242 = vector.load %arg2[%c520, %c0_84] : memref<680x128xf32, #tpu.memory_space<vmem>>, vector<1x128xf32>
    %243 = vector.broadcast %242 : vector<1x128xf32> to vector<64x128xf32>
    %244 = arith.addf %241, %243 : vector<64x128xf32>
    %245 = arith.mulf %244, %244 : vector<64x128xf32>
    %246 = arith.mulf %244, %245 : vector<64x128xf32>
    %cst_85 = arith.constant 4.471500e-02 : f32
    %247 = vector.broadcast %cst_85 : f32 to vector<64x128xf32>
    %248 = arith.mulf %247, %246 : vector<64x128xf32>
    %249 = arith.addf %244, %248 : vector<64x128xf32>
    %cst_86 = arith.constant 0.797884583 : f32
    %250 = vector.broadcast %cst_86 : f32 to vector<64x128xf32>
    %251 = arith.mulf %250, %249 : vector<64x128xf32>
    %252 = math.tanh %251 : vector<64x128xf32>
    %cst_87 = arith.constant 1.000000e+00 : f32
    %253 = vector.broadcast %cst_87 : f32 to vector<64x128xf32>
    %254 = arith.addf %253, %252 : vector<64x128xf32>
    %cst_88 = arith.constant 5.000000e-01 : f32
    %255 = vector.broadcast %cst_88 : f32 to vector<64x128xf32>
    %256 = arith.mulf %255, %254 : vector<64x128xf32>
    %257 = arith.mulf %244, %256 : vector<64x128xf32>
    %258 = arith.mulf %239, %257 : vector<64x128xf32>
    %c528 = arith.constant 528 : index
    %c0_89 = arith.constant 0 : index
    %259 = vector.load %arg2[%c528, %c0_89] : memref<680x128xf32, #tpu.memory_space<vmem>>, vector<128x32xf32>
    %cst_90 = arith.constant dense<0.000000e+00> : vector<64x32xf32>
    %260 = tpu.matmul %258, %259, %cst_90 {dimension_numbers = #tpu.dot_dimension_numbers<[1], [0], [0], [1], [0, 0, 1, 1], [], []>} : vector<64x128xf32>, vector<128x32xf32>, vector<64x32xf32> -> vector<64x32xf32>
    %261 = arith.addf %212, %260 : vector<64x32xf32>
    %c656 = arith.constant 656 : index
    %c0_91 = arith.constant 0 : index
    %262 = vector.load %arg2[%c656, %c0_91] : memref<680x128xf32, #tpu.memory_space<vmem>>, vector<1x32xf32>
    %263 = vector.broadcast %262 : vector<1x32xf32> to vector<64x32xf32>
    %264 = arith.addf %261, %263 : vector<64x32xf32>
    %265 = vector.shape_cast %264 : vector<64x32xf32> to vector<8x8x32xf32>
    %c664 = arith.constant 664 : index
    %c0_92 = arith.constant 0 : index
    %266 = vector.load %arg2[%c664, %c0_92] : memref<680x128xf32, #tpu.memory_space<vmem>>, vector<8x1xf32>
    %267 = vector.shape_cast %266 : vector<8x1xf32> to vector<1x8x1xf32>
    %268 = vector.broadcast %267 : vector<1x8x1xf32> to vector<8x8x32xf32>
    %269 = arith.mulf %265, %268 : vector<8x8x32xf32>
    %cst_93 = arith.constant dense<0.000000e+00> : vector<8x32xf32>
    %270 = vector.multi_reduction <add>, %269, %cst_93 [1] : vector<8x8x32xf32> to vector<8x32xf32>
    %c672 = arith.constant 672 : index
    %c0_94 = arith.constant 0 : index
    %271 = vector.load %arg2[%c672, %c0_94] : memref<680x128xf32, #tpu.memory_space<vmem>>, vector<1x1xf32>
    %272 = vector.broadcast %271 : vector<1x1xf32> to vector<8x32xf32>
    %273 = arith.addf %270, %272 : vector<8x32xf32>
    %274 = vector.extract_strided_slice %273 {offsets = [0, 0], sizes = [1, 32], strides = [1, 1]} : vector<8x32xf32> to vector<1x32xf32>
    %275 = vector.extract_strided_slice %273 {offsets = [1, 0], sizes = [1, 32], strides = [1, 1]} : vector<8x32xf32> to vector<1x32xf32>
    %276 = vector.extract_strided_slice %273 {offsets = [2, 0], sizes = [1, 32], strides = [1, 1]} : vector<8x32xf32> to vector<1x32xf32>
    %277 = vector.extract_strided_slice %273 {offsets = [3, 0], sizes = [1, 32], strides = [1, 1]} : vector<8x32xf32> to vector<1x32xf32>
    %278 = tpu.concatenate %274, %275, %276, %277 in 1 : vector<1x32xf32>, vector<1x32xf32>, vector<1x32xf32>, vector<1x32xf32> -> vector<1x128xf32>
    %279 = vector.extract_strided_slice %273 {offsets = [4, 0], sizes = [1, 32], strides = [1, 1]} : vector<8x32xf32> to vector<1x32xf32>
    %280 = vector.extract_strided_slice %273 {offsets = [5, 0], sizes = [1, 32], strides = [1, 1]} : vector<8x32xf32> to vector<1x32xf32>
    %281 = vector.extract_strided_slice %273 {offsets = [6, 0], sizes = [1, 32], strides = [1, 1]} : vector<8x32xf32> to vector<1x32xf32>
    %282 = vector.extract_strided_slice %273 {offsets = [7, 0], sizes = [1, 32], strides = [1, 1]} : vector<8x32xf32> to vector<1x32xf32>
    %283 = tpu.concatenate %279, %280, %281, %282 in 1 : vector<1x32xf32>, vector<1x32xf32>, vector<1x32xf32>, vector<1x32xf32> -> vector<1x128xf32>
    %284 = tpu.concatenate %278, %283 in 0 : vector<1x128xf32>, vector<1x128xf32> -> vector<2x128xf32>
    %c0_95 = arith.constant 0 : index
    %c0_96 = arith.constant 0 : index
    %285 = vector.load %arg3[%c0_95, %c0_96] : memref<2x128xf32, #tpu.memory_space<vmem>>, vector<2x128xf32>
    tpu.vector_store %arg3[%c0_95, %c0_96], %284 {strides = array<i32>} : memref<2x128xf32, #tpu.memory_space<vmem>>, vector<2x128xf32>,
    return
  }
}

</mosaic_0001>

<bundles_post_ra>
// kernel: tpu_custom_call.1
= control target key start
LH: loop header
LB: loop body
LE: loop exit
PB: predicated region body
PF: predicated region fallthrough
CT: control target
= control target key end

     0   :  { %8 = vsyncpa [#allocation3], 0  ;;  %s11877_s0 = inlined_call_operand.vmem [shape: f32[64,32], index: 0, kind: input, shape index: {}]   ;;  %s11878_s1 = inlined_call_operand.vmem [shape: f32[128,8], index: 1, kind: input, shape index: {}]   ;;  %s11879_s2 = inlined_call_operand.hbm [shape: f32[680,128], index: 2, kind: input, shape index: {}]   ;;  %s11880_s3 = inlined_call_operand.hbm [shape: f32[2,128], index: 3, kind: output, shape index: {}]  }
   0x1   :  { %9 = vsyncpa [#allocation4], 0  ;;  %s9985_s12 = smov [#allocation2]   ;;  %s9937_s16 = scalar_lea.hbm %s11879_s2, 10880 }
   0x2   :  { %s19_s13 = sshll.u32 %s9985_s12, 4  ;;  %p9938_p0 = scmp.ne.s32.totalorder %s11879_s2, %s9937_s16  ;;  %s20_s13 = int_to_ptr.vmem [resolvable:$true] %s19_s13 }
   0x3   :  { %p9941_p1 = scmp.lt.u32.totalorder %s9937_s16, %s11879_s2 }
   0x5   :  { %p9943_p2 = pnand %p9941_p1, %p9938_p0 }
   0x7   :  { %9946 = shalt.err (!%p9943_p2)
}
   0x8   :  { %s9947_s21 = scalar_lea.vmem %s20_s13, 10880  ;;  %p9952_p4 = scmp.lt.s32.totalorder %s20_s13, %s20_s13 }
   0x9   :  { %p9948_p3 = scmp.ne.s32.totalorder %s20_s13, %s9947_s21  ;;  %p9953_p5 = scmp.lt.s32.totalorder %s9947_s21, %s9947_s21 }
   0xb   :  { %p9954_p6 = por %p9953_p5, %p9952_p4 }
   0xd   :  { %p9955_p7 = pnand %p9954_p6, %p9948_p3 }
   0xf   :  { %9958 = shalt.err (!%p9955_p7)
}
  0x10   :  { %s9986_s22 = smov 128   ;;  %s9987_s23 = smov 8  }
  0x11   :  { %25 = dma.hbm_to_vmem [thread:$0]  %s11879_s2, 10880, %s20_s13, [#allocation3], %s9986_s22, %s9986_s22, %s9987_s23  }
  0x12   :  { %9981 = dma.done.wait [#allocation3], 10880  }
  0x13   :  { %9982 = vsyncadd [#allocation3], 4294956416  ;;  %vm53_vm0 = vcmask 261120   ;;  %v10035_v0 = vld [vmem:[%s11877_s0] sm:$0xff]  ;;  %v10040_v1 = vld [vmem:[%s11877_s0 + $0x10] sm:$0xff]  ;;  %vm185_vm1 = vcmask 64512  }
  0x14   :  { %v10045_v2 = vld [vmem:[%s11877_s0 + $0x8] sm:$0xff]  ;;  %v54_v3 = vsel %vm53_vm0, %v10035_v0, 0.0  ;;  %v60_v4 = vsel %vm53_vm0, %v10040_v1, 0.0  ;;  %v10054_v5 = vld [vmem:[%s11877_s0 + $0x18] sm:$0xff]  ;;  %v10063_v8 = vld [vmem:[%s11877_s0 + $0x20] sm:$0xff]  ;;  %vm9989_vm2 = vmmov 0  }
  0x15   :  { %55 = vadd.xlane.f32.xlu0 %v54_v3  ;;  %61 = vadd.xlane.f32.xlu1 %v60_v4  ;;  %v57_v6 = vsel %vm53_vm0, %v10045_v2, 0.0  ;;  %v63_v7 = vsel %vm53_vm0, %v10054_v5, 0.0  ;;  %v10068_v9 = vld [vmem:[%s11877_s0 + $0x28] sm:$0xff]  ;;  %v66_v10 = vsel %vm53_vm0, %v10063_v8, 0.0  ;;  %v10077_v12 = vld [vmem:[%s11877_s0 + $0x30] sm:$0xff]  ;;  %v10082_v13 = vld [vmem:[%s11877_s0 + $0x38] sm:$0xff] }
  0x16   :  { %v69_v11 = vsel %vm53_vm0, %v10068_v9, 0.0  ;;  %v72_v14 = vsel %vm53_vm0, %v10077_v12, 0.0  ;;  %v75_v15 = vsel %vm53_vm0, %v10082_v13, 0.0  ;;  %v10091_v16 = vld [vmem:[%s11878_s1] sm:$0xff]  ;;  %v10096_v17 = vld [vmem:[%s11878_s1 + $0x8] sm:$0xff]  ;;  %v10105_v20 = vld [vmem:[%s11878_s1 + $0x10] sm:$0xff] }
  0x17   :  { %v186_v18 = vsel %vm185_vm1, %v10091_v16, 0.0  ;;  %v189_v19 = vsel %vm185_vm1, %v10096_v17, 0.0  ;;  %v10110_v21 = vld [vmem:[%s11878_s1 + $0x18] sm:$0xff]  ;;  %v192_v22 = vsel %vm185_vm1, %v10105_v20, 0.0  ;;  %v10119_v24 = vld [vmem:[%s11878_s1 + $0x20] sm:$0xff]  ;;  %v10124_v25 = vld [vmem:[%s11878_s1 + $0x28] sm:$0xff] }
  0x18   :  { %v195_v23 = vsel %vm185_vm1, %v10110_v21, 0.0  ;;  %v198_v26 = vsel %vm185_vm1, %v10119_v24, 0.0  ;;  %v201_v27 = vsel %vm185_vm1, %v10124_v25, 0.0  ;;  %v10133_v28 = vld [vmem:[%s11878_s1 + $0x30] sm:$0xff]  ;;  %v10138_v29 = vld [vmem:[%s11878_s1 + $0x38] sm:$0xff]  ;;  %v10147_v32 = vld [vmem:[%s11878_s1 + $0x40] sm:$0xff] }
  0x19   :  { %58 = vadd.xlane.f32.xlu0 %v57_v6  ;;  %64 = vadd.xlane.f32.xlu1 %v63_v7  ;;  %v204_v30 = vsel %vm185_vm1, %v10133_v28, 0.0  ;;  %v207_v31 = vsel %vm185_vm1, %v10138_v29, 0.0  ;;  %v10152_v33 = vld [vmem:[%s11878_s1 + $0x48] sm:$0xff]  ;;  %v210_v34 = vsel %vm185_vm1, %v10147_v32, 0.0  ;;  %v10161_v36 = vld [vmem:[%s11878_s1 + $0x50] sm:$0xff]  ;;  %v10166_v37 = vld [vmem:[%s11878_s1 + $0x58] sm:$0xff] }
  0x1a   :  { %v213_v35 = vsel %vm185_vm1, %v10152_v33, 0.0  ;;  %v216_v38 = vsel %vm185_vm1, %v10161_v36, 0.0  ;;  %v219_v39 = vsel %vm185_vm1, %v10166_v37, 0.0  ;;  %v10175_v40 = vld [vmem:[%s11878_s1 + $0x60] sm:$0xff]  ;;  %v10180_v41 = vld [vmem:[%s11878_s1 + $0x68] sm:$0xff]  ;;  %v10189_v44 = vld [vmem:[%s11878_s1 + $0x70] sm:$0xff] }
  0x1b   :  { %v222_v42 = vsel %vm185_vm1, %v10175_v40, 0.0  ;;  %v225_v43 = vsel %vm185_vm1, %v10180_v41, 0.0  ;;  %v10194_v45 = vld [vmem:[%s11878_s1 + $0x78] sm:$0xff]  ;;  %v228_v46 = vsel %vm185_vm1, %v10189_v44, 0.0  ;;  %vm764_vm3 = vcmask 130048   ;;  %s9991_s1 = smov 96  }
  0x1c   :  { %v231_v47 = vsel %vm185_vm1, %v10194_v45, 0.0  ;;  %vm10478_vm4 = vmpackc.low %vm764_vm3, %vm764_vm3  ;;  %s9992_s18 = smov 112   ;;  %s9993_s19 = smov 80   ;;  %vm8066_vm5 = vcmask 785408   ;;  %vm8064_vm6 = vcmask 523264   ;;  %vm8086_vm7 = vcmask 1040384  }
  0x1d   :  { %67 = vadd.xlane.f32.xlu0 %v66_v10  ;;  %70 = vadd.xlane.f32.xlu1 %v69_v11  ;;  %s9994_s20 = smov 16   ;;  %s9996_s9 = smov 48  }
  0x1e   :  { %s9998_s11 = smov 32   ;;  %s9999_s12 = smov [#allocation5]  }
  0x1f   :  { %s8095_s13 = sshll.u32 %s9999_s12, 4  ;;  %s8096_s13 = int_to_ptr.vmem [resolvable:$true] %s8095_s13 }
  0x20   :  { %s9959_s14 = scalar_lea.vmem %s8096_s13, 32  ;;  %p9964_p9 = scmp.lt.s32.totalorder %s8096_s13, %s8096_s13 }
  0x21   :  { %73 = vadd.xlane.f32.xlu0 %v72_v14  ;;  %76 = vadd.xlane.f32.xlu1 %v75_v15  ;;  %p9960_p8 = scmp.ne.s32.totalorder %s8096_s13, %s9959_s14  ;;  %p9965_p10 = scmp.lt.s32.totalorder %s9959_s14, %s9959_s14 }
  0x23   :  { %p9966_p11 = por %p9965_p10, %p9964_p9 }
  0x25   :  { %187 = vadd.xlane.f32.xlu0 %v186_v18  ;;  %190 = vadd.xlane.f32.xlu1 %v189_v19  ;;  %p9967_p12 = pnand %p9966_p11, %p9960_p8 }
  0x29   :  { %193 = vadd.xlane.f32.xlu0 %v192_v22  ;;  %196 = vadd.xlane.f32.xlu1 %v195_v23 }
  0x2d   :  { %199 = vadd.xlane.f32.xlu0 %v198_v26  ;;  %202 = vadd.xlane.f32.xlu1 %v201_v27 }
  0x31   :  { %205 = vadd.xlane.f32.xlu0 %v204_v30  ;;  %208 = vadd.xlane.f32.xlu1 %v207_v31 }
  0x35   :  { %211 = vadd.xlane.f32.xlu0 %v210_v34  ;;  %214 = vadd.xlane.f32.xlu1 %v213_v35 }
  0x39   :  { %217 = vadd.xlane.f32.xlu0 %v216_v38  ;;  %220 = vadd.xlane.f32.xlu1 %v219_v39 }
  0x3d   :  { %223 = vadd.xlane.f32.xlu0 %v222_v42  ;;  %226 = vadd.xlane.f32.xlu1 %v225_v43 }
  0x41   :  { %229 = vadd.xlane.f32.xlu0 %v228_v46  ;;  %232 = vadd.xlane.f32.xlu1 %v231_v47 }
  0xa2   :  { %v56_v48 = vpop.xlane.xlu0 %55  ;;  %v62_v49 = vpop.xlane.xlu1 %61 }
  0xa3   :  { %v79_v50 = vmul.f32 0.03125, %v56_v48  ;;  %v81_v51 = vmul.f32 0.03125, %v62_v49 }
  0xa5   :  { %v10201_v52 = vsub.f32 %v10035_v0, %v79_v50  ;;  %v10204_v53 = vsub.f32 %v10040_v1, %v81_v51 }
  0xa6   :  { %v59_v54 = vpop.xlane.xlu0 %58  ;;  %v65_v55 = vpop.xlane.xlu1 %64 }
  0xa7   :  { %v80_v56 = vmul.f32 0.03125, %v59_v54  ;;  %v82_v57 = vmul.f32 0.03125, %v65_v55  ;;  %v95_v58 = vmul.f32 %v10201_v52, %v10201_v52  ;;  %v97_v59 = vmul.f32 %v10204_v53, %v10204_v53 }
  0xa9   :  { %v10211_v60 = vsub.f32 %v10045_v2, %v80_v56  ;;  %v10214_v61 = vsub.f32 %v10054_v5, %v82_v57  ;;  %v103_v62 = vsel %vm53_vm0, %v95_v58, 0.0  ;;  %v109_v1 = vsel %vm53_vm0, %v97_v59, 0.0 }
  0xaa   :  { %104 = vadd.xlane.f32.xlu0 %v103_v62  ;;  %v68_v63 = vpop.xlane.xlu0 %67  ;;  %v71_v0 = vpop.xlane.xlu1 %70 }
  0xab   :  { %v83_v3 = vmul.f32 0.03125, %v68_v63  ;;  %v84_v4 = vmul.f32 0.03125, %v71_v0  ;;  %v96_v6 = vmul.f32 %v10211_v60, %v10211_v60  ;;  %v98_v7 = vmul.f32 %v10214_v61, %v10214_v61 }
  0xad   :  { %v10223_v2 = vsub.f32 %v10063_v8, %v83_v3  ;;  %v10226_v5 = vsub.f32 %v10068_v9, %v84_v4  ;;  %v106_v10 = vsel %vm53_vm0, %v96_v6, 0.0  ;;  %v112_v15 = vsel %vm53_vm0, %v98_v7, 0.0 }
  0xae   :  { %110 = vadd.xlane.f32.xlu0 %v109_v1  ;;  %107 = vadd.xlane.f32.xlu1 %v106_v10  ;;  %v74_v11 = vpop.xlane.xlu0 %73  ;;  %v77_v14 = vpop.xlane.xlu1 %76 }
  0xaf   :  { %v85_v18 = vmul.f32 0.03125, %v74_v11  ;;  %v86_v19 = vmul.f32 0.03125, %v77_v14  ;;  %v99_v22 = vmul.f32 %v10223_v2, %v10223_v2  ;;  %v100_v8 = vmul.f32 %v10226_v5, %v10226_v5 }
  0xb1   :  { %v10235_v23 = vsub.f32 %v10077_v12, %v85_v18  ;;  %v10238_v9 = vsub.f32 %v10082_v13, %v86_v19  ;;  %v115_v26 = vsel %vm53_vm0, %v99_v22, 0.0  ;;  %v118_v31 = vsel %vm53_vm0, %v100_v8, 0.0 }
  0xb2   :  { %113 = vadd.xlane.f32.xlu1 %v112_v15  ;;  %116 = vadd.xlane.f32.xlu0 %v115_v26  ;;  %v188_v27 = vpop.xlane.xlu0 %187  ;;  %v191_v30 = vpop.xlane.xlu1 %190 }
  0xb3   :  { %v235_v34 = vmul.f32 0.125, %v188_v27  ;;  %v236_v35 = vmul.f32 0.125, %v191_v30  ;;  %v101_v38 = vmul.f32 %v10235_v23, %v10235_v23  ;;  %v102_v12 = vmul.f32 %v10238_v9, %v10238_v9 }
  0xb5   :  { %v10247_v39 = vsub.f32 %v10091_v16, %v235_v34  ;;  %v10250_v13 = vsub.f32 %v10096_v17, %v236_v35  ;;  %v121_v42 = vsel %vm53_vm0, %v101_v38, 0.0  ;;  %v124_v47 = vsel %vm53_vm0, %v102_v12, 0.0 }
  0xb6   :  { %119 = vadd.xlane.f32.xlu1 %v118_v31  ;;  %122 = vadd.xlane.f32.xlu0 %v121_v42  ;;  %v194_v43 = vpop.xlane.xlu0 %193  ;;  %v197_v46 = vpop.xlane.xlu1 %196 }
  0xb7   :  { %v237_v48 = vmul.f32 0.125, %v194_v43  ;;  %v238_v49 = vmul.f32 0.125, %v197_v46  ;;  %v267_v50 = vmul.f32 %v10247_v39, %v10247_v39  ;;  %v268_v16 = vmul.f32 %v10250_v13, %v10250_v13  ;;  %v437_v43 = vld [vmem:[#allocation2 + $0x20] sm:$0xff]  ;;  %v438_v46 = vld [vmem:[#allocation2 + $0x28] sm:$0xff] }
  0xb9   :  { %v10259_v51 = vsub.f32 %v10105_v20, %v237_v48  ;;  %v10262_v17 = vsub.f32 %v10110_v21, %v238_v49  ;;  %v283_v54 = vsel %vm185_vm1, %v267_v50, 0.0  ;;  %v286_v57 = vsel %vm185_vm1, %v268_v16, 0.0 }
  0xba   :  { %125 = vadd.xlane.f32.xlu1 %v124_v47  ;;  %284 = vadd.xlane.f32.xlu0 %v283_v54  ;;  %v200_v55 = vpop.xlane.xlu0 %199  ;;  %v203_v56 = vpop.xlane.xlu1 %202 }
  0xbb   :  { %v239_v58 = vmul.f32 0.125, %v200_v55  ;;  %v240_v59 = vmul.f32 0.125, %v203_v56  ;;  %v269_v62 = vmul.f32 %v10259_v51, %v10259_v51  ;;  %v270_v20 = vmul.f32 %v10262_v17, %v10262_v17 }
  0xbd   :  { %v10271_v63 = vsub.f32 %v10119_v24, %v239_v58  ;;  %v10274_v21 = vsub.f32 %v10124_v25, %v240_v59  ;;  %v289_v0 = vsel %vm185_vm1, %v269_v62, 0.0  ;;  %v292_v4 = vsel %vm185_vm1, %v270_v20, 0.0  ;;  %v439_v58 = vld [vmem:[#allocation2 + $0x30] sm:$0xff] }
  0xbe   :  { %287 = vadd.xlane.f32.xlu1 %v286_v57  ;;  %290 = vadd.xlane.f32.xlu0 %v289_v0  ;;  %v206_v1 = vpop.xlane.xlu0 %205  ;;  %v209_v3 = vpop.xlane.xlu1 %208 }
  0xbf   :  { %v241_v6 = vmul.f32 0.125, %v206_v1  ;;  %v242_v7 = vmul.f32 0.125, %v209_v3  ;;  %v271_v10 = vmul.f32 %v10271_v63, %v10271_v63  ;;  %v272_v24 = vmul.f32 %v10274_v21, %v10274_v21 }
  0xc1   :  { %v10283_v11 = vsub.f32 %v10133_v28, %v241_v6  ;;  %v10286_v25 = vsub.f32 %v10138_v29, %v242_v7  ;;  %v295_v14 = vsel %vm185_vm1, %v271_v10, 0.0  ;;  %v298_v19 = vsel %vm185_vm1, %v272_v24, 0.0 }
  0xc2   :  { %293 = vadd.xlane.f32.xlu1 %v292_v4  ;;  %296 = vadd.xlane.f32.xlu0 %v295_v14  ;;  %v212_v15 = vpop.xlane.xlu0 %211  ;;  %v215_v18 = vpop.xlane.xlu1 %214 }
  0xc3   :  { %v243_v22 = vmul.f32 0.125, %v212_v15  ;;  %v244_v8 = vmul.f32 0.125, %v215_v18  ;;  %v273_v26 = vmul.f32 %v10283_v11, %v10283_v11  ;;  %v274_v28 = vmul.f32 %v10286_v25, %v10286_v25 }
  0xc5   :  { %v10295_v27 = vsub.f32 %v10147_v32, %v243_v22  ;;  %v10298_v29 = vsub.f32 %v10152_v33, %v244_v8  ;;  %v301_v30 = vsel %vm185_vm1, %v273_v26, 0.0  ;;  %v304_v35 = vsel %vm185_vm1, %v274_v28, 0.0 }
  0xc6   :  { %299 = vadd.xlane.f32.xlu1 %v298_v19  ;;  %302 = vadd.xlane.f32.xlu0 %v301_v30  ;;  %v218_v31 = vpop.xlane.xlu0 %217  ;;  %v221_v34 = vpop.xlane.xlu1 %220  ;;  %v9293_v33 = vpack.c.bf16 %v438_v46, %v437_v43 }
  0xc7   :  { %v245_v38 = vmul.f32 0.125, %v218_v31  ;;  %v246_v12 = vmul.f32 0.125, %v221_v34  ;;  %v275_v42 = vmul.f32 %v10295_v27, %v10295_v27  ;;  %v276_v32 = vmul.f32 %v10298_v29, %v10298_v29 }
  0xc8   :  { %9294 = vmatprep.subr.bf16.mxu0 %v9293_v33 }
  0xc9   :  { %v10307_v47 = vsub.f32 %v10161_v36, %v245_v38  ;;  %v10310_v48 = vsub.f32 %v10166_v37, %v246_v12  ;;  %v307_v49 = vsel %vm185_vm1, %v275_v42, 0.0  ;;  %v310_v54 = vsel %vm185_vm1, %v276_v32, 0.0  ;;  %v440_v37 = vld [vmem:[#allocation2 + $0x38] sm:$0xff]  ;;  %9296 = vmatpush3.bf16.msra.mxu0 %v9293_v33 }
  0xca   :  { %305 = vadd.xlane.f32.xlu1 %v304_v35  ;;  %308 = vadd.xlane.f32.xlu0 %v307_v49  ;;  %v224_v50 = vpop.xlane.xlu0 %223  ;;  %v227_v16 = vpop.xlane.xlu1 %226  ;;  %v9297_v59 = vpack.c.bf16 %v440_v37, %v439_v58  ;;  %v10349_v58 = vld [vmem:[#allocation2] ss:$0 sm:$0xff] }
  0xcb   :  { %v247_v55 = vmul.f32 0.125, %v224_v50  ;;  %v248_v56 = vmul.f32 0.125, %v227_v16  ;;  %v277_v57 = vmul.f32 %v10307_v47, %v10307_v47  ;;  %v278_v36 = vmul.f32 %v10310_v48, %v10310_v48 }
  0xcc   :  { %9298 = vmatprep.subr.bf16.mxu0 %v9297_v59 }
  0xcd   :  { %v10319_v62 = vsub.f32 %v10175_v40, %v247_v55  ;;  %v10322_v20 = vsub.f32 %v10180_v41, %v248_v56  ;;  %v313_v0 = vsel %vm185_vm1, %v277_v57, 0.0  ;;  %v316_v4 = vsel %vm185_vm1, %v278_v36, 0.0  ;;  %9300 = vmatpush3.bf16.msra.mxu0 %v9297_v59 }
  0xce   :  { %311 = vadd.xlane.f32.xlu1 %v310_v54  ;;  %314 = vadd.xlane.f32.xlu0 %v313_v0  ;;  %v230_v1 = vpop.xlane.xlu0 %229  ;;  %v233_v3 = vpop.xlane.xlu1 %232 }
  0xcf   :  { %v249_v6 = vmul.f32 0.125, %v230_v1  ;;  %v250_v7 = vmul.f32 0.125, %v233_v3  ;;  %v279_v10 = vmul.f32 %v10319_v62, %v10319_v62  ;;  %v280_v40 = vmul.f32 %v10322_v20, %v10322_v20 }
  0xd1   :  { %v10331_v41 = vsub.f32 %v10189_v44, %v249_v6  ;;  %v10334_v24 = vsub.f32 %v10194_v45, %v250_v7  ;;  %v319_v14 = vsel %vm185_vm1, %v279_v10, 0.0  ;;  %v322_v15 = vsel %vm185_vm1, %v280_v40, 0.0  ;;  %v10344_v45 = vld [vmem:[#allocation2 + $0x40] sm:$0xff] }
  0xd2   :  { %317 = vadd.xlane.f32.xlu1 %v316_v4  ;;  %320 = vadd.xlane.f32.xlu0 %v319_v14  ;;  %v10352_v4 = vld [vmem:[#allocation2 + $0x8] ss:$0 sm:$0xff] }
  0xd3   :  { %v281_v18 = vmul.f32 %v10331_v41, %v10331_v41  ;;  %v282_v19 = vmul.f32 %v10334_v24, %v10334_v24  ;;  %8655 = vmatprep.subr.mxu0 %v10344_v45  ;;  %9533 = vmatprep.subr.mxu1 %v10344_v45 }
  0xd4   :  { %9534 = vmatpush3.msra.mxu1 %v10344_v45 }
  0xd5   :  { %v325_v22 = vsel %vm185_vm1, %v281_v18, 0.0  ;;  %v328_v44 = vsel %vm185_vm1, %v282_v19, 0.0 }
  0xd6   :  { %323 = vadd.xlane.f32.xlu1 %v322_v15  ;;  %326 = vadd.xlane.f32.xlu0 %v325_v22 }
  0xda   :  { %329 = vadd.xlane.f32.xlu1 %v328_v44 }
 0x137   :  { %v105_v8 = vpop.xlane.xlu0 %104 }
 0x138   :  { %v127_v26 = vmul.f32 0.03125, %v105_v8 }
 0x13a   :  { %v135_v28 = vadd.f32 1e-05, %v127_v26 }
 0x13b   :  { %v108_v30 = vpop.xlane.xlu1 %107  ;;  %v111_v31 = vpop.xlane.xlu0 %110 }
 0x13c   :  { %9673 = vrsqrt.f32 %v135_v28  ;;  %v128_v34 = vmul.f32 0.03125, %v108_v30  ;;  %v129_v35 = vmul.f32 0.03125, %v111_v31 }
 0x13e   :  { %v136_v38 = vadd.f32 1e-05, %v128_v34  ;;  %v137_v12 = vadd.f32 1e-05, %v129_v35 }
 0x13f   :  { %v114_v42 = vpop.xlane.xlu1 %113  ;;  %v117_v32 = vpop.xlane.xlu0 %116 }
 0x140   :  { %9675 = vrsqrt.f32 %v136_v38  ;;  %v130_v43 = vmul.f32 0.03125, %v114_v42  ;;  %v131_v46 = vmul.f32 0.03125, %v117_v32 }
 0x141   :  { %9677 = vrsqrt.f32 %v137_v12 }
 0x142   :  { %v138_v33 = vadd.f32 1e-05, %v130_v43  ;;  %v139_v49 = vadd.f32 1e-05, %v131_v46 }
 0x143   :  { %v120_v50 = vpop.xlane.xlu1 %119  ;;  %v123_v16 = vpop.xlane.xlu0 %122 }
 0x144   :  { %9679 = vrsqrt.f32 %v138_v33  ;;  %v132_v54 = vmul.f32 0.03125, %v120_v50  ;;  %v133_v55 = vmul.f32 0.03125, %v123_v16 }
 0x145   :  { %9681 = vrsqrt.f32 %v139_v49 }
 0x146   :  { %v9674_v56 = vpop.eup %9673  ;;  %v140_v57 = vadd.f32 1e-05, %v132_v54  ;;  %v141_v36 = vadd.f32 1e-05, %v133_v55 }
 0x147   :  { %v126_v37 = vpop.xlane.xlu1 %125  ;;  %v285_v59 = vpop.xlane.xlu0 %284  ;;  %v151_v0 = vmul.f32 %v9674_v56, %v10201_v52 }
 0x148   :  { %9683 = vrsqrt.f32 %v140_v57  ;;  %v134_v1 = vmul.f32 0.03125, %v126_v37  ;;  %v331_v3 = vmul.f32 0.125, %v285_v59 }
 0x149   :  { %9685 = vrsqrt.f32 %v141_v36  ;;  %v164_v6 = vmul.f32 %v10349_v58, %v151_v0 }
 0x14a   :  { %v9676_v7 = vpop.eup %9675  ;;  %v142_v10 = vadd.f32 1e-05, %v134_v1  ;;  %v347_v40 = vadd.f32 1e-05, %v331_v3 }
 0x14b   :  { %v9678_v14 = vpop.eup %9677  ;;  %v288_v15 = vpop.xlane.xlu1 %287  ;;  %v177_v19 = vadd.f32 %v10352_v4, %v164_v6  ;;  %v152_v22 = vmul.f32 %v9676_v7, %v10211_v60 }
 0x14c   :  { %v291_v18 = vpop.xlane.xlu0 %290  ;;  %9687 = vrsqrt.f32 %v142_v10  ;;  %v332_v52 = vmul.f32 0.125, %v288_v15  ;;  %v153_v8 = vmul.f32 %v9678_v14, %v10204_v53  ;;  %v10380_v15 = vld [vmem:[#allocation2 + $0x10] ss:$0 sm:$0xff] }
 0x14d   :  { %v333_v44 = vmul.f32 0.125, %v291_v18  ;;  %9689 = vrsqrt.f32 %v347_v40  ;;  %8643 = vmatprep.mubr.msk.f32.mxu0 %vm53_vm0, %v177_v19  ;;  %v165_v26 = vmul.f32 %v10349_v58, %v152_v22 }
 0x14e   :  { %v9680_v28 = vpop.eup %9679  ;;  %v348_v30 = vadd.f32 1e-05, %v332_v52  ;;  %v166_v34 = vmul.f32 %v10349_v58, %v153_v8 }
 0x14f   :  { %v349_v31 = vadd.f32 1e-05, %v333_v44  ;;  %v9682_v35 = vpop.eup %9681  ;;  %v294_v38 = vpop.xlane.xlu1 %293  ;;  %v178_v60 = vadd.f32 %v10352_v4, %v165_v26  ;;  %v154_v42 = vmul.f32 %v9680_v28, %v10214_v61 }
 0x150   :  { %v297_v12 = vpop.xlane.xlu0 %296  ;;  %9691 = vrsqrt.f32 %v348_v30  ;;  %v334_v32 = vmul.f32 0.125, %v294_v38  ;;  %v179_v43 = vadd.f32 %v10352_v4, %v166_v34  ;;  %v155_v33 = vmul.f32 %v9682_v35, %v10223_v2 }
 0x151   :  { %v335_v53 = vmul.f32 0.125, %v297_v12  ;;  %9693 = vrsqrt.f32 %v349_v31  ;;  %8644 = vmatmul.mubr.msk.f32.vlgmr.msra.gmra.mrb[0].mxu0 %vm53_vm0, %v178_v60  ;;  %v167_v46 = vmul.f32 %v10349_v58, %v154_v42 }
 0x152   :  { %v9684_v49 = vpop.eup %9683  ;;  %v350_v50 = vadd.f32 1e-05, %v334_v32  ;;  %8646 = vmatprep.mubr.msk.f32.mxu0 %vm53_vm0, %v179_v43  ;;  %8656 = vmatpush3.msra.mxu0 %v10344_v45  ;;  %v168_v57 = vmul.f32 %v10349_v58, %v155_v33 }
 0x153   :  { %v351_v16 = vadd.f32 1e-05, %v335_v53  ;;  %v9686_v61 = vpop.eup %9685  ;;  %v300_v54 = vpop.xlane.xlu1 %299  ;;  %v180_v56 = vadd.f32 %v10352_v4, %v167_v46  ;;  %v156_v36 = vmul.f32 %v9684_v49, %v10226_v5 }
 0x154   :  { %v303_v55 = vpop.xlane.xlu0 %302  ;;  %9695 = vrsqrt.f32 %v350_v50  ;;  %v336_v37 = vmul.f32 0.125, %v300_v54  ;;  %v157_v2 = vmul.f32 %v9686_v61, %v10235_v23  ;;  %v181_v0 = vadd.f32 %v10352_v4, %v168_v57 }
 0x155   :  { %v337_v59 = vmul.f32 0.125, %v303_v55  ;;  %9697 = vrsqrt.f32 %v351_v16  ;;  %8647 = vmatmul.mubr.msk.f32.gmra.mrb[2].mxu0 %vm53_vm0, %v180_v56  ;;  %v169_v45 = vmul.f32 %v10349_v58, %v156_v36 }
 0x156   :  { %v9688_v1 = vpop.eup %9687  ;;  %v352_v3 = vadd.f32 1e-05, %v336_v37  ;;  %v170_v7 = vmul.f32 %v10349_v58, %v157_v2  ;;  %8649 = vmatprep.mubr.msk.f32.mxu0 %vm53_vm0, %v181_v0 }
 0x157   :  { %v353_v6 = vadd.f32 1e-05, %v337_v59  ;;  %v9690_v10 = vpop.eup %9689  ;;  %v306_v5 = vpop.xlane.xlu1 %305  ;;  %v182_v14 = vadd.f32 %v10352_v4, %v169_v45  ;;  %v158_v23 = vmul.f32 %v9688_v1, %v10238_v9  ;;  %v10387_v9 = vld [vmem:[#allocation2 + $0x18] ss:$0 sm:$0xff] }
 0x158   :  { %v309_v40 = vpop.xlane.xlu0 %308  ;;  %9699 = vrsqrt.f32 %v352_v3  ;;  %v338_v18 = vmul.f32 0.125, %v306_v5  ;;  %v183_v22 = vadd.f32 %v10352_v4, %v170_v7  ;;  %v379_v44 = vmul.f32 %v9690_v10, %v10247_v39 }
 0x159   :  { %v339_v19 = vmul.f32 0.125, %v309_v40  ;;  %9701 = vrsqrt.f32 %v353_v6  ;;  %8650 = vmatmul.mubr.msk.f32.gmra.mrb[4].mxu0 %vm53_vm0, %v182_v14  ;;  %v171_v52 = vmul.f32 %v10349_v58, %v158_v23 }
 0x15a   :  { %v9692_v8 = vpop.eup %9691  ;;  %v354_v26 = vadd.f32 1e-05, %v338_v18  ;;  %8652 = vmatprep.mubr.msk.f32.mxu0 %vm53_vm0, %v183_v22  ;;  %v400_v12 = vmul.f32 %v10380_v15, %v379_v44 }
 0x15b   :  { %v355_v28 = vadd.f32 1e-05, %v339_v19  ;;  %v9694_v30 = vpop.eup %9693  ;;  %v380_v31 = vmul.f32 %v9692_v8, %v10250_v13  ;;  %v312_v34 = vpop.xlane.xlu1 %311  ;;  %v184_v38 = vadd.f32 %v10352_v4, %v171_v52 }
 0x15c   :  { %v315_v35 = vpop.xlane.xlu0 %314  ;;  %9703 = vrsqrt.f32 %v354_v26  ;;  %v340_v58 = vmul.f32 0.125, %v312_v34  ;;  %v381_v39 = vmul.f32 %v9694_v30, %v10259_v51  ;;  %v421_v32 = vadd.f32 %v10387_v9, %v400_v12 }
 0x15d   :  { %v341_v60 = vmul.f32 0.125, %v315_v35  ;;  %v401_v42 = vmul.f32 %v10380_v15, %v380_v31  ;;  %9705 = vrsqrt.f32 %v355_v28  ;;  %8653 = vmatmul.mubr.msk.f32.gmra.mrb[6].mxu0 %vm53_vm0, %v184_v38 }
 0x15e   :  { %v9696_v53 = vpop.eup %9695  ;;  %v356_v13 = vadd.f32 1e-05, %v340_v58  ;;  %v402_v46 = vmul.f32 %v10380_v15, %v381_v39  ;;  %8657 = vmatprep.mubr.msk.f32.mxu0 %vm185_vm1, %v421_v32 }
 0x15f   :  { %v357_v43 = vadd.f32 1e-05, %v341_v60  ;;  %v9698_v4 = vpop.eup %9697  ;;  %v318_v33 = vpop.xlane.xlu1 %317  ;;  %v422_v50 = vadd.f32 %v10387_v9, %v401_v42  ;;  %v382_v51 = vmul.f32 %v9696_v53, %v10262_v17 }
 0x160   :  { %v321_v49 = vpop.xlane.xlu0 %320  ;;  %9707 = vrsqrt.f32 %v356_v13  ;;  %v342_v16 = vmul.f32 0.125, %v318_v33  ;;  %v423_v54 = vadd.f32 %v10387_v9, %v402_v46  ;;  %v383_v56 = vmul.f32 %v9698_v4, %v10271_v63 }
 0x161   :  { %v343_v61 = vmul.f32 0.125, %v321_v49  ;;  %9709 = vrsqrt.f32 %v357_v43  ;;  %8658 = vmatmul.mubr.msk.f32.vlgmr.msra.gmra.mrb[8].mxu0 %vm185_vm1, %v422_v50  ;;  %v403_v55 = vmul.f32 %v10380_v15, %v382_v51 }
 0x162   :  { %v9700_v57 = vpop.eup %9699  ;;  %v358_v36 = vadd.f32 1e-05, %v342_v16  ;;  %8660 = vmatprep.mubr.msk.f32.mxu0 %vm185_vm1, %v423_v54  ;;  %v404_v45 = vmul.f32 %v10380_v15, %v383_v56  ;;  %v9988_v54 = vmov 0.0|0.0  }
 0x163   :  { %v359_v37 = vadd.f32 1e-05, %v343_v61  ;;  %v9702_v59 = vpop.eup %9701  ;;  %v324_v2 = vpop.xlane.xlu1 %323  ;;  %v424_v0 = vadd.f32 %v10387_v9, %v403_v55  ;;  %v384_v1 = vmul.f32 %v9700_v57, %v10274_v21  ;;  %9301 = vmatprep.subr.bf16.mxu0 %v9988_v54  ;;  %9309 = vmatprep.subr.bf16.mxu1 %v9988_v54  ;;  %v9990_v55 = vmov 0.0  }
 0x164   :  { %v327_v17 = vpop.xlane.xlu0 %326  ;;  %9711 = vrsqrt.f32 %v358_v36  ;;  %v344_v3 = vmul.f32 0.125, %v324_v2  ;;  %v385_v7 = vmul.f32 %v9702_v59, %v10283_v11  ;;  %v425_v63 = vadd.f32 %v10387_v9, %v404_v45 }
 0x165   :  { %v345_v6 = vmul.f32 0.125, %v327_v17  ;;  %9713 = vrsqrt.f32 %v359_v37  ;;  %8661 = vmatmul.mubr.msk.f32.gmra.mrb[10].mxu0 %vm185_vm1, %v424_v0  ;;  %v405_v10 = vmul.f32 %v10380_v15, %v384_v1 }
 0x166   :  { %v9704_v5 = vpop.eup %9703  ;;  %v360_v40 = vadd.f32 1e-05, %v344_v3  ;;  %v406_v23 = vmul.f32 %v10380_v15, %v385_v7  ;;  %8663 = vmatprep.mubr.msk.f32.mxu1 %vm185_vm1, %v425_v63  ;;  %8685 = vmatprep.mubr.msk.f32.mxu0 %vm9989_vm2, %v9990_v55 }
 0x167   :  { %v361_v14 = vadd.f32 1e-05, %v345_v6  ;;  %v9706_v18 = vpop.eup %9705  ;;  %v330_v21 = vpop.xlane.xlu1 %329  ;;  %v426_v19 = vadd.f32 %v10387_v9, %v405_v10  ;;  %v386_v11 = vmul.f32 %v9704_v5, %v10286_v25 }
 0x168   :  { %9715 = vrsqrt.f32 %v360_v40  ;;  %v346_v22 = vmul.f32 0.125, %v330_v21  ;;  %v427_v52 = vadd.f32 %v10387_v9, %v406_v23  ;;  %v387_v44 = vmul.f32 %v9706_v18, %v10295_v27 }
 0x169   :  { %9717 = vrsqrt.f32 %v361_v14  ;;  %8664 = vmatmul.mubr.msk.f32.vlgmr.msra.gmra.mrb[0].mxu1 %vm185_vm1, %v426_v19  ;;  %v407_v8 = vmul.f32 %v10380_v15, %v386_v11 }
 0x16a   :  { %v9708_v26 = vpop.eup %9707  ;;  %v362_v28 = vadd.f32 1e-05, %v346_v22  ;;  %8666 = vmatprep.mubr.msk.f32.mxu1 %vm185_vm1, %v427_v52  ;;  %v408_v30 = vmul.f32 %v10380_v15, %v387_v44 }
 0x16b   :  { %v9710_v31 = vpop.eup %9709  ;;  %v428_v25 = vadd.f32 %v10387_v9, %v407_v8  ;;  %v388_v34 = vmul.f32 %v9708_v26, %v10298_v29 }
 0x16c   :  { %9719 = vrsqrt.f32 %v362_v28  ;;  %v429_v35 = vadd.f32 %v10387_v9, %v408_v30  ;;  %v389_v27 = vmul.f32 %v9710_v31, %v10307_v47 }
 0x16d   :  { %8667 = vmatmul.mubr.msk.f32.gmra.mrb[2].mxu1 %vm185_vm1, %v428_v25  ;;  %v409_v38 = vmul.f32 %v10380_v15, %v388_v34 }
 0x16e   :  { %v9712_v12 = vpop.eup %9711  ;;  %8669 = vmatprep.mubr.msk.f32.mxu1 %vm185_vm1, %v429_v35  ;;  %v410_v58 = vmul.f32 %v10380_v15, %v389_v27 }
 0x16f   :  { %v9714_v60 = vpop.eup %9713  ;;  %v430_v39 = vadd.f32 %v10387_v9, %v409_v38  ;;  %v390_v42 = vmul.f32 %v9712_v12, %v10310_v48 }
 0x170   :  { %v431_v29 = vadd.f32 %v10387_v9, %v410_v58  ;;  %v391_v32 = vmul.f32 %v9714_v60, %v10319_v62 }
 0x171   :  { %8670 = vmatmul.mubr.msk.f32.gmra.mrb[4].mxu1 %vm185_vm1, %v430_v39  ;;  %v411_v47 = vmul.f32 %v10380_v15, %v390_v42 }
 0x172   :  { %v9716_v53 = vpop.eup %9715  ;;  %8672 = vmatprep.mubr.msk.f32.mxu1 %vm185_vm1, %v431_v29  ;;  %v412_v13 = vmul.f32 %v10380_v15, %v391_v32 }
 0x173   :  { %v9718_v43 = vpop.eup %9717  ;;  %v432_v46 = vadd.f32 %v10387_v9, %v411_v47  ;;  %v392_v4 = vmul.f32 %v9716_v53, %v10322_v20 }
 0x174   :  { %v433_v48 = vadd.f32 %v10387_v9, %v412_v13  ;;  %v393_v33 = vmul.f32 %v9718_v43, %v10331_v41 }
 0x175   :  { %8673 = vmatmul.mubr.msk.f32.gmra.mrb[6].mxu1 %vm185_vm1, %v432_v46  ;;  %v413_v62 = vmul.f32 %v10380_v15, %v392_v4 }
 0x176   :  { %v9720_v49 = vpop.eup %9719  ;;  %8675 = vmatprep.mubr.msk.f32.mxu1 %vm185_vm1, %v433_v48  ;;  %v414_v50 = vmul.f32 %v10380_v15, %v393_v33 }
 0x177   :  { %v434_v51 = vadd.f32 %v10387_v9, %v413_v62  ;;  %v394_v16 = vmul.f32 %v9720_v49, %v10334_v24 }
 0x178   :  { %v435_v61 = vadd.f32 %v10387_v9, %v414_v50 }
 0x179   :  { %8676 = vmatmul.mubr.msk.f32.gmra.mrb[8].mxu1 %vm185_vm1, %v434_v51  ;;  %v415_v20 = vmul.f32 %v10380_v15, %v394_v16 }
 0x17a   :  { %8678 = vmatprep.mubr.msk.f32.mxu1 %vm185_vm1, %v435_v61 }
 0x17b   :  { %v436_v41 = vadd.f32 %v10387_v9, %v415_v20 }
 0x17d   :  { %8679 = vmatmul.mubr.msk.f32.gmra.mrb[10].mxu1 %vm185_vm1, %v436_v41 }
 0x17e   :  { %8699 = vmatprep.mubr.msk.f32.mxu1 %vm9989_vm2, %v9990_v55 }
 0x224   :  { %v10460_v24 = vpop.f32.mrb[0].mxu0 }
 0x225   :  { %v10462_v15 = vpop.f32.mrb[1].mxu0 }
 0x228   :  { %v10464_v9 = vpop.f32.mrb[2].mxu0 }
 0x229   :  { %v10466_v56 = vpop.f32.mrb[3].mxu0 }
 0x22c   :  { %v10468_v57 = vpop.f32.mrb[4].mxu0 }
 0x22d   :  { %v10470_v36 = vpop.f32.mrb[5].mxu0 }
 0x230   :  { %v10472_v37 = vpop.f32.mrb[6].mxu0 }
 0x231   :  { %v10474_v59 = vpop.f32.mrb[7].mxu0 }
 0x234   :  { %v8659_v2 = vpop.f32.mrb[8].mxu0 }
 0x235   :  { %v685_v17 = vpop.f32.mrb[9].mxu0 }
 0x236   :  { %v9302_v45 = vpack.c.bf16 %v8659_v2, %v685_v17  ;;  %v10482_v1 = vpack.i.bf16 %v8659_v2, %v685_v17 }
 0x238   :  { %v8662_v3 = vpop.f32.mrb[10].mxu0  ;;  %9304 = vmatpush3.bf16.xpose.msk.msra.mxu0 %vm10478_vm4, %v9302_v45 }
 0x239   :  { %v695_v6 = vpop.f32.mrb[11].mxu0  ;;  %9305 = vmatprep.subr.bf16.mxu0 %v9988_v54 }
 0x23a   :  { %v9306_v7 = vpack.c.bf16 %v8662_v3, %v695_v6  ;;  %v10487_v63 = vpack.i.bf16 %v8662_v3, %v695_v6 }
 0x23c   :  { %v8665_v10 = vpop.f32.mrb[0].mxu1 }
 0x23d   :  { %v705_v5 = vpop.f32.mrb[1].mxu1 }
 0x23e   :  { %v10489_v40 = vpack.i.bf16 %v8665_v10, %v705_v5  ;;  %v9310_v14 = vpack.c.bf16 %v8665_v10, %v705_v5 }
 0x23f   :  { %8686 = vmatmul.mubr.msk.f32.vlgmr.msra.gmra.mrb[12].mxu0 %vm764_vm3, %v10462_v15 }
 0x240   :  { %9308 = vmatpush3.bf16.xpose.msk.msra.mxu0 %vm10478_vm4, %v9306_v7  ;;  %9553 = vrot.lane.b32.xlu1 %v10489_v40, %s9991_s1  ;;  %v8668_v23 = vpop.f32.mrb[2].mxu1 }
 0x241   :  { %9312 = vmatpush3.bf16.xpose.msk.msra.mxu1 %vm10478_vm4, %v9310_v14  ;;  %v715_v18 = vpop.f32.mrb[3].mxu1  ;;  %8692 = vmatprep.mubr.msk.f32.mxu0 %vm9989_vm2, %v9990_v55 }
 0x242   :  { %v10501_v21 = vpack.i.bf16 %v8668_v23, %v715_v18  ;;  %v9314_v19 = vpack.c.bf16 %v8668_v23, %v715_v18  ;;  %9313 = vmatprep.subr.bf16.mxu0 %v9988_v54  ;;  %9317 = vmatprep.subr.bf16.mxu1 %v9988_v54 }
 0x244   :  { %9558 = vrot.lane.b32.xlu1 %v10501_v21, %s9991_s1  ;;  %v8671_v11 = vpop.f32.mrb[4].mxu1 }
 0x245   :  { %v725_v22 = vpop.f32.mrb[5].mxu1 }
 0x246   :  { %v10507_v52 = vpack.i.bf16 %v8671_v11, %v725_v22  ;;  %v9318_v44 = vpack.c.bf16 %v8671_v11, %v725_v22 }
 0x247   :  { %8693 = vmatmul.mubr.msk.f32.vlgmr.msra.gmra.mrb[14].mxu0 %vm764_vm3, %v10460_v24 }
 0x248   :  { %8700 = vmatmul.mubr.msk.f32.vlgmr.msra.gmra.mrb[12].mxu1 %vm764_vm3, %v10466_v56  ;;  %9316 = vmatpush3.bf16.xpose.msk.msra.mxu0 %vm10478_vm4, %v9314_v19  ;;  %v8674_v8 = vpop.f32.mrb[6].mxu1 }
 0x249   :  { %9563 = vrot.lane.b32.xlu0 %v10507_v52, %s9991_s1  ;;  %9320 = vmatpush3.bf16.xpose.msk.msra.mxu1 %vm10478_vm4, %v9318_v44  ;;  %v735_v26 = vpop.f32.mrb[7].mxu1 }
 0x24a   :  { %v10519_v28 = vpack.i.bf16 %v8674_v8, %v735_v26  ;;  %v9322_v30 = vpack.c.bf16 %v8674_v8, %v735_v26  ;;  %8706 = vmatprep.mubr.msk.f32.mxu0 %vm9989_vm2, %v9990_v55  ;;  %8713 = vmatprep.mubr.msk.f32.mxu1 %vm9989_vm2, %v9990_v55 }
 0x24b   :  { %9321 = vmatprep.subr.bf16.mxu0 %v9988_v54  ;;  %9325 = vmatprep.subr.bf16.mxu1 %v9988_v54 }
 0x24c   :  { %9568 = vrot.lane.b32.xlu1 %v10519_v28, %s9991_s1  ;;  %v8677_v31 = vpop.f32.mrb[8].mxu1 }
 0x24d   :  { %9573 = vrot.lane.b32.xlu0 %v10482_v1, %s9991_s1  ;;  %v745_v25 = vpop.f32.mrb[9].mxu1 }
 0x24e   :  { %v10531_v34 = vpack.i.bf16 %v8677_v31, %v745_v25  ;;  %v9326_v35 = vpack.c.bf16 %v8677_v31, %v745_v25 }
 0x24f   :  { %8707 = vmatmul.mubr.msk.f32.vlgmr.msra.gmra.mrb[16].mxu0 %vm764_vm3, %v10464_v9 }
 0x250   :  { %8714 = vmatmul.mubr.msk.f32.vlgmr.msra.gmra.mrb[14].mxu1 %vm764_vm3, %v10470_v36  ;;  %9578 = vrot.lane.b32.xlu1 %v10487_v63, %s9991_s1  ;;  %v8680_v27 = vpop.f32.mrb[10].mxu1 }
 0x251   :  { %9324 = vmatpush3.bf16.xpose.msk.msra.mxu0 %vm10478_vm4, %v9322_v30  ;;  %9328 = vmatpush3.bf16.xpose.msk.msra.mxu1 %vm10478_vm4, %v9326_v35  ;;  %v755_v38 = vpop.f32.mrb[11].mxu1 }
 0x252   :  { %v10543_v12 = vpack.i.bf16 %v8680_v27, %v755_v38  ;;  %v9330_v58 = vpack.c.bf16 %v8680_v27, %v755_v38  ;;  %8720 = vmatprep.mubr.msk.f32.mxu0 %vm9989_vm2, %v9990_v55  ;;  %8727 = vmatprep.mubr.msk.f32.mxu1 %vm9989_vm2, %v9990_v55 }
 0x253   :  { %9329 = vmatprep.subr.bf16.mxu0 %v9988_v54  ;;  %9333 = vmatprep.subr.bf16.mxu1 %v9988_v54 }
 0x254   :  { %9588 = vrot.lane.b32.xlu1 %v10543_v12, %s9991_s1 }
 0x258   :  { %8721 = vmatmul.mubr.msk.f32.vlgmr.msra.gmra.mrb[18].mxu0 %vm764_vm3, %v10468_v57  ;;  %8728 = vmatmul.mubr.msk.f32.vlgmr.msra.gmra.mrb[16].mxu1 %vm764_vm3, %v10474_v59 }
 0x259   :  { %9332 = vmatpush3.bf16.xpose.msk.msra.mxu0 %vm10478_vm4, %v9330_v58  ;;  %8734 = vmatprep.mubr.msk.f32.mxu0 %vm9989_vm2, %v9990_v55 }
 0x25a   :  { %9339 = vmatprep.subr.bf16.mxu0 %v9988_v54  ;;  %8741 = vmatprep.mubr.msk.f32.mxu1 %vm9989_vm2, %v9990_v55 }
 0x260   :  { %8735 = vmatmul.mubr.msk.f32.vlgmr.msra.gmra.mrb[20].mxu0 %vm764_vm3, %v10472_v37 }
 0x261   :  { %8755 = vmatprep.mubr.msk.f32.mxu0 %vm9989_vm2, %v9990_v55 }
 0x2b2   :  { %v9554_v60 = vpop.permute.xlu1 %9553 }
 0x2b3   :  { %v9556_v39 = vunpack.i.h.bf16 %v9554_v60  ;;  %v9555_v42 = vunpack.i.l.bf16 %v9554_v60 }
 0x2b5   :  { %v9340_v29 = vpack.c.bf16 %v9556_v39, %v9555_v42 }
 0x2b6   :  { %v10587_v11 = vpop.permute.xlu1 %9558 }
 0x2b7   :  { %9341 = vmatpush3.bf16.msra.mxu0 %v9340_v29 }
 0x2b8   :  { %9345 = vmatprep.subr.bf16.mxu0 %v9988_v54 }
 0x2bb   :  { %v10569_v32 = vpop.permute.xlu0 %9563 }
 0x2be   :  { %v10589_v22 = vpop.permute.xlu1 %9568 }
 0x2bf   :  { %v9574_v47 = vpop.permute.xlu0 %9573 }
 0x2c0   :  { %v9576_v53 = vunpack.i.h.bf16 %v9574_v47  ;;  %v9575_v13 = vunpack.i.l.bf16 %v9574_v47 }
 0x2c2   :  { %v9334_v43 = vpack.c.bf16 %v9576_v53, %v9575_v13  ;;  %v10591_v44 = vpop.permute.xlu1 %9578 }
 0x2c4   :  { %9335 = vmatpush3.bf16.msra.mxu1 %v9334_v43 }
 0x2c5   :  { %9336 = vmatprep.subr.bf16.mxu1 %v9988_v54 }
 0x2c6   :  { %v10593_v8 = vpop.permute.xlu1 %9588 }
 0x312   :  { %v840_v46 = vpop.f32.mrb[12].mxu0 }
 0x313   :  { %v8687_v4 = vpop.f32.mrb[13].mxu0  ;;  %v1397_v45 = vsel %vm764_vm3, %v840_v46, -inf }
 0x31a   :  { %v919_v48 = vpop.f32.mrb[14].mxu0 }
 0x31b   :  { %v998_v33 = vpop.f32.mrb[12].mxu1  ;;  %v8694_v62 = vpop.f32.mrb[15].mxu0  ;;  %v1400_v49 = vsel %vm764_vm3, %v919_v48, -inf }
 0x31c   :  { %v8701_v50 = vpop.f32.mrb[13].mxu1  ;;  %1401 = vmax.xlane.f32.xlu1 %v1400_v49  ;;  %v1403_v51 = vsel %vm764_vm3, %v998_v33, -inf }
 0x31d   :  { %1404 = vmax.xlane.f32.xlu0 %v1403_v51 }
 0x322   :  { %v1077_v16 = vpop.f32.mrb[16].mxu0 }
 0x323   :  { %v1156_v61 = vpop.f32.mrb[14].mxu1  ;;  %v8708_v20 = vpop.f32.mrb[17].mxu0  ;;  %v1406_v41 = vsel %vm764_vm3, %v1077_v16, -inf }
 0x324   :  { %v8715_v2 = vpop.f32.mrb[15].mxu1  ;;  %1407 = vmax.xlane.f32.xlu1 %v1406_v41  ;;  %v1409_v17 = vsel %vm764_vm3, %v1156_v61, -inf }
 0x325   :  { %1410 = vmax.xlane.f32.xlu0 %v1409_v17 }
 0x329   :  { %1398 = vmax.xlane.f32.xlu0 %v1397_v45 }
 0x32b   :  { %v1235_v3 = vpop.f32.mrb[18].mxu0  ;;  %v10577_v6 = vpop.f32.mrb[16].mxu1 }
 0x32c   :  { %v8722_v7 = vpop.f32.mrb[19].mxu0  ;;  %v8729_v10 = vpop.f32.mrb[17].mxu1  ;;  %v1412_v5 = vsel %vm764_vm3, %v1235_v3, -inf  ;;  %v1415_v14 = vsel %vm764_vm3, %v10577_v6, -inf }
 0x32d   :  { %1413 = vmax.xlane.f32.xlu1 %v1412_v5  ;;  %1416 = vmax.xlane.f32.xlu0 %v1415_v14 }
 0x333   :  { %v1393_v23 = vpop.f32.mrb[20].mxu0 }
 0x334   :  { %v8736_v18 = vpop.f32.mrb[21].mxu0  ;;  %v1418_v19 = vsel %vm764_vm3, %v1393_v23, -inf }
 0x335   :  { %1419 = vmax.xlane.f32.xlu1 %v1418_v19 }
 0x343   :  { %9583 = vrot.lane.b32.xlu0 %v10531_v34, %s9991_s1 }
 0x346   :  { %9598 = vrot.lane.b32.xlu1 %v10487_v63, %s9992_s18 }
 0x3a9   :  { %v1402_v26 = vpop.xlane.xlu1 %1401 }
 0x3aa   :  { %v1422_v30 = vsub.f32 %v919_v48, %v1402_v26  ;;  %v1405_v31 = vpop.xlane.xlu0 %1404 }
 0x3ab   :  { %v1423_v25 = vsub.f32 %v998_v33, %v1405_v31 }
 0x3ac   :  { %v1431_v35 = vmul.f32 1.442695, %v1422_v30 }
 0x3ad   :  { %v1433_v27 = vmul.f32 1.442695, %v1423_v25 }
 0x3ae   :  { %9721 = vpow2.f32 %v1431_v35 }
 0x3af   :  { %9723 = vpow2.f32 %v1433_v27 }
 0x3b1   :  { %v1408_v38 = vpop.xlane.xlu1 %1407 }
 0x3b2   :  { %v1424_v58 = vsub.f32 %v1077_v16, %v1408_v38  ;;  %v1411_v60 = vpop.xlane.xlu0 %1410 }
 0x3b3   :  { %v1425_v39 = vsub.f32 %v1156_v61, %v1411_v60  ;;  %v9581_v60 = vunpack.i.h.bf16 %v10591_v44 }
 0x3b4   :  { %v1435_v42 = vmul.f32 1.442695, %v1424_v58 }
 0x3b5   :  { %v1437_v29 = vmul.f32 1.442695, %v1425_v39  ;;  %v9580_v39 = vunpack.i.l.bf16 %v10591_v44 }
 0x3b6   :  { %9725 = vpow2.f32 %v1435_v42  ;;  %v1399_v47 = vpop.xlane.xlu0 %1398 }
 0x3b7   :  { %9727 = vpow2.f32 %v1437_v29  ;;  %v1421_v53 = vsub.f32 %v840_v46, %v1399_v47 }
 0x3b8   :  { %v10595_v13 = vpop.eup %9721 }
 0x3b9   :  { %v10597_v43 = vpop.eup %9723  ;;  %v1429_v4 = vmul.f32 1.442695, %v1421_v53  ;;  %v1448_v48 = vsel %vm764_vm3, %v10595_v13, 0.0 }
 0x3ba   :  { %v1414_v33 = vpop.xlane.xlu1 %1413  ;;  %1449 = vadd.xlane.f32.xlu1 %v1448_v48  ;;  %v1451_v62 = vsel %vm764_vm3, %v10597_v43, 0.0  ;;  %v1417_v45 = vpop.xlane.xlu0 %1416  ;;  %v9337_v48 = vpack.c.bf16 %v9581_v60, %v9580_v39 }
 0x3bb   :  { %9729 = vpow2.f32 %v1429_v4  ;;  %v1426_v49 = vsub.f32 %v1235_v3, %v1414_v33  ;;  %1452 = vadd.xlane.f32.xlu0 %v1451_v62  ;;  %v1427_v3 = vsub.f32 %v10577_v6, %v1417_v45  ;;  %v9565_v6 = vunpack.i.l.bf16 %v10569_v32 }
 0x3bc   :  { %v9560_v4 = vunpack.i.l.bf16 %v10587_v11 }
 0x3bd   :  { %v1439_v50 = vmul.f32 1.442695, %v1426_v49  ;;  %v1441_v10 = vmul.f32 1.442695, %v1427_v3  ;;  %v9571_v49 = vunpack.i.h.bf16 %v10589_v22 }
 0x3bf   :  { %9731 = vpow2.f32 %v1439_v50  ;;  %v9570_v50 = vunpack.i.l.bf16 %v10589_v22 }
 0x3c0   :  { %v10603_v51 = vpop.eup %9725  ;;  %9733 = vpow2.f32 %v1441_v10 }
 0x3c1   :  { %v10605_v46 = vpop.eup %9727  ;;  %v1454_v16 = vsel %vm764_vm3, %v10603_v51, 0.0 }
 0x3c2   :  { %1455 = vadd.xlane.f32.xlu1 %v1454_v16  ;;  %v1457_v61 = vsel %vm764_vm3, %v10605_v46, 0.0  ;;  %v1420_v7 = vpop.xlane.xlu1 %1419  ;;  %v9349_v16 = vpack.c.bf16 %v9571_v49, %v9570_v50 }
 0x3c3   :  { %1458 = vadd.xlane.f32.xlu0 %v1457_v61  ;;  %v1428_v5 = vsub.f32 %v1393_v23, %v1420_v7  ;;  %v9590_v61 = vunpack.i.l.bf16 %v10593_v8 }
 0x3c5   :  { %v10611_v20 = vpop.eup %9729  ;;  %v1443_v14 = vmul.f32 1.442695, %v1428_v5 }
 0x3c6   :  { %v1445_v41 = vsel %vm764_vm3, %v10611_v20, 0.0 }
 0x3c7   :  { %1446 = vadd.xlane.f32.xlu0 %v1445_v41  ;;  %9735 = vpow2.f32 %v1443_v14 }
 0x3c9   :  { %v10615_v2 = vpop.eup %9731 }
 0x3ca   :  { %v1460_v17 = vsel %vm764_vm3, %v10615_v2, 0.0  ;;  %v10624_v18 = vpop.eup %9733 }
 0x3cb   :  { %1461 = vadd.xlane.f32.xlu1 %v1460_v17  ;;  %v1463_v19 = vsel %vm764_vm3, %v10624_v18, 0.0 }
 0x3d1   :  { %v10628_v26 = vpop.eup %9735 }
 0x3d2   :  { %v1466_v30 = vsel %vm764_vm3, %v10628_v26, 0.0 }
 0x3dc   :  { %9608 = vrot.lane.b32.xlu1 %v10501_v21, %s9992_s18 }
 0x3dd   :  { %9593 = vrot.lane.b32.xlu0 %v10482_v1, %s9992_s18 }
 0x3fc   :  { %1464 = vadd.xlane.f32.xlu0 %v1463_v19 }
 0x400   :  { %1467 = vadd.xlane.f32.xlu1 %v1466_v30 }
 0x411   :  { %2199 = vrot.lane.b32.xlu1 %v10460_v24, %s9992_s18  ;;  %v9584_v24 = vpop.permute.xlu0 %9583 }
 0x412   :  { %9603 = vrot.lane.b32.xlu0 %v10489_v40, %s9992_s18  ;;  %v9586_v35 = vunpack.i.h.bf16 %v9584_v24 }
 0x415   :  { %9618 = vrot.lane.b32.xlu1 %v10519_v28, %s9992_s18 }
 0x416   :  { %2117 = vrot.lane.b32.xlu0 %v10462_v15, %s9992_s18 }
 0x419   :  { %2363 = vrot.lane.b32.xlu1 %v10464_v9, %s9992_s18  ;;  %v10658_v9 = vpop.permute.xlu1 %9598 }
 0x41a   :  { %9613 = vrot.lane.b32.xlu0 %v10507_v52, %s9992_s18  ;;  %v9601_v14 = vunpack.i.h.bf16 %v10658_v9  ;;  %v9600_v19 = vunpack.i.l.bf16 %v10658_v9 }
 0x41d   :  { %9628 = vrot.lane.b32.xlu1 %v10543_v12, %s9992_s18 }
 0x41e   :  { %2281 = vrot.lane.b32.xlu0 %v10466_v56, %s9992_s18 }
 0x421   :  { %2527 = vrot.lane.b32.xlu1 %v10468_v57, %s9992_s18  ;;  %v9566_v57 = vunpack.i.h.bf16 %v10569_v32  ;;  %v9585_v32 = vunpack.i.l.bf16 %v9584_v24 }
 0x422   :  { %9623 = vrot.lane.b32.xlu0 %v10531_v34, %s9992_s18 }
 0x423   :  { %v9352_v42 = vpack.c.bf16 %v9586_v35, %v9585_v32 }
 0x425   :  { %2691 = vrot.lane.b32.xlu1 %v10472_v37, %s9992_s18 }
 0x426   :  { %2445 = vrot.lane.b32.xlu0 %v10470_v36, %s9992_s18  ;;  %v9346_v36 = vpack.c.bf16 %v9566_v57, %v9565_v6 }
 0x42a   :  { %2609 = vrot.lane.b32.xlu0 %v10474_v59, %s9992_s18 }
 0x447   :  { %v1450_v31 = vpop.xlane.xlu1 %1449 }
 0x448   :  { %v1453_v15 = vpop.xlane.xlu0 %1452 }
 0x449   :  { %9737 = vrcp.f32 %v1453_v15 }
 0x44f   :  { %v1456_v59 = vpop.xlane.xlu1 %1455 }
 0x450   :  { %v1459_v56 = vpop.xlane.xlu0 %1458 }
 0x451   :  { %9739 = vrcp.f32 %v1459_v56 }
 0x453   :  { %v9738_v23 = vpop.eup %9737 }
 0x454   :  { %v1447_v37 = vpop.xlane.xlu0 %1446  ;;  %v1479_v25 = vmul.f32 %v9738_v23, %v10597_v43  ;;  %v9561_v43 = vunpack.i.h.bf16 %v10587_v11 }
 0x455   :  { %9741 = vrcp.f32 %v1447_v37 }
 0x456   :  { %8756 = vmatmul.mubr.msk.f32.vlgmr.msra.gmra.mrb[22].mxu0 %vm764_vm3, %v1479_v25  ;;  %9743 = vrcp.f32 %v1450_v31  ;;  %v9343_v62 = vpack.c.bf16 %v9561_v43, %v9560_v4 }
 0x457   :  { %9347 = vmatpush3.bf16.msra.mxu0 %v9346_v36  ;;  %8769 = vmatprep.mubr.msk.f32.mxu0 %vm9989_vm2, %v9990_v55  ;;  %9745 = vrcp.f32 %v1456_v59 }
 0x458   :  { %9351 = vmatprep.subr.bf16.mxu0 %v9988_v54  ;;  %v1462_v38 = vpop.xlane.xlu1 %1461 }
 0x459   :  { %9747 = vrcp.f32 %v1462_v38 }
 0x45b   :  { %v9740_v27 = vpop.eup %9739 }
 0x45c   :  { %v1481_v58 = vmul.f32 %v9740_v27, %v10605_v46 }
 0x45e   :  { %8770 = vmatmul.mubr.msk.f32.vlgmr.msra.gmra.mrb[24].mxu0 %vm764_vm3, %v1481_v58 }
 0x45f   :  { %v9742_v29 = vpop.eup %9741  ;;  %9353 = vmatpush3.bf16.msra.mxu0 %v9352_v42  ;;  %8783 = vmatprep.mubr.msk.f32.mxu0 %vm9989_vm2, %v9990_v55 }
 0x460   :  { %v1477_v47 = vmul.f32 %v9742_v29, %v10611_v20  ;;  %9357 = vmatprep.subr.bf16.mxu0 %v9988_v54  ;;  %v9744_v53 = vpop.eup %9743 }
 0x461   :  { %v1478_v44 = vmul.f32 %v9744_v53, %v10595_v13  ;;  %v9746_v33 = vpop.eup %9745  ;;  %v9591_v13 = vunpack.i.h.bf16 %v10593_v8  ;;  %v9594_v8 = vpop.permute.xlu0 %9593 }
 0x462   :  { %8742 = vmatmul.mubr.msk.f32.vlgmr.msra.gmra.mrb[18].mxu1 %vm764_vm3, %v1477_v47  ;;  %v1480_v11 = vmul.f32 %v9746_v33, %v10603_v51  ;;  %v9609_v51 = vpop.permute.xlu1 %9608  ;;  %v9596_v3 = vunpack.i.h.bf16 %v9594_v8  ;;  %v9595_v7 = vunpack.i.l.bf16 %v9594_v8 }
 0x463   :  { %9338 = vmatpush3.bf16.msra.mxu1 %v9337_v48  ;;  %8748 = vmatprep.mubr.msk.f32.mxu1 %vm9989_vm2, %v9990_v55  ;;  %v9748_v46 = vpop.eup %9747  ;;  %v9355_v20 = vpack.c.bf16 %v9591_v13, %v9590_v61  ;;  %v9611_v9 = vunpack.i.h.bf16 %v9609_v51  ;;  %v9610_v31 = vunpack.i.l.bf16 %v9609_v51 }
 0x464   :  { %9342 = vmatprep.subr.bf16.mxu1 %v9988_v54  ;;  %v1482_v22 = vmul.f32 %v9748_v46, %v10615_v2  ;;  %v9358_v30 = vpack.c.bf16 %v9596_v3, %v9595_v7 }
 0x465   :  { %v9370_v36 = vpack.c.bf16 %v9611_v9, %v9610_v31 }
 0x466   :  { %8749 = vmatmul.mubr.msk.f32.vlgmr.msra.gmra.mrb[20].mxu1 %vm764_vm3, %v1478_v44 }
 0x467   :  { %9344 = vmatpush3.bf16.msra.mxu1 %v9343_v62  ;;  %8762 = vmatprep.mubr.msk.f32.mxu1 %vm9989_vm2, %v9990_v55 }
 0x468   :  { %9348 = vmatprep.subr.bf16.mxu1 %v9988_v54 }
 0x46a   :  { %8763 = vmatmul.mubr.msk.f32.vlgmr.msra.gmra.mrb[22].mxu1 %vm764_vm3, %v1480_v11 }
 0x46b   :  { %9350 = vmatpush3.bf16.msra.mxu1 %v9349_v16  ;;  %8776 = vmatprep.mubr.msk.f32.mxu1 %vm9989_vm2, %v9990_v55 }
 0x46c   :  { %9354 = vmatprep.subr.bf16.mxu1 %v9988_v54 }
 0x46e   :  { %8777 = vmatmul.mubr.msk.f32.vlgmr.msra.gmra.mrb[24].mxu1 %vm764_vm3, %v1482_v22 }
 0x46f   :  { %9356 = vmatpush3.bf16.msra.mxu1 %v9355_v20  ;;  %8790 = vmatprep.mubr.msk.f32.mxu1 %vm9989_vm2, %v9990_v55 }
 0x470   :  { %9361 = vmatprep.subr.bf16.mxu1 %v9988_v54 }
 0x489   :  { %v1465_v41 = vpop.xlane.xlu0 %1464 }
 0x48a   :  { %9749 = vrcp.f32 %v1465_v41 }
 0x48d   :  { %v1468_v17 = vpop.xlane.xlu1 %1467  ;;  %v9604_v45 = vpop.permute.xlu0 %9603 }
 0x48e   :  { %9751 = vrcp.f32 %v1468_v17  ;;  %v9606_v57 = vunpack.i.h.bf16 %v9604_v45  ;;  %v9605_v6 = vunpack.i.l.bf16 %v9604_v45 }
 0x490   :  { %v9366_v37 = vpack.c.bf16 %v9606_v57, %v9605_v6 }
 0x491   :  { %v2118_v2 = vpop.permute.xlu0 %2117  ;;  %v2200_v15 = vpop.permute.xlu1 %2199 }
 0x494   :  { %v9750_v10 = vpop.eup %9749 }
 0x495   :  { %v1483_v5 = vmul.f32 %v9750_v10, %v10624_v18  ;;  %v9362_v18 = vpack.c.bf16 %v9601_v14, %v9600_v19  ;;  %v9614_v23 = vpop.permute.xlu0 %9613 }
 0x496   :  { %v9616_v59 = vunpack.i.h.bf16 %v9614_v23  ;;  %v9615_v35 = vunpack.i.l.bf16 %v9614_v23 }
 0x497   :  { %8784 = vmatmul.mubr.msk.f32.vlgmr.msra.gmra.mrb[26].mxu0 %vm764_vm3, %v1483_v5 }
 0x498   :  { %v9752_v24 = vpop.eup %9751  ;;  %9360 = vmatpush3.bf16.xpose.msk.msra.mxu0 %vm10478_vm4, %v9358_v30  ;;  %8797 = vmatprep.mubr.msk.f32.mxu0 %vm9989_vm2, %v9990_v55  ;;  %v9374_v58 = vpack.c.bf16 %v9616_v59, %v9615_v35 }
 0x499   :  { %v1484_v56 = vmul.f32 %v9752_v24, %v10628_v26  ;;  %9365 = vmatprep.subr.bf16.mxu0 %v9988_v54  ;;  %v9619_v26 = vpop.permute.xlu1 %9618  ;;  %v2282_v25 = vpop.permute.xlu0 %2281 }
 0x49a   :  { %v9621_v27 = vunpack.i.h.bf16 %v9619_v26  ;;  %v9620_v38 = vunpack.i.l.bf16 %v9619_v26 }
 0x49b   :  { %8791 = vmatmul.mubr.msk.f32.vlgmr.msra.gmra.mrb[26].mxu1 %vm764_vm3, %v1484_v56 }
 0x49c   :  { %9364 = vmatpush3.bf16.xpose.msk.msra.mxu1 %vm10478_vm4, %v9362_v18  ;;  %8804 = vmatprep.mubr.msk.f32.mxu1 %vm9989_vm2, %v9990_v55  ;;  %v9378_v39 = vpack.c.bf16 %v9621_v27, %v9620_v38 }
 0x49d   :  { %9369 = vmatprep.subr.bf16.mxu1 %v9988_v54  ;;  %v2364_v32 = vpop.permute.xlu1 %2363  ;;  %v9624_v60 = vpop.permute.xlu0 %9623 }
 0x49e   :  { %v9626_v42 = vunpack.i.h.bf16 %v9624_v60  ;;  %v9625_v29 = vunpack.i.l.bf16 %v9624_v60 }
 0x49f   :  { %8798 = vmatmul.mubr.msk.f32.vlgmr.msra.gmra.mrb[28].mxu0 %vm764_vm3, %v2118_v2 }
 0x4a0   :  { %9368 = vmatpush3.bf16.xpose.msk.msra.mxu0 %vm10478_vm4, %v9366_v37  ;;  %8811 = vmatprep.mubr.msk.f32.mxu0 %vm9989_vm2, %v9990_v55  ;;  %v9382_v4 = vpack.c.bf16 %v9626_v42, %v9625_v29 }
 0x4a1   :  { %9373 = vmatprep.subr.bf16.mxu0 %v9988_v54  ;;  %v9629_v47 = vpop.permute.xlu1 %9628  ;;  %v2446_v48 = vpop.permute.xlu0 %2445 }
 0x4a2   :  { %v9631_v53 = vunpack.i.h.bf16 %v9629_v47  ;;  %v9630_v43 = vunpack.i.l.bf16 %v9629_v47 }
 0x4a3   :  { %8805 = vmatmul.mubr.msk.f32.vlgmr.msra.gmra.mrb[28].mxu1 %vm764_vm3, %v2200_v15 }
 0x4a4   :  { %9372 = vmatpush3.bf16.xpose.msk.msra.mxu1 %vm10478_vm4, %v9370_v36  ;;  %8818 = vmatprep.mubr.msk.f32.mxu1 %vm9989_vm2, %v9990_v55  ;;  %v9386_v44 = vpack.c.bf16 %v9631_v53, %v9630_v43 }
 0x4a5   :  { %9377 = vmatprep.subr.bf16.mxu1 %v9988_v54  ;;  %v2528_v33 = vpop.permute.xlu1 %2527  ;;  %v2610_v62 = vpop.permute.xlu0 %2609 }
 0x4a7   :  { %8812 = vmatmul.mubr.msk.f32.vlgmr.msra.gmra.mrb[30].mxu0 %vm764_vm3, %v2282_v25 }
 0x4a8   :  { %9376 = vmatpush3.bf16.xpose.msk.msra.mxu0 %vm10478_vm4, %v9374_v58  ;;  %8825 = vmatprep.mubr.msk.f32.mxu0 %vm9989_vm2, %v9990_v55 }
 0x4a9   :  { %9381 = vmatprep.subr.bf16.mxu0 %v9988_v54  ;;  %v2692_v49 = vpop.permute.xlu1 %2691 }
 0x4ab   :  { %8819 = vmatmul.mubr.msk.f32.vlgmr.msra.gmra.mrb[30].mxu1 %vm764_vm3, %v2364_v32 }
 0x4ac   :  { %9380 = vmatpush3.bf16.xpose.msk.msra.mxu1 %vm10478_vm4, %v9378_v39  ;;  %8832 = vmatprep.mubr.msk.f32.mxu1 %vm9989_vm2, %v9990_v55 }
 0x4ad   :  { %9385 = vmatprep.subr.bf16.mxu1 %v9988_v54 }
 0x4af   :  { %8826 = vmatmul.mubr.msk.f32.vlgmr.msra.gmra.mrb[32].mxu0 %vm764_vm3, %v2446_v48 }
 0x4b0   :  { %9384 = vmatpush3.bf16.xpose.msk.msra.mxu0 %vm10478_vm4, %v9382_v4  ;;  %8839 = vmatprep.mubr.msk.f32.mxu0 %vm9989_vm2, %v9990_v55 }
 0x4b1   :  { %9389 = vmatprep.subr.bf16.mxu0 %v9988_v54 }
 0x4b3   :  { %8833 = vmatmul.mubr.msk.f32.vlgmr.msra.gmra.mrb[32].mxu1 %vm764_vm3, %v2528_v33 }
 0x4b4   :  { %9388 = vmatpush3.bf16.xpose.msk.msra.mxu1 %vm10478_vm4, %v9386_v44  ;;  %8846 = vmatprep.mubr.msk.f32.mxu1 %vm9989_vm2, %v9990_v55 }
 0x4b5   :  { %9392 = vmatprep.subr.bf16.mxu1 %v9988_v54 }
 0x4b7   :  { %8840 = vmatmul.mubr.msk.f32.vlgmr.msra.gmra.mrb[34].mxu0 %vm764_vm3, %v2610_v62 }
 0x4b8   :  { %8853 = vmatprep.mubr.msk.f32.mxu0 %vm9989_vm2, %v9990_v55 }
 0x4bb   :  { %8847 = vmatmul.mubr.msk.f32.vlgmr.msra.gmra.mrb[34].mxu1 %vm764_vm3, %v2692_v49 }
 0x4bc   :  { %8860 = vmatprep.mubr.msk.f32.mxu1 %vm9989_vm2, %v9990_v55 }
 0x529   :  { %v10758_v50 = vpop.f32.mrb[22].mxu0 }
 0x52a   :  { %v8757_v0 = vpop.f32.mrb[23].mxu0 }
 0x531   :  { %v10760_v11 = vpop.f32.mrb[24].mxu0 }
 0x532   :  { %v8771_v46 = vpop.f32.mrb[25].mxu0 }
 0x535   :  { %v10762_v16 = vpop.f32.mrb[18].mxu1 }
 0x536   :  { %v8743_v13 = vpop.f32.mrb[19].mxu1 }
 0x539   :  { %v10764_v61 = vpop.f32.mrb[20].mxu1 }
 0x53a   :  { %v8750_v22 = vpop.f32.mrb[21].mxu1 }
 0x53d   :  { %v10766_v20 = vpop.f32.mrb[22].mxu1 }
 0x53e   :  { %v8764_v8 = vpop.f32.mrb[23].mxu1 }
 0x541   :  { %v10768_v51 = vpop.f32.mrb[24].mxu1 }
 0x542   :  { %v8778_v41 = vpop.f32.mrb[25].mxu1 }
 0x56a   :  { %v10770_v17 = vpop.f32.mrb[26].mxu0 }
 0x56b   :  { %v8785_v45 = vpop.f32.mrb[27].mxu0 }
 0x56e   :  { %v10772_v3 = vpop.f32.mrb[26].mxu1 }
 0x56f   :  { %v8792_v7 = vpop.f32.mrb[27].mxu1 }
 0x572   :  { %v2195_v10 = vpop.f32.mrb[28].mxu0 }
 0x573   :  { %v8799_v2 = vpop.f32.mrb[29].mxu0  ;;  %v2773_v5 = vsel %vm764_vm3, %v2195_v10, -inf }
 0x574   :  { %2774 = vmax.xlane.f32.xlu0 %v2773_v5 }
 0x576   :  { %v2277_v14 = vpop.f32.mrb[28].mxu1 }
 0x577   :  { %v8806_v19 = vpop.f32.mrb[29].mxu1  ;;  %v2776_v30 = vsel %vm764_vm3, %v2277_v14, -inf }
 0x578   :  { %2777 = vmax.xlane.f32.xlu1 %v2776_v30 }
 0x57a   :  { %v2359_v24 = vpop.f32.mrb[30].mxu0 }
 0x57b   :  { %v8813_v15 = vpop.f32.mrb[31].mxu0  ;;  %v2779_v56 = vsel %vm764_vm3, %v2359_v24, -inf }
 0x57c   :  { %2780 = vmax.xlane.f32.xlu0 %v2779_v56 }
 0x57e   :  { %v2441_v18 = vpop.f32.mrb[30].mxu1 }
 0x57f   :  { %v8820_v57 = vpop.f32.mrb[31].mxu1  ;;  %v2782_v6 = vsel %vm764_vm3, %v2441_v18, -inf }
 0x580   :  { %2783 = vmax.xlane.f32.xlu0 %v2782_v6 }
 0x582   :  { %v2523_v23 = vpop.f32.mrb[32].mxu0 }
 0x583   :  { %v8827_v9 = vpop.f32.mrb[33].mxu0  ;;  %v2785_v31 = vsel %vm764_vm3, %v2523_v23, -inf }
 0x584   :  { %2786 = vmax.xlane.f32.xlu0 %v2785_v31 }
 0x586   :  { %v2605_v37 = vpop.f32.mrb[32].mxu1 }
 0x587   :  { %v8834_v26 = vpop.f32.mrb[33].mxu1  ;;  %v2788_v25 = vsel %vm764_vm3, %v2605_v37, -inf }
 0x588   :  { %2789 = vmax.xlane.f32.xlu1 %v2788_v25 }
 0x58a   :  { %v2687_v36 = vpop.f32.mrb[34].mxu0 }
 0x58b   :  { %v8841_v59 = vpop.f32.mrb[35].mxu0  ;;  %v2791_v35 = vsel %vm764_vm3, %v2687_v36, -inf }
 0x58c   :  { %2792 = vmax.xlane.f32.xlu0 %v2791_v35 }
 0x58e   :  { %v2769_v32 = vpop.f32.mrb[34].mxu1 }
 0x58f   :  { %v8848_v27 = vpop.f32.mrb[35].mxu1  ;;  %v2794_v38 = vsel %vm764_vm3, %v2769_v32, -inf }
 0x590   :  { %2795 = vmax.xlane.f32.xlu1 %v2794_v38 }
 0x5a1   :  { %9638 = vrot.lane.b32.xlu1 %v10487_v63, %s9993_s19 }
 0x5a2   :  { %9633 = vrot.lane.b32.xlu0 %v10482_v1, %s9993_s19 }
 0x5a5   :  { %9643 = vrot.lane.b32.xlu1 %v10489_v40, %s9993_s19 }
 0x5a6   :  { %9653 = vrot.lane.b32.xlu0 %v10507_v52, %s9993_s19 }
 0x5a9   :  { %9648 = vrot.lane.b32.xlu1 %v10501_v21, %s9993_s19 }
 0x5ad   :  { %9658 = vrot.lane.b32.xlu1 %v10519_v28, %s9993_s19 }
 0x601   :  { %v2775_v58 = vpop.xlane.xlu0 %2774 }
 0x602   :  { %v2797_v60 = vsub.f32 %v2195_v10, %v2775_v58 }
 0x604   :  { %v2805_v39 = vmul.f32 1.442695, %v2797_v60 }
 0x605   :  { %v2778_v42 = vpop.xlane.xlu1 %2777 }
 0x606   :  { %9753 = vpow2.f32 %v2805_v39  ;;  %v2798_v63 = vsub.f32 %v2277_v14, %v2778_v42 }
 0x608   :  { %v2807_v29 = vmul.f32 1.442695, %v2798_v63 }
 0x609   :  { %v2781_v1 = vpop.xlane.xlu0 %2780 }
 0x60a   :  { %9755 = vpow2.f32 %v2807_v29  ;;  %v2799_v47 = vsub.f32 %v2359_v24, %v2781_v1 }
 0x60c   :  { %v2809_v40 = vmul.f32 1.442695, %v2799_v47 }
 0x60d   :  { %v2784_v53 = vpop.xlane.xlu0 %2783 }
 0x60e   :  { %9757 = vpow2.f32 %v2809_v40  ;;  %v2800_v52 = vsub.f32 %v2441_v18, %v2784_v53 }
 0x610   :  { %v10794_v43 = vpop.eup %9753  ;;  %v2811_v21 = vmul.f32 1.442695, %v2800_v52 }
 0x611   :  { %v2787_v4 = vpop.xlane.xlu0 %2786  ;;  %v2821_v28 = vsel %vm764_vm3, %v10794_v43, 0.0 }
 0x612   :  { %9759 = vpow2.f32 %v2811_v21  ;;  %v2801_v48 = vsub.f32 %v2523_v23, %v2787_v4  ;;  %2822 = vadd.xlane.f32.xlu0 %v2821_v28 }
 0x614   :  { %v10798_v44 = vpop.eup %9755  ;;  %v2813_v33 = vmul.f32 1.442695, %v2801_v48 }
 0x615   :  { %v2790_v62 = vpop.xlane.xlu1 %2789  ;;  %v2824_v49 = vsel %vm764_vm3, %v10798_v44, 0.0 }
 0x616   :  { %9761 = vpow2.f32 %v2813_v33  ;;  %v2802_v0 = vsub.f32 %v2605_v37, %v2790_v62  ;;  %2825 = vadd.xlane.f32.xlu1 %v2824_v49 }
 0x618   :  { %v10802_v46 = vpop.eup %9757  ;;  %v2815_v13 = vmul.f32 1.442695, %v2802_v0 }
 0x619   :  { %v2793_v22 = vpop.xlane.xlu0 %2792  ;;  %v2827_v8 = vsel %vm764_vm3, %v10802_v46, 0.0 }
 0x61a   :  { %9763 = vpow2.f32 %v2815_v13  ;;  %v2803_v41 = vsub.f32 %v2687_v36, %v2793_v22  ;;  %2828 = vadd.xlane.f32.xlu0 %v2827_v8 }
 0x61c   :  { %v10806_v45 = vpop.eup %9759  ;;  %v2817_v7 = vmul.f32 1.442695, %v2803_v41 }
 0x61d   :  { %v2796_v10 = vpop.xlane.xlu1 %2795  ;;  %v9634_v2 = vpop.permute.xlu0 %9633  ;;  %v2830_v5 = vsel %vm764_vm3, %v10806_v45, 0.0 }
 0x61e   :  { %9765 = vpow2.f32 %v2817_v7  ;;  %v2804_v14 = vsub.f32 %v2769_v32, %v2796_v10  ;;  %v9636_v19 = vunpack.i.h.bf16 %v9634_v2  ;;  %v9635_v30 = vunpack.i.l.bf16 %v9634_v2  ;;  %2831 = vadd.xlane.f32.xlu1 %v2830_v5 }
 0x620   :  { %v10810_v24 = vpop.eup %9761  ;;  %v2819_v15 = vmul.f32 1.442695, %v2804_v14  ;;  %v9390_v56 = vpack.c.bf16 %v9636_v19, %v9635_v30 }
 0x621   :  { %v9639_v18 = vpop.permute.xlu1 %9638  ;;  %v2833_v57 = vsel %vm764_vm3, %v10810_v24, 0.0  ;;  %v9654_v27 = vpop.permute.xlu0 %9653 }
 0x622   :  { %9767 = vpow2.f32 %v2819_v15  ;;  %v9641_v6 = vunpack.i.h.bf16 %v9639_v18  ;;  %v9640_v23 = vunpack.i.l.bf16 %v9639_v18  ;;  %2834 = vadd.xlane.f32.xlu0 %v2833_v57  ;;  %9391 = vmatpush3.bf16.msra.mxu0 %v9390_v56  ;;  %v9656_v4 = vunpack.i.h.bf16 %v9654_v27 }
 0x623   :  { %9395 = vmatprep.subr.bf16.mxu0 %v9988_v54  ;;  %v9655_v28 = vunpack.i.l.bf16 %v9654_v27 }
 0x624   :  { %v10815_v9 = vpop.eup %9763  ;;  %v9393_v31 = vpack.c.bf16 %v9641_v6, %v9640_v23 }
 0x625   :  { %v2836_v37 = vsel %vm764_vm3, %v10815_v9, 0.0  ;;  %v9644_v35 = vpop.permute.xlu1 %9643  ;;  %v9402_v49 = vpack.c.bf16 %v9656_v4, %v9655_v28 }
 0x626   :  { %9394 = vmatpush3.bf16.msra.mxu1 %v9393_v31  ;;  %2837 = vadd.xlane.f32.xlu1 %v2836_v37  ;;  %v9646_v42 = vunpack.i.h.bf16 %v9644_v35  ;;  %v9645_v63 = vunpack.i.l.bf16 %v9644_v35  ;;  %v3534_v31 = vld [vmem:[#allocation2 + $0x50] sm:$0xff] }
 0x627   :  { %9398 = vmatprep.subr.bf16.mxu1 %v9988_v54 }
 0x628   :  { %v10820_v26 = vpop.eup %9765 }
 0x629   :  { %v2839_v25 = vsel %vm764_vm3, %v10820_v26, 0.0  ;;  %v9649_v32 = vpop.permute.xlu1 %9648 }
 0x62a   :  { %2840 = vadd.xlane.f32.xlu0 %v2839_v25  ;;  %v9651_v40 = vunpack.i.h.bf16 %v9649_v32  ;;  %v9650_v53 = vunpack.i.l.bf16 %v9649_v32  ;;  %v3535_v25 = vld [vmem:[#allocation2 + $0x58] sm:$0xff] }
 0x62c   :  { %v10824_v36 = vpop.eup %9767  ;;  %v9399_v48 = vpack.c.bf16 %v9651_v40, %v9650_v53 }
 0x62d   :  { %v2842_v59 = vsel %vm764_vm3, %v10824_v36, 0.0  ;;  %v9659_v38 = vpop.permute.xlu1 %9658 }
 0x62e   :  { %2843 = vadd.xlane.f32.xlu1 %v2842_v59  ;;  %v9660_v0 = vunpack.i.l.bf16 %v9659_v38  ;;  %v3536_v59 = vld [vmem:[#allocation2 + $0x60] sm:$0xff] }
 0x62f   :  { %v9417_v35 = vpack.c.bf16 %v3536_v59, %v3535_v25 }
 0x63f   :  { %9668 = vrot.lane.b32.xlu1 %v10543_v12, %s9993_s19  ;;  %v9396_v12 = vpack.c.bf16 %v9646_v42, %v9645_v63 }
 0x640   :  { %9663 = vrot.lane.b32.xlu0 %v10531_v34, %s9993_s19 }
 0x69f   :  { %v2823_v58 = vpop.xlane.xlu0 %2822 }
 0x6a0   :  { %9769 = vrcp.f32 %v2823_v58 }
 0x6a3   :  { %v2826_v60 = vpop.xlane.xlu1 %2825 }
 0x6a4   :  { %9771 = vrcp.f32 %v2826_v60 }
 0x6a7   :  { %v2829_v39 = vpop.xlane.xlu0 %2828 }
 0x6a8   :  { %9773 = vrcp.f32 %v2829_v39 }
 0x6aa   :  { %v9770_v29 = vpop.eup %9769 }
 0x6ab   :  { %v2832_v1 = vpop.xlane.xlu1 %2831  ;;  %v2853_v47 = vmul.f32 %v9770_v29, %v10794_v43 }
 0x6ac   :  { %9775 = vrcp.f32 %v2832_v1 }
 0x6ad   :  { %8854 = vmatmul.mubr.msk.f32.vlgmr.msra.gmra.mrb[36].mxu0 %vm764_vm3, %v2853_v47 }
 0x6ae   :  { %v9772_v34 = vpop.eup %9771  ;;  %9397 = vmatpush3.bf16.msra.mxu0 %v9396_v12  ;;  %8867 = vmatprep.mubr.msk.f32.mxu0 %vm9989_vm2, %v9990_v55 }
 0x6af   :  { %v2835_v52 = vpop.xlane.xlu0 %2834  ;;  %v2854_v21 = vmul.f32 %v9772_v34, %v10798_v44  ;;  %9401 = vmatprep.subr.bf16.mxu0 %v9988_v54  ;;  %v9661_v44 = vunpack.i.h.bf16 %v9659_v38 }
 0x6b0   :  { %9777 = vrcp.f32 %v2835_v52 }
 0x6b1   :  { %8861 = vmatmul.mubr.msk.f32.vlgmr.msra.gmra.mrb[36].mxu1 %vm764_vm3, %v2854_v21  ;;  %v9405_v41 = vpack.c.bf16 %v9661_v44, %v9660_v0 }
 0x6b2   :  { %v9774_v43 = vpop.eup %9773  ;;  %9400 = vmatpush3.bf16.msra.mxu1 %v9399_v48  ;;  %8874 = vmatprep.mubr.msk.f32.mxu1 %vm9989_vm2, %v9990_v55 }
 0x6b3   :  { %v2838_v33 = vpop.xlane.xlu1 %2837  ;;  %v2855_v62 = vmul.f32 %v9774_v43, %v10802_v46  ;;  %9404 = vmatprep.subr.bf16.mxu1 %v9988_v54 }
 0x6b4   :  { %9779 = vrcp.f32 %v2838_v33 }
 0x6b5   :  { %8868 = vmatmul.mubr.msk.f32.vlgmr.msra.gmra.mrb[38].mxu0 %vm764_vm3, %v2855_v62 }
 0x6b6   :  { %v9776_v13 = vpop.eup %9775  ;;  %9403 = vmatpush3.bf16.msra.mxu0 %v9402_v49  ;;  %8881 = vmatprep.mubr.msk.f32.mxu0 %vm9989_vm2, %v9990_v55 }
 0x6b7   :  { %v2841_v22 = vpop.xlane.xlu0 %2840  ;;  %v2856_v8 = vmul.f32 %v9776_v13, %v10806_v45  ;;  %9407 = vmatprep.subr.bf16.mxu0 %v9988_v54 }
 0x6b8   :  { %9781 = vrcp.f32 %v2841_v22 }
 0x6b9   :  { %8875 = vmatmul.mubr.msk.f32.vlgmr.msra.gmra.mrb[38].mxu1 %vm764_vm3, %v2856_v8 }
 0x6ba   :  { %v9778_v46 = vpop.eup %9777  ;;  %9406 = vmatpush3.bf16.msra.mxu1 %v9405_v41  ;;  %8888 = vmatprep.mubr.msk.f32.mxu1 %vm9989_vm2, %v9990_v55 }
 0x6bb   :  { %v2844_v7 = vpop.xlane.xlu1 %2843  ;;  %v9664_v10 = vpop.permute.xlu0 %9663  ;;  %v2857_v2 = vmul.f32 %v9778_v46, %v10810_v24  ;;  %9410 = vmatprep.subr.bf16.mxu1 %v9988_v54 }
 0x6bc   :  { %9783 = vrcp.f32 %v2844_v7  ;;  %v9666_v5 = vunpack.i.h.bf16 %v9664_v10  ;;  %v9665_v45 = vunpack.i.l.bf16 %v9664_v10 }
 0x6bd   :  { %8882 = vmatmul.mubr.msk.f32.vlgmr.msra.gmra.mrb[40].mxu0 %vm764_vm3, %v2857_v2 }
 0x6be   :  { %v9780_v14 = vpop.eup %9779  ;;  %v9408_v19 = vpack.c.bf16 %v9666_v5, %v9665_v45  ;;  %8895 = vmatprep.mubr.msk.f32.mxu0 %vm9989_vm2, %v9990_v55 }
 0x6bf   :  { %v9669_v30 = vpop.permute.xlu1 %9668  ;;  %v2858_v15 = vmul.f32 %v9780_v14, %v10815_v9  ;;  %v3533_v9 = vld [vmem:[#allocation2 + $0x48] sm:$0xff] }
 0x6c0   :  { %v9671_v56 = vunpack.i.h.bf16 %v9669_v30  ;;  %v9670_v18 = vunpack.i.l.bf16 %v9669_v30  ;;  %9409 = vmatpush3.bf16.msra.mxu0 %v9408_v19  ;;  %v9413_v37 = vpack.c.bf16 %v3534_v31, %v3533_v9  ;;  %v9931_v19 = vld [vmem:[%s11877_s0 + $0x18] sm:$0xff]  ;;  %v9933_v9 = vld [vmem:[%s11877_s0 + $0x28] sm:$0xff] }
 0x6c1   :  { %8889 = vmatmul.mubr.msk.f32.vlgmr.msra.gmra.mrb[40].mxu1 %vm764_vm3, %v2858_v15  ;;  %v9932_v15 = vld [vmem:[%s11877_s0 + $0x10] sm:$0xff] }
 0x6c2   :  { %v9782_v24 = vpop.eup %9781  ;;  %v9411_v54 = vpack.c.bf16 %v9671_v56, %v9670_v18  ;;  %8902 = vmatprep.mubr.msk.f32.mxu1 %vm9989_vm2, %v9990_v55  ;;  %9414 = vmatprep.subr.bf16.mxu0 %v9413_v37 }
 0x6c3   :  { %v2859_v57 = vmul.f32 %v9782_v24, %v10820_v26 }
 0x6c4   :  { %9412 = vmatpush3.bf16.msra.mxu1 %v9411_v54 }
 0x6c5   :  { %8896 = vmatmul.mubr.msk.f32.vlgmr.msra.gmra.mrb[42].mxu0 %vm764_vm3, %v2859_v57 }
 0x6c6   :  { %v9784_v6 = vpop.eup %9783  ;;  %9416 = vmatpush3.bf16.msra.mxu0 %v9413_v37  ;;  %v9934_v37 = vld [vmem:[%s11877_s0 + $0x20] sm:$0xff] }
 0x6c7   :  { %v2860_v23 = vmul.f32 %v9784_v6, %v10824_v36  ;;  %9418 = vmatprep.subr.bf16.mxu0 %v9417_v35 }
 0x6c9   :  { %8903 = vmatmul.mubr.msk.f32.vlgmr.msra.gmra.mrb[42].mxu1 %vm764_vm3, %v2860_v23 }
 0x6ca   :  { %9420 = vmatpush3.bf16.msra.mxu0 %v9417_v35 }
 0x780   :  { %v2936_v32 = vpop.f32.mrb[36].mxu0 }
 0x781   :  { %3501 = vrot.lane.b32.xlu0 %v2936_v32, %s9994_s20  ;;  %v8855_v26 = vpop.f32.mrb[37].mxu0 }
 0x784   :  { %v3015_v27 = vpop.f32.mrb[36].mxu1 }
 0x785   :  { %v8862_v38 = vpop.f32.mrb[37].mxu1  ;;  %3503 = vrot.lane.b32.xlu1 %v3015_v27, %s9994_s20 }
 0x788   :  { %v3094_v36 = vpop.f32.mrb[38].mxu0 }
 0x789   :  { %3505 = vrot.lane.b32.xlu0 %v3094_v36, %s9994_s20  ;;  %v8869_v58 = vpop.f32.mrb[39].mxu0  ;;  %v9935_v36 = vld [vmem:[%s11877_s0 + $0x38] sm:$0xff] }
 0x78c   :  { %v3173_v60 = vpop.f32.mrb[38].mxu1 }
 0x78d   :  { %3507 = vrot.lane.b32.xlu1 %v3173_v60, %s9994_s20  ;;  %v8876_v39 = vpop.f32.mrb[39].mxu1  ;;  %v9936_v60 = vld [vmem:[%s11877_s0 + $0x30] sm:$0xff] }
 0x790   :  { %v3252_v42 = vpop.f32.mrb[40].mxu0 }
 0x791   :  { %3509 = vrot.lane.b32.xlu0 %v3252_v42, %s9994_s20  ;;  %v8883_v63 = vpop.f32.mrb[41].mxu0 }
 0x794   :  { %v3331_v29 = vpop.f32.mrb[40].mxu1 }
 0x795   :  { %3511 = vrot.lane.b32.xlu1 %v3331_v29, %s9994_s20  ;;  %v8890_v1 = vpop.f32.mrb[41].mxu1 }
 0x798   :  { %v3410_v47 = vpop.f32.mrb[42].mxu0 }
 0x799   :  { %3513 = vrot.lane.b32.xlu0 %v3410_v47, %s9994_s20  ;;  %v8897_v12 = vpop.f32.mrb[43].mxu0 }
 0x79c   :  { %v3489_v40 = vpop.f32.mrb[42].mxu1 }
 0x79d   :  { %3515 = vrot.lane.b32.xlu1 %v3489_v40, %s9994_s20  ;;  %v8904_v53 = vpop.f32.mrb[43].mxu1 }
 0x7f3   :  { %v3502_v34 = vpop.permute.xlu0 %3501 }
 0x7f4   :  { %v3525_v52 = vsel %vm764_vm3, %v10762_v16, %v3502_v34 }
 0x7f5   :  { %8913 = vmatprep.mubr.msk.f32.mxu0 %vm53_vm0, %v3525_v52 }
 0x7f7   :  { %v3504_v21 = vpop.permute.xlu1 %3503 }
 0x7f8   :  { %v3526_v4 = vsel %vm764_vm3, %v10764_v61, %v3504_v21 }
 0x7f9   :  { %8914 = vmatmul.mubr.msk.f32.vlgmr.msra.gmra.mrb[44].mxu0 %vm53_vm0, %v3526_v4 }
 0x7fb   :  { %v3506_v28 = vpop.permute.xlu0 %3505 }
 0x7fc   :  { %v3527_v48 = vsel %vm764_vm3, %v10758_v50, %v3506_v28 }
 0x7fd   :  { %8916 = vmatprep.mubr.msk.f32.mxu0 %vm53_vm0, %v3527_v48 }
 0x7ff   :  { %v3508_v43 = vpop.permute.xlu1 %3507 }
 0x800   :  { %v3528_v33 = vsel %vm764_vm3, %v10766_v20, %v3508_v43 }
 0x801   :  { %8917 = vmatmul.mubr.msk.f32.gmra.mrb[46].mxu0 %vm53_vm0, %v3528_v33 }
 0x803   :  { %v3510_v16 = vpop.permute.xlu0 %3509 }
 0x804   :  { %v3529_v62 = vsel %vm764_vm3, %v10760_v11, %v3510_v16  ;;  %v8196_v11 = vld [vmem:[#allocation2 + $0x68] ss:$0 sm:$0xff] }
 0x805   :  { %8919 = vmatprep.mubr.msk.f32.mxu0 %vm53_vm0, %v3529_v62 }
 0x807   :  { %v3512_v61 = vpop.permute.xlu1 %3511 }
 0x808   :  { %v3530_v49 = vsel %vm764_vm3, %v10768_v51, %v3512_v61  ;;  %v9929_v51 = vld [vmem:[%s11877_s0 + $0x8] sm:$0xff] }
 0x809   :  { %8920 = vmatmul.mubr.msk.f32.gmra.mrb[48].mxu0 %vm53_vm0, %v3530_v49 }
 0x80b   :  { %v3514_v50 = vpop.permute.xlu0 %3513 }
 0x80c   :  { %v3531_v44 = vsel %vm764_vm3, %v10770_v17, %v3514_v50  ;;  %v9930_v17 = vld [vmem:[%s11877_s0] sm:$0xff]  ;;  %s9995_s0 = smov 64  }
 0x80d   :  { %8922 = vmatprep.mubr.msk.f32.mxu0 %vm53_vm0, %v3531_v44 }
 0x80f   :  { %v3516_v20 = vpop.permute.xlu1 %3515 }
 0x810   :  { %v3532_v0 = vsel %vm764_vm3, %v10772_v3, %v3516_v20 }
 0x811   :  { %8923 = vmatmul.mubr.msk.f32.gmra.mrb[50].mxu0 %vm53_vm0, %v3532_v0 }
 0x8cc   :  { %v8915_v13 = vpop.f32.mrb[44].mxu0 }
 0x8cd   :  { %v3638_v22 = vadd.f32 %v8915_v13, %v8196_v11  ;;  %v3632_v8 = vpop.f32.mrb[45].mxu0 }
 0x8ce   :  { %v3633_v41 = vadd.f32 %v8196_v11, %v3632_v8 }
 0x8cf   :  { %v10899_v46 = vadd.f32 %v9929_v51, %v3638_v22 }
 0x8d0   :  { %v10904_v7 = vadd.f32 %v9930_v17, %v3633_v41 }
 0x8d1   :  { %v3682_v3 = vsel %vm53_vm0, %v10899_v46, 0.0 }
 0x8d2   :  { %3683 = vadd.xlane.f32.xlu1 %v3682_v3  ;;  %v3679_v10 = vsel %vm53_vm0, %v10904_v7, 0.0 }
 0x8d3   :  { %3680 = vadd.xlane.f32.xlu0 %v3679_v10 }
 0x8d4   :  { %v8918_v2 = vpop.f32.mrb[46].mxu0 }
 0x8d5   :  { %v3648_v5 = vadd.f32 %v8918_v2, %v8196_v11  ;;  %v3642_v45 = vpop.f32.mrb[47].mxu0 }
 0x8d6   :  { %v3643_v14 = vadd.f32 %v8196_v11, %v3642_v45 }
 0x8d7   :  { %v10913_v30 = vadd.f32 %v9931_v19, %v3648_v5 }
 0x8d8   :  { %v10918_v56 = vadd.f32 %v9932_v15, %v3643_v14 }
 0x8d9   :  { %v3688_v18 = vsel %vm53_vm0, %v10913_v30, 0.0 }
 0x8da   :  { %3689 = vadd.xlane.f32.xlu0 %v3688_v18  ;;  %v3685_v6 = vsel %vm53_vm0, %v10918_v56, 0.0 }
 0x8dc   :  { %v8921_v24 = vpop.f32.mrb[48].mxu0 }
 0x8dd   :  { %v3658_v54 = vadd.f32 %v8921_v24, %v8196_v11  ;;  %v3652_v57 = vpop.f32.mrb[49].mxu0 }
 0x8de   :  { %v3653_v23 = vadd.f32 %v8196_v11, %v3652_v57  ;;  %3686 = vadd.xlane.f32.xlu0 %v3685_v6  ;;  %v3809_v57 = vld [vmem:[#allocation2 + $0x80] sm:$0xff]  ;;  %v3810_v6 = vld [vmem:[#allocation2 + $0x88] sm:$0xff] }
 0x8df   :  { %v10927_v31 = vadd.f32 %v9933_v9, %v3658_v54  ;;  %v9421_v9 = vpack.c.bf16 %v3810_v6, %v3809_v57 }
 0x8e0   :  { %v10932_v25 = vadd.f32 %v9934_v37, %v3653_v23  ;;  %v3947_v23 = vld [vmem:[#allocation2 + $0xa0] sm:$0xff]  ;;  %v3948_v37 = vld [vmem:[#allocation2 + $0xa8] sm:$0xff] }
 0x8e1   :  { %v3694_v59 = vsel %vm53_vm0, %v10927_v31, 0.0  ;;  %9422 = vmatprep.subr.bf16.mxu1 %v9421_v9 }
 0x8e2   :  { %3695 = vadd.xlane.f32.xlu1 %v3694_v59  ;;  %v3691_v35 = vsel %vm53_vm0, %v10932_v25, 0.0  ;;  %v9429_v59 = vpack.c.bf16 %v3948_v37, %v3947_v23  ;;  %9424 = vmatpush3.bf16.msra.mxu1 %v9421_v9 }
 0x8e3   :  { %3692 = vadd.xlane.f32.xlu0 %v3691_v35  ;;  %v3811_v35 = vld [vmem:[#allocation2 + $0x90] sm:$0xff] }
 0x8e4   :  { %v8924_v32 = vpop.f32.mrb[50].mxu0  ;;  %9430 = vmatprep.subr.bf16.mxu0 %v9429_v59 }
 0x8e5   :  { %v3668_v26 = vadd.f32 %v8924_v32, %v8196_v11  ;;  %v3662_v27 = vpop.f32.mrb[51].mxu0  ;;  %v3812_v32 = vld [vmem:[#allocation2 + $0x98] sm:$0xff]  ;;  %9432 = vmatpush3.bf16.msra.mxu0 %v9429_v59 }
 0x8e6   :  { %v3663_v38 = vadd.f32 %v8196_v11, %v3662_v27  ;;  %v9425_v27 = vpack.c.bf16 %v3812_v32, %v3811_v35 }
 0x8e7   :  { %v10941_v58 = vadd.f32 %v9935_v36, %v3668_v26  ;;  %v3949_v26 = vld [vmem:[#allocation2 + $0xb0] sm:$0xff] }
 0x8e8   :  { %v10946_v39 = vadd.f32 %v9936_v60, %v3663_v38  ;;  %v3950_v38 = vld [vmem:[#allocation2 + $0xb8] sm:$0xff]  ;;  %9426 = vmatprep.subr.bf16.mxu1 %v9425_v27 }
 0x8e9   :  { %v3700_v42 = vsel %vm53_vm0, %v10941_v58, 0.0  ;;  %v9433_v36 = vpack.c.bf16 %v3950_v38, %v3949_v26  ;;  %9428 = vmatpush3.bf16.msra.mxu1 %v9425_v27 }
 0x8ea   :  { %3701 = vadd.xlane.f32.xlu1 %v3700_v42  ;;  %v3697_v63 = vsel %vm53_vm0, %v10946_v39, 0.0 }
 0x8eb   :  { %3698 = vadd.xlane.f32.xlu0 %v3697_v63  ;;  %9434 = vmatprep.subr.bf16.mxu0 %v9433_v36 }
 0x8ec   :  { %9436 = vmatpush3.bf16.msra.mxu0 %v9433_v36 }
 0x95f   :  { %v3684_v29 = vpop.xlane.xlu1 %3683 }
 0x960   :  { %v3704_v1 = vmul.f32 0.03125, %v3684_v29  ;;  %v3681_v47 = vpop.xlane.xlu0 %3680 }
 0x961   :  { %v3703_v12 = vmul.f32 0.03125, %v3681_v47 }
 0x962   :  { %v10953_v40 = vsub.f32 %v10899_v46, %v3704_v1 }
 0x963   :  { %v10956_v53 = vsub.f32 %v10904_v7, %v3703_v12 }
 0x964   :  { %v3720_v34 = vmul.f32 %v10953_v40, %v10953_v40 }
 0x965   :  { %v3719_v52 = vmul.f32 %v10956_v53, %v10956_v53 }
 0x966   :  { %v3730_v21 = vsel %vm53_vm0, %v3720_v34, 0.0 }
 0x967   :  { %3731 = vadd.xlane.f32.xlu1 %v3730_v21  ;;  %v3690_v4 = vpop.xlane.xlu0 %3689  ;;  %v3727_v28 = vsel %vm53_vm0, %v3719_v52, 0.0 }
 0x968   :  { %v3706_v48 = vmul.f32 0.03125, %v3690_v4  ;;  %3728 = vadd.xlane.f32.xlu0 %v3727_v28 }
 0x96a   :  { %v10965_v43 = vsub.f32 %v10913_v30, %v3706_v48 }
 0x96b   :  { %v3687_v33 = vpop.xlane.xlu0 %3686 }
 0x96c   :  { %v3705_v16 = vmul.f32 0.03125, %v3687_v33  ;;  %v3722_v62 = vmul.f32 %v10965_v43, %v10965_v43  ;;  %v8205_v33 = vld [vmem:[#allocation2 + $0x70] ss:$0 sm:$0xff] }
 0x96e   :  { %v10970_v61 = vsub.f32 %v10918_v56, %v3705_v16  ;;  %v3736_v49 = vsel %vm53_vm0, %v3722_v62, 0.0 }
 0x96f   :  { %v3696_v50 = vpop.xlane.xlu1 %3695  ;;  %3737 = vadd.xlane.f32.xlu1 %v3736_v49 }
 0x970   :  { %v3708_v44 = vmul.f32 0.03125, %v3696_v50  ;;  %v3693_v20 = vpop.xlane.xlu0 %3692  ;;  %v3721_v0 = vmul.f32 %v10970_v61, %v10970_v61 }
 0x971   :  { %v3707_v11 = vmul.f32 0.03125, %v3693_v20 }
 0x972   :  { %v10976_v13 = vsub.f32 %v10927_v31, %v3708_v44  ;;  %v3733_v22 = vsel %vm53_vm0, %v3721_v0, 0.0 }
 0x973   :  { %v10980_v8 = vsub.f32 %v10932_v25, %v3707_v11  ;;  %3734 = vadd.xlane.f32.xlu0 %v3733_v22  ;;  %v8206_v11 = vld [vmem:[#allocation2 + $0x78] ss:$0 sm:$0xff] }
 0x974   :  { %v3724_v41 = vmul.f32 %v10976_v13, %v10976_v13 }
 0x975   :  { %v3723_v51 = vmul.f32 %v10980_v8, %v10980_v8 }
 0x976   :  { %v3742_v17 = vsel %vm53_vm0, %v3724_v41, 0.0 }
 0x977   :  { %v3702_v3 = vpop.xlane.xlu1 %3701  ;;  %3743 = vadd.xlane.f32.xlu1 %v3742_v17  ;;  %v3739_v10 = vsel %vm53_vm0, %v3723_v51, 0.0 }
 0x978   :  { %v3710_v2 = vmul.f32 0.03125, %v3702_v3  ;;  %3740 = vadd.xlane.f32.xlu0 %v3739_v10  ;;  %v3699_v5 = vpop.xlane.xlu0 %3698 }
 0x979   :  { %v3709_v45 = vmul.f32 0.03125, %v3699_v5 }
 0x97a   :  { %v10989_v14 = vsub.f32 %v10941_v58, %v3710_v2 }
 0x97b   :  { %v10992_v19 = vsub.f32 %v10946_v39, %v3709_v45 }
 0x97c   :  { %v3726_v15 = vmul.f32 %v10989_v14, %v10989_v14 }
 0x97d   :  { %v3725_v18 = vmul.f32 %v10992_v19, %v10992_v19 }
 0x97e   :  { %v3748_v24 = vsel %vm53_vm0, %v3726_v15, 0.0 }
 0x97f   :  { %3749 = vadd.xlane.f32.xlu1 %v3748_v24  ;;  %v3745_v54 = vsel %vm53_vm0, %v3725_v18, 0.0 }
 0x980   :  { %3746 = vadd.xlane.f32.xlu0 %v3745_v54 }
 0x9f4   :  { %v3732_v60 = vpop.xlane.xlu1 %3731 }
 0x9f5   :  { %v3752_v42 = vmul.f32 0.03125, %v3732_v60  ;;  %v3729_v63 = vpop.xlane.xlu0 %3728 }
 0x9f6   :  { %v3751_v29 = vmul.f32 0.03125, %v3729_v63 }
 0x9f7   :  { %v3760_v1 = vadd.f32 1e-05, %v3752_v42 }
 0x9f8   :  { %v3759_v47 = vadd.f32 1e-05, %v3751_v29 }
 0x9f9   :  { %9785 = vrsqrt.f32 %v3760_v1 }
 0x9fa   :  { %9787 = vrsqrt.f32 %v3759_v47  ;;  %v4141_v47 = vld [vmem:[#allocation2 + $0xd0] sm:$0xff] }
 0x9fc   :  { %v3738_v12 = vpop.xlane.xlu1 %3737 }
 0x9fd   :  { %v3754_v34 = vmul.f32 0.03125, %v3738_v12  ;;  %v4142_v12 = vld [vmem:[#allocation2 + $0xd8] sm:$0xff] }
 0x9ff   :  { %v3762_v52 = vadd.f32 1e-05, %v3754_v34  ;;  %v9437_v34 = vpack.c.bf16 %v4142_v12, %v4141_v47 }
 0xa00   :  { %v3735_v21 = vpop.xlane.xlu0 %3734 }
 0xa01   :  { %9789 = vrsqrt.f32 %v3762_v52  ;;  %v3753_v4 = vmul.f32 0.03125, %v3735_v21  ;;  %9438 = vmatprep.subr.bf16.mxu1 %v9437_v34  ;;  %v4144_v52 = vld [vmem:[#allocation2 + $0xe8] sm:$0xff]  ;;  %v4145_v21 = vld [vmem:[#allocation2 + $0xf0] sm:$0xff] }
 0xa03   :  { %v9786_v28 = vpop.eup %9785  ;;  %v3761_v48 = vadd.f32 1e-05, %v3753_v4  ;;  %v4146_v4 = vld [vmem:[#allocation2 + $0xf8] sm:$0xff] }
 0xa04   :  { %v9788_v16 = vpop.eup %9787  ;;  %v3776_v62 = vmul.f32 %v9786_v28, %v10953_v40  ;;  %v3744_v49 = vpop.xlane.xlu1 %3743  ;;  %v9445_v28 = vpack.c.bf16 %v4146_v4, %v4145_v21 }
 0xa05   :  { %9791 = vrsqrt.f32 %v3761_v48  ;;  %v3756_v50 = vmul.f32 0.03125, %v3744_v49  ;;  %v3741_v44 = vpop.xlane.xlu0 %3740  ;;  %v3775_v20 = vmul.f32 %v9788_v16, %v10956_v53  ;;  %v4147_v48 = vld [vmem:[#allocation2 + $0x100] sm:$0xff]  ;;  %v4150_v49 = vld [vmem:[#allocation2 + $0x118] sm:$0xff] }
 0xa06   :  { %v3755_v0 = vmul.f32 0.03125, %v3741_v44  ;;  %v3789_v22 = vmul.f32 %v8205_v33, %v3776_v62  ;;  %v4149_v62 = vld [vmem:[#allocation2 + $0x110] sm:$0xff]  ;;  %v4151_v44 = vld [vmem:[#allocation2 + $0x120] sm:$0xff] }
 0xa07   :  { %v3764_v41 = vadd.f32 1e-05, %v3756_v50  ;;  %v3788_v51 = vmul.f32 %v8205_v33, %v3775_v20  ;;  %v9453_v50 = vpack.c.bf16 %v4150_v49, %v4149_v62  ;;  %v4152_v20 = vld [vmem:[#allocation2 + $0x128] sm:$0xff] }
 0xa08   :  { %v3763_v17 = vadd.f32 1e-05, %v3755_v0  ;;  %v3802_v10 = vadd.f32 %v8206_v11, %v3789_v22  ;;  %v9457_v0 = vpack.c.bf16 %v4152_v20, %v4151_v44  ;;  %v4154_v22 = vld [vmem:[#allocation2 + $0x138] sm:$0xff] }
 0xa09   :  { %9793 = vrsqrt.f32 %v3764_v41  ;;  %v3801_v3 = vadd.f32 %v8206_v11, %v3788_v51  ;;  %v4155_v51 = vld [vmem:[#allocation2 + $0x140] sm:$0xff] }
 0xa0a   :  { %9795 = vrsqrt.f32 %v3763_v17  ;;  %v4156_v17 = vld [vmem:[#allocation2 + $0x148] sm:$0xff] }
 0xa0b   :  { %v9790_v2 = vpop.eup %9789  ;;  %8933 = vmatprep.mubr.msk.f32.mxu1 %vm53_vm0, %v3801_v3  ;;  %8953 = vmatprep.mubr.msk.f32.mxu0 %vm53_vm0, %v3801_v3  ;;  %v9465_v3 = vpack.c.bf16 %v4156_v17, %v4155_v51 }
 0xa0c   :  { %v3750_v40 = vpop.xlane.xlu1 %3749  ;;  %8934 = vmatmul.mubr.msk.f32.vlgmr.msra.gmra.mrb[44].mxu1 %vm53_vm0, %v3802_v10  ;;  %8954 = vmatmul.mubr.msk.f32.vlgmr.msra.gmra.mrb[52].mxu0 %vm53_vm0, %v3802_v10  ;;  %v3778_v45 = vmul.f32 %v9790_v2, %v10965_v43  ;;  %v8216_v10 = vld [vmem:[#allocation2 + $0xc8] ss:$0 sm:$0xff] }
 0xa0d   :  { %v3758_v53 = vmul.f32 0.03125, %v3750_v40  ;;  %v3747_v5 = vpop.xlane.xlu0 %3746  ;;  %9440 = vmatpush3.bf16.msra.mxu1 %v9437_v34 }
 0xa0e   :  { %v3757_v15 = vmul.f32 0.03125, %v3747_v5  ;;  %v3791_v6 = vmul.f32 %v8205_v33, %v3778_v45 }
 0xa0f   :  { %v9792_v18 = vpop.eup %9791  ;;  %v3766_v24 = vadd.f32 1e-05, %v3758_v53 }
 0xa10   :  { %v3765_v54 = vadd.f32 1e-05, %v3757_v15  ;;  %v3777_v57 = vmul.f32 %v9792_v18, %v10970_v61  ;;  %v3804_v32 = vadd.f32 %v8206_v11, %v3791_v6 }
 0xa11   :  { %9797 = vrsqrt.f32 %v3766_v24 }
 0xa12   :  { %9799 = vrsqrt.f32 %v3765_v54  ;;  %v3790_v23 = vmul.f32 %v8205_v33, %v3777_v57 }
 0xa13   :  { %v9794_v9 = vpop.eup %9793 }
 0xa14   :  { %v9796_v37 = vpop.eup %9795  ;;  %v3803_v59 = vadd.f32 %v8206_v11, %v3790_v23  ;;  %v3780_v35 = vmul.f32 %v9794_v9, %v10976_v13 }
 0xa15   :  { %v3779_v26 = vmul.f32 %v9796_v37, %v10980_v8 }
 0xa16   :  { %8936 = vmatprep.mubr.msk.f32.mxu1 %vm53_vm0, %v3803_v59  ;;  %8956 = vmatprep.mubr.msk.f32.mxu0 %vm53_vm0, %v3803_v59  ;;  %v3793_v43 = vmul.f32 %v8205_v33, %v3780_v35 }
 0xa17   :  { %8937 = vmatmul.mubr.msk.f32.gmra.mrb[46].mxu1 %vm53_vm0, %v3804_v32  ;;  %8957 = vmatmul.mubr.msk.f32.gmra.mrb[54].mxu0 %vm53_vm0, %v3804_v32  ;;  %v3792_v61 = vmul.f32 %v8205_v33, %v3779_v26 }
 0xa18   :  { %v3806_v38 = vadd.f32 %v8206_v11, %v3793_v43 }
 0xa19   :  { %v3805_v27 = vadd.f32 %v8206_v11, %v3792_v61 }
 0xa1b   :  { %v9798_v36 = vpop.eup %9797  ;;  %8939 = vmatprep.mubr.msk.f32.mxu1 %vm53_vm0, %v3805_v27  ;;  %8959 = vmatprep.mubr.msk.f32.mxu0 %vm53_vm0, %v3805_v27 }
 0xa1c   :  { %v9800_v13 = vpop.eup %9799  ;;  %8940 = vmatmul.mubr.msk.f32.gmra.mrb[48].mxu1 %vm53_vm0, %v3806_v38  ;;  %8960 = vmatmul.mubr.msk.f32.gmra.mrb[56].mxu0 %vm53_vm0, %v3806_v38  ;;  %v3782_v8 = vmul.f32 %v9798_v36, %v10989_v14  ;;  %v4143_v14 = vld [vmem:[#allocation2 + $0xe0] sm:$0xff] }
 0xa1d   :  { %v3781_v60 = vmul.f32 %v9800_v13, %v10992_v19  ;;  %v9441_v19 = vpack.c.bf16 %v4144_v52, %v4143_v14 }
 0xa1e   :  { %v3795_v42 = vmul.f32 %v8205_v33, %v3782_v8 }
 0xa1f   :  { %v3794_v63 = vmul.f32 %v8205_v33, %v3781_v60  ;;  %9442 = vmatprep.subr.bf16.mxu1 %v9441_v19  ;;  %v4148_v33 = vld [vmem:[#allocation2 + $0x108] sm:$0xff] }
 0xa20   :  { %v3808_v1 = vadd.f32 %v8206_v11, %v3795_v42  ;;  %9444 = vmatpush3.bf16.msra.mxu1 %v9441_v19  ;;  %v9449_v16 = vpack.c.bf16 %v4148_v33, %v4147_v48 }
 0xa21   :  { %v3807_v29 = vadd.f32 %v8206_v11, %v3794_v63  ;;  %9446 = vmatprep.subr.bf16.mxu1 %v9445_v28  ;;  %v4153_v11 = vld [vmem:[#allocation2 + $0x130] sm:$0xff] }
 0xa22   :  { %v9461_v41 = vpack.c.bf16 %v4154_v22, %v4153_v11  ;;  %v11073_v22 = vld [vmem:[#allocation2 + $0xc0] ss:$0 sm:$0xff] }
 0xa23   :  { %8942 = vmatprep.mubr.msk.f32.mxu1 %vm53_vm0, %v3807_v29  ;;  %8962 = vmatprep.mubr.msk.f32.mxu0 %vm53_vm0, %v3807_v29 }
 0xa24   :  { %8943 = vmatmul.mubr.msk.f32.gmra.mrb[50].mxu1 %vm53_vm0, %v3808_v1  ;;  %8963 = vmatmul.mubr.msk.f32.gmra.mrb[58].mxu0 %vm53_vm0, %v3808_v1 }
 0xa25   :  { %9448 = vmatpush3.bf16.msra.mxu1 %v9445_v28 }
 0xa26   :  { %9450 = vmatprep.subr.bf16.mxu1 %v9449_v16 }
 0xa29   :  { %9452 = vmatpush3.bf16.msra.mxu1 %v9449_v16 }
 0xa2a   :  { %9454 = vmatprep.subr.bf16.mxu1 %v9453_v50 }
 0xa2d   :  { %9456 = vmatpush3.bf16.msra.mxu1 %v9453_v50 }
 0xa2e   :  { %9458 = vmatprep.subr.bf16.mxu1 %v9457_v0 }
 0xa31   :  { %9460 = vmatpush3.bf16.msra.mxu1 %v9457_v0 }
 0xa32   :  { %9462 = vmatprep.subr.bf16.mxu1 %v9461_v41 }
 0xa35   :  { %9464 = vmatpush3.bf16.msra.mxu1 %v9461_v41 }
 0xa36   :  { %9466 = vmatprep.subr.bf16.mxu1 %v9465_v3 }
 0xa39   :  { %9468 = vmatpush3.bf16.msra.mxu1 %v9465_v3 }
 0xa3a   :  { %9034 = vmatprep.subr.mxu1 %v9990_v55 }
 0xadf   :  { %v11025_v2 = vpop.f32.mrb[44].mxu1  ;;  %v8955_v40 = vpop.f32.mrb[52].mxu0 }
 0xae0   :  { %v11027_v53 = vadd.f32 %v8955_v40, %v8216_v10  ;;  %v11029_v5 = vpop.f32.mrb[45].mxu1  ;;  %v4022_v45 = vpop.f32.mrb[53].mxu0 }
 0xae1   :  { %v11031_v15 = vadd.f32 %v8216_v10, %v4022_v45 }
 0xae2   :  { %v4062_v18 = vmul.f32 %v11027_v53, %v11027_v53 }
 0xae3   :  { %v4061_v24 = vmul.f32 %v11031_v15, %v11031_v15 }
 0xae4   :  { %v4070_v54 = vmul.f32 %v4062_v18, %v11027_v53 }
 0xae5   :  { %v4069_v57 = vmul.f32 %v4061_v24, %v11031_v15 }
 0xae6   :  { %v4078_v6 = vmul.f32 0.044715, %v4070_v54 }
 0xae7   :  { %v4077_v23 = vmul.f32 0.044715, %v4069_v57 }
 0xae8   :  { %v4086_v9 = vadd.f32 %v4078_v6, %v11027_v53  ;;  %v3914_v6 = vadd.f32 %v11025_v2, %v11073_v22 }
 0xae9   :  { %v4085_v37 = vadd.f32 %v4077_v23, %v11031_v15 }
 0xaea   :  { %v4094_v59 = vmul.f32 0.7978846, %v4086_v9  ;;  %v11041_v35 = vpop.f32.mrb[46].mxu1  ;;  %v8958_v32 = vpop.f32.mrb[54].mxu0 }
 0xaeb   :  { %v4093_v26 = vmul.f32 0.7978846, %v4085_v37  ;;  %v11043_v43 = vadd.f32 %v8958_v32, %v8216_v10  ;;  %v11045_v61 = vpop.f32.mrb[47].mxu1  ;;  %v4032_v27 = vpop.f32.mrb[55].mxu0 }
 0xaec   :  { %9801 = vtanh.f32 %v4094_v59  ;;  %v11047_v38 = vadd.f32 %v8216_v10, %v4032_v27  ;;  %v3909_v27 = vadd.f32 %v11073_v22, %v11029_v5 }
 0xaed   :  { %9803 = vtanh.f32 %v4093_v26  ;;  %v4064_v36 = vmul.f32 %v11043_v43, %v11043_v43 }
 0xaee   :  { %v4063_v13 = vmul.f32 %v11047_v38, %v11047_v38 }
 0xaef   :  { %v4072_v8 = vmul.f32 %v4064_v36, %v11043_v43  ;;  %v11054_v60 = vpop.f32.mrb[48].mxu1  ;;  %v8961_v42 = vpop.f32.mrb[56].mxu0 }
 0xaf0   :  { %v4071_v63 = vmul.f32 %v4063_v13, %v11047_v38  ;;  %v11057_v29 = vadd.f32 %v8961_v42, %v8216_v10  ;;  %v11059_v1 = vpop.f32.mrb[49].mxu1  ;;  %v4042_v47 = vpop.f32.mrb[57].mxu0 }
 0xaf1   :  { %v4080_v12 = vmul.f32 0.044715, %v4072_v8  ;;  %v11061_v34 = vadd.f32 %v8216_v10, %v4042_v47 }
 0xaf2   :  { %v4079_v14 = vmul.f32 0.044715, %v4071_v63  ;;  %v4066_v52 = vmul.f32 %v11057_v29, %v11057_v29 }
 0xaf3   :  { %v4088_v19 = vadd.f32 %v4080_v12, %v11043_v43  ;;  %v4065_v21 = vmul.f32 %v11061_v34, %v11061_v34 }
 0xaf4   :  { %v4087_v4 = vadd.f32 %v4079_v14, %v11047_v38  ;;  %v4074_v28 = vmul.f32 %v4066_v52, %v11057_v29 }
 0xaf5   :  { %v4096_v48 = vmul.f32 0.7978846, %v4088_v19  ;;  %v4073_v33 = vmul.f32 %v4065_v21, %v11061_v34 }
 0xaf6   :  { %v9802_v16 = vpop.eup %9801  ;;  %v4095_v62 = vmul.f32 0.7978846, %v4087_v4  ;;  %v4082_v49 = vmul.f32 0.044715, %v4074_v28 }
 0xaf7   :  { %v9804_v50 = vpop.eup %9803  ;;  %v4110_v44 = vadd.f32 1.0, %v9802_v16  ;;  %9805 = vtanh.f32 %v4096_v48  ;;  %v4081_v20 = vmul.f32 0.044715, %v4073_v33  ;;  %v11071_v0 = vpop.f32.mrb[50].mxu1  ;;  %v3919_v33 = vadd.f32 %v11073_v22, %v11045_v61 }
 0xaf8   :  { %v8964_v11 = vpop.f32.mrb[58].mxu0  ;;  %9807 = vtanh.f32 %v4095_v62  ;;  %v4090_v41 = vadd.f32 %v4082_v49, %v11057_v29  ;;  %v11078_v17 = vpop.f32.mrb[51].mxu1  ;;  %v4109_v57 = vadd.f32 1.0, %v9804_v50 }
 0xaf9   :  { %v11076_v51 = vadd.f32 %v8964_v11, %v8216_v10  ;;  %v4052_v3 = vpop.f32.mrb[59].mxu0  ;;  %v4118_v40 = vmul.f32 0.5, %v4110_v44  ;;  %v4089_v45 = vadd.f32 %v4081_v20, %v11061_v34 }
 0xafa   :  { %v11081_v18 = vadd.f32 %v8216_v10, %v4052_v3  ;;  %v4098_v24 = vmul.f32 0.7978846, %v4090_v41  ;;  %v4117_v32 = vmul.f32 0.5, %v4109_v57  ;;  %v3934_v41 = vadd.f32 %v11054_v60, %v11073_v22 }
 0xafb   :  { %v4068_v54 = vmul.f32 %v11076_v51, %v11076_v51  ;;  %v4126_v23 = vmul.f32 %v4118_v40, %v11027_v53  ;;  %v4097_v9 = vmul.f32 0.7978846, %v4089_v45  ;;  %v3944_v60 = vadd.f32 %v11071_v0, %v11073_v22 }
 0xafc   :  { %v4067_v37 = vmul.f32 %v11081_v18, %v11081_v18  ;;  %9809 = vtanh.f32 %v4098_v24  ;;  %v4125_v2 = vmul.f32 %v4117_v32, %v11031_v15  ;;  %v3924_v15 = vadd.f32 %v11041_v35, %v11073_v22 }
 0xafd   :  { %v4076_v59 = vmul.f32 %v4068_v54, %v11076_v51  ;;  %v4134_v10 = vmul.f32 %v4126_v23, %v3914_v6  ;;  %9811 = vtanh.f32 %v4097_v9 }
 0xafe   :  { %v4075_v26 = vmul.f32 %v4067_v37, %v11081_v18  ;;  %v4133_v8 = vmul.f32 %v4125_v2, %v3909_v27 }
 0xaff   :  { %v4084_v36 = vmul.f32 0.044715, %v4076_v59  ;;  %v8225_v59 = vld [vmem:[#allocation2 + $0x150] ss:$0 sm:$0xff] }
 0xb00   :  { %v4083_v13 = vmul.f32 0.044715, %v4075_v26  ;;  %8997 = vmatprep.mubr.f32.mxu1 %v4133_v8 }
 0xb01   :  { %v4092_v53 = vadd.f32 %v4084_v36, %v11076_v51  ;;  %v9806_v42 = vpop.eup %9805  ;;  %8998 = vmatmul.mubr.f32.vlgmr.msra.gmra.mrb[52].mxu1 %v4134_v10 }
 0xb02   :  { %v4091_v63 = vadd.f32 %v4083_v13, %v11081_v18  ;;  %v9808_v47 = vpop.eup %9807  ;;  %v4112_v14 = vadd.f32 1.0, %v9806_v42 }
 0xb03   :  { %v4100_v12 = vmul.f32 0.7978846, %v4092_v53  ;;  %v4111_v19 = vadd.f32 1.0, %v9808_v47 }
 0xb04   :  { %v4099_v52 = vmul.f32 0.7978846, %v4091_v63  ;;  %v4120_v21 = vmul.f32 0.5, %v4112_v14 }
 0xb05   :  { %9813 = vtanh.f32 %v4100_v12  ;;  %v4119_v5 = vmul.f32 0.5, %v4111_v19 }
 0xb06   :  { %9815 = vtanh.f32 %v4099_v52  ;;  %v9810_v4 = vpop.eup %9809  ;;  %v4128_v28 = vmul.f32 %v4120_v21, %v11043_v43  ;;  %v3929_v43 = vadd.f32 %v11073_v22, %v11059_v1  ;;  %v3939_v1 = vadd.f32 %v11073_v22, %v11078_v17 }
 0xb07   :  { %v9812_v48 = vpop.eup %9811  ;;  %v4127_v16 = vmul.f32 %v4119_v5, %v11047_v38  ;;  %v4114_v62 = vadd.f32 1.0, %v9810_v4 }
 0xb08   :  { %v4136_v49 = vmul.f32 %v4128_v28, %v3924_v15  ;;  %v4113_v50 = vadd.f32 1.0, %v9812_v48 }
 0xb09   :  { %v4135_v44 = vmul.f32 %v4127_v16, %v3919_v33  ;;  %v4122_v20 = vmul.f32 0.5, %v4114_v62 }
 0xb0a   :  { %v4121_v11 = vmul.f32 0.5, %v4113_v50 }
 0xb0b   :  { %9000 = vmatprep.mubr.f32.mxu1 %v4135_v44  ;;  %v4130_v35 = vmul.f32 %v4122_v20, %v11057_v29 }
 0xb0c   :  { %9001 = vmatmul.mubr.f32.gmra.mrb[54].mxu1 %v4136_v49  ;;  %v4129_v61 = vmul.f32 %v4121_v11, %v11061_v34 }
 0xb0d   :  { %v4138_v3 = vmul.f32 %v4130_v35, %v3934_v41 }
 0xb0e   :  { %v4137_v40 = vmul.f32 %v4129_v61, %v3929_v43 }
 0xb0f   :  { %v9814_v38 = vpop.eup %9813 }
 0xb10   :  { %v9816_v45 = vpop.eup %9815  ;;  %v4116_v24 = vadd.f32 1.0, %v9814_v38  ;;  %9003 = vmatprep.mubr.f32.mxu1 %v4137_v40 }
 0xb11   :  { %v4115_v54 = vadd.f32 1.0, %v9816_v45  ;;  %9004 = vmatmul.mubr.f32.gmra.mrb[56].mxu1 %v4138_v3 }
 0xb12   :  { %v4124_v57 = vmul.f32 0.5, %v4116_v24 }
 0xb13   :  { %v4123_v6 = vmul.f32 0.5, %v4115_v54 }
 0xb14   :  { %v4132_v29 = vmul.f32 %v4124_v57, %v11076_v51 }
 0xb15   :  { %v4131_v34 = vmul.f32 %v4123_v6, %v11081_v18 }
 0xb16   :  { %v4140_v23 = vmul.f32 %v4132_v29, %v3944_v60 }
 0xb17   :  { %v4139_v9 = vmul.f32 %v4131_v34, %v3939_v1 }
 0xb19   :  { %9006 = vmatprep.mubr.f32.mxu1 %v4139_v9 }
 0xb1a   :  { %9007 = vmatmul.mubr.f32.gmra.mrb[58].mxu1 %v4140_v23 }
 0xb1b   :  { %9036 = vmatprep.mubr.msk.f32.mxu1 %vm9989_vm2, %v9990_v55 }
 0xbd4   :  { %v8999_v37 = vpop.f32.mrb[52].mxu1 }
 0xbd5   :  { %v4263_v32 = vadd.f32 %v8999_v37, %v10899_v46  ;;  %v4223_v10 = vpop.f32.mrb[53].mxu1 }
 0xbd6   :  { %v4262_v0 = vadd.f32 %v4223_v10, %v10904_v7 }
 0xbd7   :  { %v11119_v51 = vadd.f32 %v8225_v59, %v4263_v32 }
 0xbd8   :  { %v11121_v26 = vadd.f32 %v8225_v59, %v4262_v0 }
 0xbd9   :  { %v4286_v22 = vsel %vm53_vm0, %v11119_v51, 0.0 }
 0xbda   :  { %4287 = vadd.xlane.f32.xlu1 %v4286_v22  ;;  %v4283_v17 = vsel %vm53_vm0, %v11121_v26, 0.0 }
 0xbdb   :  { %4284 = vadd.xlane.f32.xlu0 %v4283_v17 }
 0xbdf   :  { %v9002_v18 = vpop.f32.mrb[54].mxu1 }
 0xbe0   :  { %v4265_v27 = vadd.f32 %v9002_v18, %v10913_v30  ;;  %v4233_v36 = vpop.f32.mrb[55].mxu1 }
 0xbe1   :  { %v4264_v46 = vadd.f32 %v4233_v36, %v10918_v56 }
 0xbe2   :  { %v11129_v2 = vadd.f32 %v8225_v59, %v4265_v27 }
 0xbe3   :  { %v11131_v7 = vadd.f32 %v8225_v59, %v4264_v46  ;;  %v4413_v46 = vld [vmem:[#allocation2 + $0x168] sm:$0xff] }
 0xbe4   :  { %v9005_v13 = vpop.f32.mrb[56].mxu1  ;;  %v4292_v53 = vsel %vm53_vm0, %v11129_v2, 0.0 }
 0xbe5   :  { %v4267_v8 = vadd.f32 %v9005_v13, %v10927_v31  ;;  %4293 = vadd.xlane.f32.xlu1 %v4292_v53  ;;  %v4243_v42 = vpop.f32.mrb[57].mxu1  ;;  %v4289_v63 = vsel %vm53_vm0, %v11131_v7, 0.0  ;;  %v4414_v13 = vld [vmem:[#allocation2 + $0x170] sm:$0xff] }
 0xbe6   :  { %v4266_v30 = vadd.f32 %v4243_v42, %v10932_v25  ;;  %4290 = vadd.xlane.f32.xlu0 %v4289_v63  ;;  %v9469_v53 = vpack.c.bf16 %v4414_v13, %v4413_v46  ;;  %v4416_v42 = vld [vmem:[#allocation2 + $0x180] sm:$0xff] }
 0xbe7   :  { %v11139_v47 = vadd.f32 %v8225_v59, %v4267_v8  ;;  %v4415_v8 = vld [vmem:[#allocation2 + $0x178] sm:$0xff] }
 0xbe8   :  { %v11141_v56 = vadd.f32 %v8225_v59, %v4266_v30  ;;  %9470 = vmatprep.subr.bf16.mxu0 %v9469_v53  ;;  %v9473_v63 = vpack.c.bf16 %v4416_v42, %v4415_v8 }
 0xbe9   :  { %v4298_v12 = vsel %vm53_vm0, %v11139_v47, 0.0  ;;  %9472 = vmatpush3.bf16.msra.mxu0 %v9469_v53 }
 0xbea   :  { %4299 = vadd.xlane.f32.xlu1 %v4298_v12  ;;  %v4295_v14 = vsel %vm53_vm0, %v11141_v56, 0.0  ;;  %9474 = vmatprep.subr.bf16.mxu0 %v9473_v63 }
 0xbeb   :  { %4296 = vadd.xlane.f32.xlu0 %v4295_v14 }
 0xbed   :  { %v9008_v31 = vpop.f32.mrb[58].mxu1  ;;  %9476 = vmatpush3.bf16.msra.mxu0 %v9473_v63 }
 0xbee   :  { %v4269_v52 = vadd.f32 %v9008_v31, %v10941_v58  ;;  %v4253_v19 = vpop.f32.mrb[59].mxu1  ;;  %9029 = vmatprep.subr.mxu0 %v9990_v55 }
 0xbef   :  { %v4268_v21 = vadd.f32 %v4253_v19, %v10946_v39 }
 0xbf0   :  { %v11149_v25 = vadd.f32 %v8225_v59, %v4269_v52 }
 0xbf1   :  { %v11151_v5 = vadd.f32 %v8225_v59, %v4268_v21 }
 0xbf2   :  { %v4304_v4 = vsel %vm53_vm0, %v11149_v25, 0.0 }
 0xbf3   :  { %4305 = vadd.xlane.f32.xlu1 %v4304_v4  ;;  %v4301_v15 = vsel %vm53_vm0, %v11151_v5, 0.0 }
 0xbf4   :  { %4302 = vadd.xlane.f32.xlu0 %v4301_v15 }
 0xc67   :  { %v4288_v28 = vpop.xlane.xlu1 %4287 }
 0xc68   :  { %v4308_v48 = vmul.f32 0.03125, %v4288_v28  ;;  %v4285_v33 = vpop.xlane.xlu0 %4284 }
 0xc69   :  { %v4307_v16 = vmul.f32 0.03125, %v4285_v33 }
 0xc6a   :  { %v11158_v58 = vsub.f32 %v11119_v51, %v4308_v48 }
 0xc6b   :  { %v11161_v39 = vsub.f32 %v11121_v26, %v4307_v16 }
 0xc6c   :  { %v4324_v62 = vmul.f32 %v11158_v58, %v11158_v58 }
 0xc6d   :  { %v4323_v49 = vmul.f32 %v11161_v39, %v11161_v39 }
 0xc6e   :  { %v4334_v50 = vsel %vm53_vm0, %v4324_v62, 0.0 }
 0xc6f   :  { %4335 = vadd.xlane.f32.xlu1 %v4334_v50  ;;  %v4331_v44 = vsel %vm53_vm0, %v4323_v49, 0.0  ;;  %v8226_v49 = vld [vmem:[#allocation2 + $0x158] ss:$0 sm:$0xff] }
 0xc70   :  { %4332 = vadd.xlane.f32.xlu0 %v4331_v44 }
 0xc72   :  { %v4294_v20 = vpop.xlane.xlu1 %4293 }
 0xc73   :  { %v4310_v11 = vmul.f32 0.03125, %v4294_v20  ;;  %v4291_v41 = vpop.xlane.xlu0 %4290 }
 0xc74   :  { %v4309_v35 = vmul.f32 0.03125, %v4291_v41 }
 0xc75   :  { %v11170_v43 = vsub.f32 %v11129_v2, %v4310_v11 }
 0xc76   :  { %v11173_v61 = vsub.f32 %v11131_v7, %v4309_v35 }
 0xc77   :  { %v4300_v3 = vpop.xlane.xlu1 %4299  ;;  %v4326_v38 = vmul.f32 %v11170_v43, %v11170_v43 }
 0xc78   :  { %v4312_v40 = vmul.f32 0.03125, %v4300_v3  ;;  %v4297_v45 = vpop.xlane.xlu0 %4296  ;;  %v4325_v24 = vmul.f32 %v11173_v61, %v11173_v61 }
 0xc79   :  { %v4311_v54 = vmul.f32 0.03125, %v4297_v45  ;;  %v4340_v57 = vsel %vm53_vm0, %v4326_v38, 0.0  ;;  %v8227_v45 = vld [vmem:[#allocation2 + $0x160] ss:$0 sm:$0xff] }
 0xc7a   :  { %v11181_v6 = vsub.f32 %v11139_v47, %v4312_v40  ;;  %4341 = vadd.xlane.f32.xlu1 %v4340_v57  ;;  %v4337_v60 = vsel %vm53_vm0, %v4325_v24, 0.0 }
 0xc7b   :  { %v11185_v29 = vsub.f32 %v11141_v56, %v4311_v54  ;;  %4338 = vadd.xlane.f32.xlu0 %v4337_v60 }
 0xc7c   :  { %v4328_v1 = vmul.f32 %v11181_v6, %v11181_v6 }
 0xc7d   :  { %v4327_v34 = vmul.f32 %v11185_v29, %v11185_v29 }
 0xc7e   :  { %v4346_v23 = vsel %vm53_vm0, %v4328_v1, 0.0 }
 0xc7f   :  { %4347 = vadd.xlane.f32.xlu1 %v4346_v23  ;;  %v4343_v37 = vsel %vm53_vm0, %v4327_v34, 0.0 }
 0xc80   :  { %v4306_v9 = vpop.xlane.xlu1 %4305  ;;  %4344 = vadd.xlane.f32.xlu0 %v4343_v37 }
 0xc81   :  { %v4314_v59 = vmul.f32 0.03125, %v4306_v9  ;;  %v4303_v32 = vpop.xlane.xlu0 %4302 }
 0xc82   :  { %v4313_v10 = vmul.f32 0.03125, %v4303_v32 }
 0xc83   :  { %v11194_v0 = vsub.f32 %v11149_v25, %v4314_v59 }
 0xc84   :  { %v11197_v22 = vsub.f32 %v11151_v5, %v4313_v10 }
 0xc85   :  { %v4330_v17 = vmul.f32 %v11194_v0, %v11194_v0 }
 0xc86   :  { %v4329_v18 = vmul.f32 %v11197_v22, %v11197_v22 }
 0xc87   :  { %v4352_v27 = vsel %vm53_vm0, %v4330_v17, 0.0 }
 0xc88   :  { %4353 = vadd.xlane.f32.xlu1 %v4352_v27  ;;  %v4349_v36 = vsel %vm53_vm0, %v4329_v18, 0.0 }
 0xc89   :  { %4350 = vadd.xlane.f32.xlu0 %v4349_v36 }
 0xcfc   :  { %v4336_v30 = vpop.xlane.xlu1 %4335 }
 0xcfd   :  { %v4356_v12 = vmul.f32 0.03125, %v4336_v30  ;;  %v4333_v14 = vpop.xlane.xlu0 %4332 }
 0xcfe   :  { %v4355_v31 = vmul.f32 0.03125, %v4333_v14 }
 0xcff   :  { %v4364_v52 = vadd.f32 1e-05, %v4356_v12 }
 0xd00   :  { %v4363_v19 = vadd.f32 1e-05, %v4355_v31 }
 0xd01   :  { %9817 = vrsqrt.f32 %v4364_v52 }
 0xd02   :  { %9819 = vrsqrt.f32 %v4363_v19 }
 0xd07   :  { %v4342_v21 = vpop.xlane.xlu1 %4341 }
 0xd08   :  { %v4358_v4 = vmul.f32 0.03125, %v4342_v21  ;;  %v4339_v15 = vpop.xlane.xlu0 %4338 }
 0xd09   :  { %v4357_v28 = vmul.f32 0.03125, %v4339_v15 }
 0xd0a   :  { %v4366_v48 = vadd.f32 1e-05, %v4358_v4 }
 0xd0b   :  { %v4365_v33 = vadd.f32 1e-05, %v4357_v28  ;;  %v9818_v62 = vpop.eup %9817 }
 0xd0c   :  { %9821 = vrsqrt.f32 %v4366_v48  ;;  %v4348_v16 = vpop.xlane.xlu1 %4347  ;;  %v9820_v20 = vpop.eup %9819  ;;  %v4380_v11 = vmul.f32 %v9818_v62, %v11158_v58 }
 0xd0d   :  { %9823 = vrsqrt.f32 %v4365_v33  ;;  %v4360_v50 = vmul.f32 0.03125, %v4348_v16  ;;  %v4345_v44 = vpop.xlane.xlu0 %4344  ;;  %v4379_v3 = vmul.f32 %v9820_v20, %v11161_v39 }
 0xd0e   :  { %v4359_v41 = vmul.f32 0.03125, %v4345_v44  ;;  %v4393_v38 = vmul.f32 %v8226_v49, %v4380_v11 }
 0xd0f   :  { %v4368_v35 = vadd.f32 1e-05, %v4360_v50  ;;  %v4392_v24 = vmul.f32 %v8226_v49, %v4379_v3 }
 0xd10   :  { %v4367_v40 = vadd.f32 1e-05, %v4359_v41  ;;  %v4406_v60 = vadd.f32 %v8227_v45, %v4393_v38 }
 0xd11   :  { %9825 = vrsqrt.f32 %v4368_v35  ;;  %v4405_v54 = vadd.f32 %v8227_v45, %v4392_v24 }
 0xd12   :  { %9827 = vrsqrt.f32 %v4367_v40 }
 0xd13   :  { %9017 = vmatprep.mubr.msk.f32.mxu0 %vm53_vm0, %v4405_v54 }
 0xd14   :  { %9018 = vmatmul.mubr.msk.f32.vlgmr.msra.gmra.mrb[60].mxu0 %vm53_vm0, %v4406_v60 }
 0xd15   :  { %v4354_v57 = vpop.xlane.xlu1 %4353 }
 0xd16   :  { %v4362_v1 = vmul.f32 0.03125, %v4354_v57  ;;  %v4351_v34 = vpop.xlane.xlu0 %4350  ;;  %v9822_v23 = vpop.eup %9821 }
 0xd17   :  { %v4361_v58 = vmul.f32 0.03125, %v4351_v34  ;;  %v9824_v9 = vpop.eup %9823  ;;  %v4382_v39 = vmul.f32 %v9822_v23, %v11170_v43 }
 0xd18   :  { %v4370_v37 = vadd.f32 1e-05, %v4362_v1  ;;  %v4381_v32 = vmul.f32 %v9824_v9, %v11173_v61 }
 0xd19   :  { %v4369_v59 = vadd.f32 1e-05, %v4361_v58  ;;  %v4395_v10 = vmul.f32 %v8226_v49, %v4382_v39 }
 0xd1a   :  { %9829 = vrsqrt.f32 %v4370_v37  ;;  %v4394_v17 = vmul.f32 %v8226_v49, %v4381_v32 }
 0xd1b   :  { %9831 = vrsqrt.f32 %v4369_v59  ;;  %v9826_v18 = vpop.eup %9825  ;;  %v4408_v13 = vadd.f32 %v8227_v45, %v4395_v10 }
 0xd1c   :  { %v9828_v27 = vpop.eup %9827  ;;  %v4407_v36 = vadd.f32 %v8227_v45, %v4394_v17  ;;  %v4384_v46 = vmul.f32 %v9826_v18, %v11181_v6 }
 0xd1d   :  { %v4383_v53 = vmul.f32 %v9828_v27, %v11185_v29 }
 0xd1e   :  { %9020 = vmatprep.mubr.msk.f32.mxu0 %vm53_vm0, %v4407_v36  ;;  %v4397_v8 = vmul.f32 %v8226_v49, %v4384_v46 }
 0xd1f   :  { %9021 = vmatmul.mubr.msk.f32.gmra.mrb[62].mxu0 %vm53_vm0, %v4408_v13  ;;  %v4396_v43 = vmul.f32 %v8226_v49, %v4383_v53 }
 0xd20   :  { %v4410_v61 = vadd.f32 %v8227_v45, %v4397_v8 }
 0xd21   :  { %v4409_v42 = vadd.f32 %v8227_v45, %v4396_v43 }
 0xd23   :  { %9023 = vmatprep.mubr.msk.f32.mxu0 %vm53_vm0, %v4409_v42 }
 0xd24   :  { %v9830_v63 = vpop.eup %9829  ;;  %9024 = vmatmul.mubr.msk.f32.gmra.mrb[64].mxu0 %vm53_vm0, %v4410_v61 }
 0xd25   :  { %v9832_v30 = vpop.eup %9831  ;;  %v4386_v12 = vmul.f32 %v9830_v63, %v11194_v0 }
 0xd26   :  { %v4385_v6 = vmul.f32 %v9832_v30, %v11197_v22 }
 0xd27   :  { %v4399_v14 = vmul.f32 %v8226_v49, %v4386_v12 }
 0xd28   :  { %v4398_v29 = vmul.f32 %v8226_v49, %v4385_v6 }
 0xd29   :  { %v4412_v52 = vadd.f32 %v8227_v45, %v4399_v14 }
 0xd2a   :  { %v4411_v31 = vadd.f32 %v8227_v45, %v4398_v29 }
 0xd2c   :  { %9026 = vmatprep.mubr.msk.f32.mxu0 %vm53_vm0, %v4411_v31 }
 0xd2d   :  { %9027 = vmatmul.mubr.msk.f32.gmra.mrb[66].mxu0 %vm53_vm0, %v4412_v52 }
 0xd2e   :  { %9031 = vmatprep.mubr.msk.f32.mxu0 %vm9989_vm2, %v9990_v55 }
 0xde7   :  { %v11224_v19 = vpop.f32.mrb[60].mxu0 }
 0xde8   :  { %4624 = vrot.lane.b32.xlu1 %v11224_v19, %s9991_s1  ;;  %v11228_v21 = vpop.f32.mrb[61].mxu0 }
 0xde9   :  { %4547 = vrot.lane.b32.xlu0 %v11228_v21, %s9991_s1 }
 0xdf2   :  { %v11232_v0 = vpop.f32.mrb[62].mxu0 }
 0xdf3   :  { %v11234_v22 = vpop.f32.mrb[63].mxu0 }
 0xdf4   :  { %4701 = vrot.lane.b32.xlu1 %v11234_v22, %s9991_s1 }
 0xdf7   :  { %v11238_v4 = vpop.f32.mrb[64].mxu0 }
 0xdf8   :  { %4778 = vrot.lane.b32.xlu1 %v11232_v0, %s9991_s1  ;;  %v11242_v15 = vpop.f32.mrb[65].mxu0 }
 0xdf9   :  { %4855 = vrot.lane.b32.xlu0 %v11242_v15, %s9991_s1 }
 0xdfc   :  { %4932 = vrot.lane.b32.xlu1 %v11238_v4, %s9991_s1 }
 0xe00   :  { %v11248_v28 = vpop.f32.mrb[66].mxu0 }
 0xe01   :  { %5086 = vrot.lane.b32.xlu1 %v11248_v28, %s9991_s1  ;;  %v11252_v48 = vpop.f32.mrb[67].mxu0 }
 0xe02   :  { %5009 = vrot.lane.b32.xlu0 %v11252_v48, %s9991_s1 }
 0xe05   :  { %5326 = vrot.lane.b32.xlu1 %v11224_v19, %s9995_s0 }
 0xe06   :  { %5250 = vrot.lane.b32.xlu0 %v11228_v21, %s9995_s0 }
 0xe09   :  { %5402 = vrot.lane.b32.xlu1 %v11234_v22, %s9995_s0 }
 0xe0a   :  { %5554 = vrot.lane.b32.xlu0 %v11242_v15, %s9995_s0 }
 0xe0d   :  { %5478 = vrot.lane.b32.xlu1 %v11232_v0, %s9995_s0 }
 0xe0e   :  { %5860 = vrot.lane.b32.xlu0 %v11228_v21, %s9993_s19 }
 0xe11   :  { %5630 = vrot.lane.b32.xlu1 %v11238_v4, %s9995_s0 }
 0xe12   :  { %5858 = vrot.lane.b32.xlu0 %v11228_v21, %s9992_s18 }
 0xe15   :  { %5782 = vrot.lane.b32.xlu1 %v11248_v28, %s9995_s0 }
 0xe16   :  { %5706 = vrot.lane.b32.xlu0 %v11252_v48, %s9995_s0 }
 0xe19   :  { %5938 = vrot.lane.b32.xlu1 %v11224_v19, %s9993_s19 }
 0xe1d   :  { %5936 = vrot.lane.b32.xlu1 %v11224_v19, %s9992_s18 }
 0xe5a   :  { %v4625_v33 = vpop.permute.xlu1 %4624 }
 0xe5b   :  { %9035 = vmatpush3.xpose.msk.msra.mxu1 %vm764_vm3, %v4625_v33  ;;  %v4548_v16 = vpop.permute.xlu0 %4547 }
 0xe5c   :  { %9030 = vmatpush3.xpose.msk.msra.mxu0 %vm764_vm3, %v4548_v16  ;;  %9044 = vmatprep.subr.mxu1 %v9990_v55 }
 0xe5d   :  { %9039 = vmatprep.subr.mxu0 %v9990_v55 }
 0xe5e   :  { %9037 = vmatmul.mubr.msk.f32.vlgmr.msra.gmra.mrb[60].mxu1 %vm764_vm3, %v11224_v19 }
 0xe5f   :  { %9032 = vmatmul.mubr.msk.f32.vlgmr.msra.gmra.mrb[68].mxu0 %vm764_vm3, %v11228_v21  ;;  %9046 = vmatprep.mubr.msk.f32.mxu1 %vm9989_vm2, %v9990_v55 }
 0xe60   :  { %9041 = vmatprep.mubr.msk.f32.mxu0 %vm9989_vm2, %v9990_v55 }
 0xe66   :  { %v4702_v62 = vpop.permute.xlu1 %4701 }
 0xe67   :  { %9040 = vmatpush3.xpose.msk.msra.mxu0 %vm764_vm3, %v4702_v62 }
 0xe68   :  { %9049 = vmatprep.subr.mxu0 %v9990_v55 }
 0xe6a   :  { %v4779_v49 = vpop.permute.xlu1 %4778  ;;  %9042 = vmatmul.mubr.msk.f32.vlgmr.msra.gmra.mrb[70].mxu0 %vm764_vm3, %v11234_v22 }
 0xe6b   :  { %9045 = vmatpush3.xpose.msk.msra.mxu1 %vm764_vm3, %v4779_v49  ;;  %v4856_v50 = vpop.permute.xlu0 %4855  ;;  %9051 = vmatprep.mubr.msk.f32.mxu0 %vm9989_vm2, %v9990_v55 }
 0xe6c   :  { %9050 = vmatpush3.xpose.msk.msra.mxu0 %vm764_vm3, %v4856_v50  ;;  %9054 = vmatprep.subr.mxu1 %v9990_v55 }
 0xe6d   :  { %9059 = vmatprep.subr.mxu0 %v9990_v55 }
 0xe6e   :  { %9047 = vmatmul.mubr.msk.f32.vlgmr.msra.gmra.mrb[62].mxu1 %vm764_vm3, %v11232_v0  ;;  %v4933_v44 = vpop.permute.xlu1 %4932 }
 0xe6f   :  { %9052 = vmatmul.mubr.msk.f32.vlgmr.msra.gmra.mrb[72].mxu0 %vm764_vm3, %v11242_v15  ;;  %9055 = vmatpush3.xpose.msk.msra.mxu1 %vm764_vm3, %v4933_v44 }
 0xe70   :  { %9056 = vmatprep.mubr.msk.f32.mxu1 %vm9989_vm2, %v9990_v55  ;;  %9064 = vmatprep.subr.mxu1 %v9990_v55 }
 0xe71   :  { %9061 = vmatprep.mubr.msk.f32.mxu0 %vm9989_vm2, %v9990_v55 }
 0xe72   :  { %9057 = vmatmul.mubr.msk.f32.vlgmr.msra.gmra.mrb[64].mxu1 %vm764_vm3, %v11238_v4 }
 0xe73   :  { %v5087_v20 = vpop.permute.xlu1 %5086  ;;  %9066 = vmatprep.mubr.msk.f32.mxu1 %vm9989_vm2, %v9990_v55 }
 0xe74   :  { %9065 = vmatpush3.xpose.msk.msra.mxu1 %vm764_vm3, %v5087_v20  ;;  %v5010_v11 = vpop.permute.xlu0 %5009 }
 0xe75   :  { %9060 = vmatpush3.xpose.msk.msra.mxu0 %vm764_vm3, %v5010_v11  ;;  %9074 = vmatprep.subr.mxu1 %v9990_v55 }
 0xe76   :  { %9069 = vmatprep.subr.mxu0 %v9990_v55 }
 0xe77   :  { %9067 = vmatmul.mubr.msk.f32.vlgmr.msra.gmra.mrb[66].mxu1 %vm764_vm3, %v11248_v28  ;;  %v5327_v41 = vpop.permute.xlu1 %5326 }
 0xe78   :  { %9062 = vmatmul.mubr.msk.f32.vlgmr.msra.gmra.mrb[74].mxu0 %vm764_vm3, %v11252_v48  ;;  %9075 = vmatpush3.msra.mxu1 %v5327_v41  ;;  %v5251_v35 = vpop.permute.xlu0 %5250 }
 0xe79   :  { %9070 = vmatpush3.msra.mxu0 %v5251_v35  ;;  %9076 = vmatprep.mubr.msk.f32.mxu1 %vm9989_vm2, %v9990_v55 }
 0xe7a   :  { %9084 = vmatprep.subr.mxu1 %v9990_v55  ;;  %9071 = vmatprep.mubr.msk.f32.mxu0 %vm9989_vm2, %v9990_v55 }
 0xe7b   :  { %9079 = vmatprep.subr.mxu0 %v9990_v55  ;;  %v11348_v53 = vpop.permute.xlu1 %5402 }
 0xe7c   :  { %v11354_v42 = vpop.permute.xlu0 %5554 }
 0xe7f   :  { %v11350_v8 = vpop.permute.xlu1 %5478 }
 0xe80   :  { %v11358_v63 = vpop.permute.xlu0 %5860 }
 0xe83   :  { %v11352_v43 = vpop.permute.xlu1 %5630 }
 0xe84   :  { %v11362_v12 = vpop.permute.xlu0 %5858 }
 0xe87   :  { %v11356_v61 = vpop.permute.xlu1 %5782 }
 0xe88   :  { %v11366_v14 = vpop.permute.xlu0 %5706 }
 0xe8b   :  { %v11360_v30 = vpop.permute.xlu1 %5938 }
 0xe8f   :  { %v11364_v6 = vpop.permute.xlu1 %5936 }
 0xf31   :  { %v4696_v3 = vpop.f32.mrb[60].mxu1 }
 0xf32   :  { %v4619_v38 = vpop.f32.mrb[68].mxu0  ;;  %v9038_v40 = vpop.f32.mrb[61].mxu1  ;;  %v5165_v45 = vsel %vm185_vm1, %v4696_v3, -inf }
 0xf33   :  { %5166 = vmax.xlane.f32.xlu1 %v5165_v45  ;;  %v9033_v24 = vpop.f32.mrb[69].mxu0  ;;  %v5162_v54 = vsel %vm185_vm1, %v4619_v38, -inf }
 0xf34   :  { %5163 = vmax.xlane.f32.xlu0 %v5162_v54 }
 0xf3d   :  { %v4773_v57 = vpop.f32.mrb[70].mxu0 }
 0xf3e   :  { %v9043_v60 = vpop.f32.mrb[71].mxu0  ;;  %v5168_v32 = vsel %vm185_vm1, %v4773_v57, -inf }
 0xf41   :  { %v4850_v1 = vpop.f32.mrb[62].mxu1 }
 0xf42   :  { %v9048_v34 = vpop.f32.mrb[63].mxu1  ;;  %v4927_v23 = vpop.f32.mrb[72].mxu0  ;;  %v5171_v58 = vsel %vm185_vm1, %v4850_v1, -inf }
 0xf43   :  { %5172 = vmax.xlane.f32.xlu0 %v5171_v58  ;;  %v9053_v9 = vpop.f32.mrb[73].mxu0  ;;  %v5174_v36 = vsel %vm185_vm1, %v4927_v23, -inf }
 0xf45   :  { %v5004_v37 = vpop.f32.mrb[64].mxu1 }
 0xf46   :  { %v9058_v39 = vpop.f32.mrb[65].mxu1  ;;  %v5177_v59 = vsel %vm185_vm1, %v5004_v37, -inf }
 0xf47   :  { %5178 = vmax.xlane.f32.xlu1 %v5177_v59  ;;  %5169 = vmax.xlane.f32.xlu0 %v5168_v32 }
 0xf4a   :  { %v11335_v10 = vpop.f32.mrb[66].mxu1 }
 0xf4b   :  { %v11337_v17 = vpop.f32.mrb[74].mxu0  ;;  %v9068_v18 = vpop.f32.mrb[67].mxu1  ;;  %v5183_v27 = vsel %vm185_vm1, %v11335_v10, -inf  ;;  %5175 = vmax.xlane.f32.xlu0 %v5174_v36 }
 0xf4c   :  { %5184 = vmax.xlane.f32.xlu1 %v5183_v27  ;;  %v9063_v46 = vpop.f32.mrb[75].mxu0  ;;  %v5180_v13 = vsel %vm185_vm1, %v11337_v17, -inf }
 0xf4f   :  { %5181 = vmax.xlane.f32.xlu0 %v5180_v13 }
 0xf5d   :  { %6094 = vrot.lane.b32.xlu1 %v11232_v0, %s9993_s19 }
 0xf65   :  { %6016 = vrot.lane.b32.xlu0 %v11234_v22, %s9993_s19 }
 0xfc0   :  { %v5167_v29 = vpop.xlane.xlu1 %5166 }
 0xfc1   :  { %v5187_v31 = vsub.f32 %v4696_v3, %v5167_v29  ;;  %v5164_v52 = vpop.xlane.xlu0 %5163 }
 0xfc2   :  { %v5186_v33 = vsub.f32 %v4619_v38, %v5164_v52 }
 0xfc3   :  { %v5196_v16 = vmul.f32 1.442695, %v5187_v31 }
 0xfc4   :  { %v5194_v62 = vmul.f32 1.442695, %v5186_v33 }
 0xfc5   :  { %9833 = vpow2.f32 %v5196_v16 }
 0xfc6   :  { %9835 = vpow2.f32 %v5194_v62 }
 0xfcf   :  { %v11368_v50 = vpop.eup %9833 }
 0xfd0   :  { %v5173_v49 = vpop.xlane.xlu0 %5172  ;;  %v11370_v20 = vpop.eup %9835  ;;  %v5213_v11 = vsel %vm185_vm1, %v11368_v50, 0.0 }
 0xfd1   :  { %v5189_v44 = vsub.f32 %v4850_v1, %v5173_v49  ;;  %5214 = vadd.xlane.f32.xlu1 %v5213_v11  ;;  %v5210_v35 = vsel %vm185_vm1, %v11370_v20, 0.0 }
 0xfd2   :  { %5211 = vadd.xlane.f32.xlu0 %v5210_v35 }
 0xfd3   :  { %v5200_v41 = vmul.f32 1.442695, %v5189_v44 }
 0xfd4   :  { %v5179_v3 = vpop.xlane.xlu1 %5178  ;;  %v5170_v38 = vpop.xlane.xlu0 %5169 }
 0xfd5   :  { %9837 = vpow2.f32 %v5200_v41  ;;  %v5191_v40 = vsub.f32 %v5004_v37, %v5179_v3  ;;  %v5188_v45 = vsub.f32 %v4773_v57, %v5170_v38 }
 0xfd7   :  { %v5204_v24 = vmul.f32 1.442695, %v5191_v40  ;;  %v5198_v54 = vmul.f32 1.442695, %v5188_v45 }
 0xfd8   :  { %v5176_v60 = vpop.xlane.xlu0 %5175 }
 0xfd9   :  { %9839 = vpow2.f32 %v5204_v24  ;;  %v5190_v1 = vsub.f32 %v4927_v23, %v5176_v60  ;;  %v5185_v18 = vpop.xlane.xlu1 %5184 }
 0xfda   :  { %9841 = vpow2.f32 %v5198_v54  ;;  %v5193_v27 = vsub.f32 %v11335_v10, %v5185_v18 }
 0xfdb   :  { %v5202_v34 = vmul.f32 1.442695, %v5190_v1 }
 0xfdc   :  { %v5182_v36 = vpop.xlane.xlu0 %5181  ;;  %v5208_v46 = vmul.f32 1.442695, %v5193_v27 }
 0xfdd   :  { %9843 = vpow2.f32 %v5202_v34  ;;  %v5192_v13 = vsub.f32 %v11337_v17, %v5182_v36  ;;  %v11422_v10 = vpop.permute.xlu1 %6094 }
 0xfde   :  { %9845 = vpow2.f32 %v5208_v46 }
 0xfdf   :  { %v11376_v58 = vpop.eup %9837  ;;  %v5206_v29 = vmul.f32 1.442695, %v5192_v13 }
 0xfe0   :  { %v5219_v9 = vsel %vm185_vm1, %v11376_v58, 0.0  ;;  %v11424_v17 = vpop.permute.xlu0 %6016 }
 0xfe1   :  { %5220 = vadd.xlane.f32.xlu1 %v5219_v9  ;;  %9847 = vpow2.f32 %v5206_v29 }
 0xfe3   :  { %v11380_v39 = vpop.eup %9839 }
 0xfe4   :  { %v11382_v59 = vpop.eup %9841  ;;  %v5225_v57 = vsel %vm185_vm1, %v11380_v39, 0.0 }
 0xfe5   :  { %5226 = vadd.xlane.f32.xlu1 %v5225_v57  ;;  %v5216_v23 = vsel %vm185_vm1, %v11382_v59, 0.0 }
 0xfe6   :  { %5217 = vadd.xlane.f32.xlu0 %v5216_v23 }
 0xfe7   :  { %v11388_v37 = vpop.eup %9843 }
 0xfe8   :  { %v5222_v32 = vsel %vm185_vm1, %v11388_v37, 0.0  ;;  %v11398_v31 = vpop.eup %9845 }
 0xfe9   :  { %v5231_v52 = vsel %vm185_vm1, %v11398_v31, 0.0 }
 0xfea   :  { %5223 = vadd.xlane.f32.xlu0 %v5222_v32 }
 0xfeb   :  { %v11402_v33 = vpop.eup %9847 }
 0xfec   :  { %v5228_v16 = vsel %vm185_vm1, %v11402_v33, 0.0 }
 0xff6   :  { %6092 = vrot.lane.b32.xlu1 %v11232_v0, %s9992_s18 }
0x1000   :  { %6014 = vrot.lane.b32.xlu0 %v11234_v22, %s9992_s18 }
0x101a   :  { %5232 = vadd.xlane.f32.xlu1 %v5231_v52 }
0x101f   :  { %5229 = vadd.xlane.f32.xlu0 %v5228_v16 }
0x102b   :  { %6250 = vrot.lane.b32.xlu1 %v11238_v4, %s9993_s19 }
0x102f   :  { %6248 = vrot.lane.b32.xlu1 %v11238_v4, %s9992_s18 }
0x1033   :  { %6406 = vrot.lane.b32.xlu1 %v11248_v28, %s9993_s19 }
0x1035   :  { %6172 = vrot.lane.b32.xlu0 %v11242_v15, %s9993_s19 }
0x1037   :  { %6404 = vrot.lane.b32.xlu1 %v11248_v28, %s9992_s18 }
0x1039   :  { %6170 = vrot.lane.b32.xlu0 %v11242_v15, %s9992_s18 }
0x103d   :  { %6328 = vrot.lane.b32.xlu0 %v11252_v48, %s9993_s19 }
0x1041   :  { %6326 = vrot.lane.b32.xlu0 %v11252_v48, %s9992_s18 }
0x105e   :  { %v5215_v62 = vpop.xlane.xlu1 %5214 }
0x105f   :  { %9849 = vrcp.f32 %v5215_v62  ;;  %v5212_v49 = vpop.xlane.xlu0 %5211 }
0x1060   :  { %9851 = vrcp.f32 %v5212_v49 }
0x1069   :  { %v9850_v44 = vpop.eup %9849 }
0x106a   :  { %v9852_v11 = vpop.eup %9851  ;;  %v5243_v41 = vmul.f32 %v9850_v44, %v11368_v50 }
0x106b   :  { %v5242_v35 = vmul.f32 %v9852_v11, %v11370_v20 }
0x106c   :  { %9077 = vmatmul.mubr.msk.f32.vlgmr.msra.gmra.mrb[68].mxu1 %vm185_vm1, %v5243_v41 }
0x106d   :  { %9085 = vmatpush3.msra.mxu1 %v11350_v8  ;;  %9072 = vmatmul.mubr.msk.f32.vlgmr.msra.gmra.mrb[76].mxu0 %vm185_vm1, %v5242_v35 }
0x106e   :  { %v5221_v3 = vpop.xlane.xlu1 %5220  ;;  %9080 = vmatpush3.msra.mxu0 %v11348_v53  ;;  %9086 = vmatprep.mubr.msk.f32.mxu1 %vm9989_vm2, %v9990_v55 }
0x106f   :  { %9853 = vrcp.f32 %v5221_v3  ;;  %9094 = vmatprep.subr.mxu1 %v9990_v55  ;;  %9081 = vmatprep.mubr.msk.f32.mxu0 %vm9989_vm2, %v9990_v55 }
0x1070   :  { %9089 = vmatprep.subr.mxu0 %v9990_v55 }
0x1072   :  { %v5227_v50 = vpop.xlane.xlu1 %5226 }
0x1073   :  { %9855 = vrcp.f32 %v5227_v50  ;;  %v5218_v20 = vpop.xlane.xlu0 %5217 }
0x1074   :  { %9857 = vrcp.f32 %v5218_v20 }
0x1077   :  { %v5224_v8 = vpop.xlane.xlu0 %5223 }
0x1078   :  { %9859 = vrcp.f32 %v5224_v8 }
0x1079   :  { %v9854_v38 = vpop.eup %9853 }
0x107a   :  { %v5245_v40 = vmul.f32 %v9854_v38, %v11376_v58 }
0x107b   :  { %v6015_v1 = vpop.permute.xlu0 %6014 }
0x107c   :  { %9087 = vmatmul.mubr.msk.f32.vlgmr.msra.gmra.mrb[70].mxu1 %vm185_vm1, %v5245_v40 }
0x107d   :  { %v9856_v53 = vpop.eup %9855  ;;  %9095 = vmatpush3.msra.mxu1 %v11352_v43  ;;  %9096 = vmatprep.mubr.msk.f32.mxu1 %vm9989_vm2, %v9990_v55 }
0x107e   :  { %v9858_v45 = vpop.eup %9857  ;;  %v5247_v24 = vmul.f32 %v9856_v53, %v11380_v39  ;;  %9104 = vmatprep.subr.mxu1 %v9990_v55 }
0x107f   :  { %v5244_v54 = vmul.f32 %v9858_v45, %v11382_v59 }
0x1080   :  { %9097 = vmatmul.mubr.msk.f32.vlgmr.msra.gmra.mrb[72].mxu1 %vm185_vm1, %v5247_v24 }
0x1081   :  { %9082 = vmatmul.mubr.msk.f32.vlgmr.msra.gmra.mrb[78].mxu0 %vm185_vm1, %v5244_v54  ;;  %9105 = vmatpush3.msra.mxu1 %v11356_v61 }
0x1082   :  { %v9860_v60 = vpop.eup %9859  ;;  %9090 = vmatpush3.msra.mxu0 %v11354_v42  ;;  %9091 = vmatprep.mubr.msk.f32.mxu0 %vm9989_vm2, %v9990_v55  ;;  %v6093_v42 = vpop.permute.xlu1 %6092 }
0x1083   :  { %v5246_v43 = vmul.f32 %v9860_v60, %v11388_v37  ;;  %9099 = vmatprep.subr.mxu0 %v9990_v55  ;;  %9106 = vmatprep.mubr.msk.f32.mxu1 %vm9989_vm2, %v9990_v55 }
0x1084   :  { %9114 = vmatprep.subr.mxu1 %v9990_v55 }
0x1085   :  { %9092 = vmatmul.mubr.msk.f32.vlgmr.msra.gmra.mrb[80].mxu0 %vm185_vm1, %v5246_v43 }
0x1086   :  { %9100 = vmatpush3.msra.mxu0 %v11366_v14  ;;  %9101 = vmatprep.mubr.msk.f32.mxu0 %vm9989_vm2, %v9990_v55 }
0x1087   :  { %9109 = vmatprep.subr.mxu0 %v9990_v55 }
0x10a7   :  { %v5233_v61 = vpop.xlane.xlu1 %5232 }
0x10a8   :  { %9861 = vrcp.f32 %v5233_v61 }
0x10ab   :  { %v6251_v9 = vpop.permute.xlu1 %6250 }
0x10ac   :  { %v5230_v34 = vpop.xlane.xlu0 %5229 }
0x10ad   :  { %9863 = vrcp.f32 %v5230_v34 }
0x10af   :  { %v6249_v23 = vpop.permute.xlu1 %6248 }
0x10b0   :  { %v6173_v59 = vpop.permute.xlu0 %6172 }
0x10b2   :  { %v9862_v58 = vpop.eup %9861 }
0x10b3   :  { %v5249_v39 = vmul.f32 %v9862_v58, %v11398_v31 }
0x10b5   :  { %9107 = vmatmul.mubr.msk.f32.vlgmr.msra.gmra.mrb[74].mxu1 %vm185_vm1, %v5249_v39 }
0x10b6   :  { %9115 = vmatpush3.xpose.msk.msra.mxu1 %vm764_vm3, %v11360_v30  ;;  %9116 = vmatprep.mubr.msk.f32.mxu1 %vm9989_vm2, %v9990_v55  ;;  %v6171_v30 = vpop.permute.xlu0 %6170 }
0x10b7   :  { %v9864_v14 = vpop.eup %9863  ;;  %9124 = vmatprep.subr.mxu1 %v9990_v55 }
0x10b8   :  { %v5248_v57 = vmul.f32 %v9864_v14, %v11402_v33 }
0x10b9   :  { %9117 = vmatmul.mubr.msk.f32.vlgmr.msra.gmra.mrb[76].mxu1 %vm764_vm3, %v11364_v6  ;;  %v6407_v6 = vpop.permute.xlu1 %6406 }
0x10ba   :  { %9102 = vmatmul.mubr.msk.f32.vlgmr.msra.gmra.mrb[82].mxu0 %vm185_vm1, %v5248_v57  ;;  %9125 = vmatpush3.xpose.msk.msra.mxu1 %vm764_vm3, %v11422_v10 }
0x10bb   :  { %9110 = vmatpush3.xpose.msk.msra.mxu0 %vm764_vm3, %v11358_v63  ;;  %9111 = vmatprep.mubr.msk.f32.mxu0 %vm9989_vm2, %v9990_v55  ;;  %v6329_v63 = vpop.permute.xlu0 %6328 }
0x10bc   :  { %9119 = vmatprep.subr.mxu0 %v9990_v55  ;;  %9126 = vmatprep.mubr.msk.f32.mxu1 %vm9989_vm2, %v9990_v55 }
0x10bd   :  { %9134 = vmatprep.subr.mxu1 %v9990_v55  ;;  %9127 = vmatmul.mubr.msk.f32.vlgmr.msra.gmra.mrb[78].mxu1 %vm764_vm3, %v6093_v42 }
0x10be   :  { %9112 = vmatmul.mubr.msk.f32.vlgmr.msra.gmra.mrb[84].mxu0 %vm764_vm3, %v11362_v12  ;;  %9135 = vmatpush3.xpose.msk.msra.mxu1 %vm764_vm3, %v6251_v9  ;;  %v6405_v12 = vpop.permute.xlu1 %6404 }
0x10bf   :  { %9120 = vmatpush3.xpose.msk.msra.mxu0 %vm764_vm3, %v11424_v17  ;;  %9121 = vmatprep.mubr.msk.f32.mxu0 %vm9989_vm2, %v9990_v55  ;;  %v6327_v37 = vpop.permute.xlu0 %6326 }
0x10c0   :  { %9129 = vmatprep.subr.mxu0 %v9990_v55  ;;  %9136 = vmatprep.mubr.msk.f32.mxu1 %vm9989_vm2, %v9990_v55 }
0x10c1   :  { %9144 = vmatprep.subr.mxu1 %v9990_v55  ;;  %9137 = vmatmul.mubr.msk.f32.vlgmr.msra.gmra.mrb[80].mxu1 %vm764_vm3, %v6249_v23 }
0x10c2   :  { %9122 = vmatmul.mubr.msk.f32.vlgmr.msra.gmra.mrb[86].mxu0 %vm764_vm3, %v6015_v1  ;;  %9145 = vmatpush3.xpose.msk.msra.mxu1 %vm764_vm3, %v6407_v6 }
0x10c3   :  { %9130 = vmatpush3.xpose.msk.msra.mxu0 %vm764_vm3, %v6173_v59  ;;  %9131 = vmatprep.mubr.msk.f32.mxu0 %vm9989_vm2, %v9990_v55 }
0x10c4   :  { %9139 = vmatprep.subr.mxu0 %v9990_v55  ;;  %9146 = vmatprep.mubr.msk.f32.mxu1 %vm9989_vm2, %v9990_v55 }
0x10c5   :  { %9147 = vmatmul.mubr.msk.f32.vlgmr.msra.gmra.mrb[82].mxu1 %vm764_vm3, %v6405_v12  ;;  %9154 = vmatprep.subr.mxu1 %v9990_v55 }
0x10c6   :  { %9132 = vmatmul.mubr.msk.f32.vlgmr.msra.gmra.mrb[88].mxu0 %vm764_vm3, %v6171_v30  ;;  %9156 = vmatprep.mubr.msk.f32.mxu1 %vm9989_vm2, %v9990_v55 }
0x10c7   :  { %9140 = vmatpush3.xpose.msk.msra.mxu0 %vm764_vm3, %v6329_v63  ;;  %9141 = vmatprep.mubr.msk.f32.mxu0 %vm9989_vm2, %v9990_v55 }
0x10c8   :  { %9149 = vmatprep.subr.mxu0 %v9990_v55 }
0x10ca   :  { %9142 = vmatmul.mubr.msk.f32.vlgmr.msra.gmra.mrb[90].mxu0 %vm764_vm3, %v6327_v37 }
0x10cb   :  { %9151 = vmatprep.mubr.msk.f32.mxu0 %vm9989_vm2, %v9990_v55 }
0x113f   :  { %v11516_v32 = vpop.f32.mrb[68].mxu1 }
0x1140   :  { %v11518_v18 = vpop.f32.mrb[76].mxu0  ;;  %v9078_v27 = vpop.f32.mrb[69].mxu1 }
0x1141   :  { %v9073_v36 = vpop.f32.mrb[77].mxu0 }
0x114f   :  { %v11520_v46 = vpop.f32.mrb[70].mxu1 }
0x1150   :  { %v9088_v13 = vpop.f32.mrb[71].mxu1 }
0x1153   :  { %v11522_v29 = vpop.f32.mrb[72].mxu1 }
0x1154   :  { %v11524_v31 = vpop.f32.mrb[78].mxu0  ;;  %v9098_v52 = vpop.f32.mrb[73].mxu1 }
0x1155   :  { %v9083_v33 = vpop.f32.mrb[79].mxu0 }
0x1158   :  { %v11526_v16 = vpop.f32.mrb[80].mxu0 }
0x1159   :  { %v9093_v10 = vpop.f32.mrb[81].mxu0 }
0x1188   :  { %v11528_v17 = vpop.f32.mrb[74].mxu1 }
0x1189   :  { %v9108_v62 = vpop.f32.mrb[75].mxu1 }
0x118c   :  { %v6010_v49 = vpop.f32.mrb[76].mxu1 }
0x118d   :  { %v11530_v44 = vpop.f32.mrb[82].mxu0  ;;  %v9118_v11 = vpop.f32.mrb[77].mxu1  ;;  %v6485_v41 = vsel %vm185_vm1, %v6010_v49, -inf }
0x118e   :  { %v9103_v35 = vpop.f32.mrb[83].mxu0  ;;  %6486 = vmax.xlane.f32.xlu1 %v6485_v41 }
0x1190   :  { %v6166_v3 = vpop.f32.mrb[78].mxu1 }
0x1191   :  { %v5932_v50 = vpop.f32.mrb[84].mxu0  ;;  %v9128_v20 = vpop.f32.mrb[79].mxu1  ;;  %v6491_v60 = vsel %vm185_vm1, %v6166_v3, -inf }
0x1192   :  { %v9113_v8 = vpop.f32.mrb[85].mxu0  ;;  %v6482_v38 = vsel %vm185_vm1, %v5932_v50, -inf }
0x1193   :  { %6483 = vmax.xlane.f32.xlu0 %v6482_v38 }
0x1194   :  { %v6322_v40 = vpop.f32.mrb[80].mxu1 }
0x1195   :  { %v6088_v53 = vpop.f32.mrb[86].mxu0  ;;  %v9138_v45 = vpop.f32.mrb[81].mxu1  ;;  %v6497_v24 = vsel %vm185_vm1, %v6322_v40, -inf }
0x1196   :  { %v9123_v54 = vpop.f32.mrb[87].mxu0  ;;  %6498 = vmax.xlane.f32.xlu1 %v6497_v24  ;;  %v6488_v58 = vsel %vm185_vm1, %v6088_v53, -inf }
0x1197   :  { %6492 = vmax.xlane.f32.xlu0 %v6491_v60 }
0x1198   :  { %v6478_v43 = vpop.f32.mrb[82].mxu1 }
0x1199   :  { %v6244_v42 = vpop.f32.mrb[88].mxu0  ;;  %v9148_v61 = vpop.f32.mrb[83].mxu1  ;;  %v6503_v1 = vsel %vm185_vm1, %v6478_v43, -inf }
0x119a   :  { %v9133_v34 = vpop.f32.mrb[89].mxu0  ;;  %6504 = vmax.xlane.f32.xlu1 %v6503_v1  ;;  %v6494_v14 = vsel %vm185_vm1, %v6244_v42, -inf }
0x119b   :  { %6489 = vmax.xlane.f32.xlu0 %v6488_v58 }
0x119d   :  { %v6400_v9 = vpop.f32.mrb[90].mxu0 }
0x119e   :  { %v9143_v39 = vpop.f32.mrb[91].mxu0  ;;  %v6500_v59 = vsel %vm185_vm1, %v6400_v9, -inf }
0x119f   :  { %6495 = vmax.xlane.f32.xlu0 %v6494_v14 }
0x11a3   :  { %6501 = vmax.xlane.f32.xlu0 %v6500_v59 }
0x11ab   :  { %6646 = vrot.lane.b32.xlu1 %v11224_v19, %s9996_s9 }
0x11af   :  { %6722 = vrot.lane.b32.xlu1 %v11234_v22, %s9996_s9 }
0x11b3   :  { %6798 = vrot.lane.b32.xlu1 %v11232_v0, %s9996_s9 }
0x11b7   :  { %6950 = vrot.lane.b32.xlu1 %v11238_v4, %s9996_s9 }
0x11b9   :  { %6570 = vrot.lane.b32.xlu0 %v11228_v21, %s9996_s9 }
0x11bd   :  { %6874 = vrot.lane.b32.xlu0 %v11242_v15, %s9996_s9 }
0x121b   :  { %v6487_v57 = vpop.xlane.xlu1 %6486 }
0x121c   :  { %v6507_v23 = vsub.f32 %v6010_v49, %v6487_v57 }
0x121e   :  { %v6516_v30 = vmul.f32 1.442695, %v6507_v23 }
0x1220   :  { %9865 = vpow2.f32 %v6516_v30  ;;  %v6484_v19 = vpop.xlane.xlu0 %6483 }
0x1221   :  { %v6506_v6 = vsub.f32 %v5932_v50, %v6484_v19 }
0x1223   :  { %v6514_v63 = vmul.f32 1.442695, %v6506_v6  ;;  %v6499_v22 = vpop.xlane.xlu1 %6498 }
0x1224   :  { %v6511_v12 = vsub.f32 %v6322_v40, %v6499_v22  ;;  %v6493_v37 = vpop.xlane.xlu0 %6492 }
0x1225   :  { %9867 = vpow2.f32 %v6514_v63  ;;  %v6509_v0 = vsub.f32 %v6166_v3, %v6493_v37 }
0x1226   :  { %v6524_v27 = vmul.f32 1.442695, %v6511_v12 }
0x1227   :  { %v6520_v4 = vmul.f32 1.442695, %v6509_v0  ;;  %v6505_v36 = vpop.xlane.xlu1 %6504 }
0x1228   :  { %v6513_v13 = vsub.f32 %v6478_v43, %v6505_v36  ;;  %v6490_v21 = vpop.xlane.xlu0 %6489 }
0x1229   :  { %9869 = vpow2.f32 %v6520_v4  ;;  %v6508_v52 = vsub.f32 %v6088_v53, %v6490_v21 }
0x122a   :  { %v9866_v15 = vpop.eup %9865  ;;  %9871 = vpow2.f32 %v6524_v27  ;;  %v6528_v33 = vmul.f32 1.442695, %v6513_v13 }
0x122b   :  { %v6518_v10 = vmul.f32 1.442695, %v6508_v52  ;;  %v6647_v62 = vpop.permute.xlu1 %6646  ;;  %v6533_v49 = vsel %vm185_vm1, %v9866_v15, 0.0 }
0x122c   :  { %v6496_v11 = vpop.xlane.xlu0 %6495  ;;  %6534 = vadd.xlane.f32.xlu1 %v6533_v49  ;;  %9155 = vmatpush3.msra.mxu1 %v6647_v62 }
0x122d   :  { %9873 = vpow2.f32 %v6518_v10  ;;  %v6510_v41 = vsub.f32 %v6244_v42, %v6496_v11  ;;  %9164 = vmatprep.subr.mxu1 %v9990_v55 }
0x122e   :  { %9875 = vpow2.f32 %v6528_v33 }
0x122f   :  { %v9868_v35 = vpop.eup %9867  ;;  %v6522_v3 = vmul.f32 1.442695, %v6510_v41  ;;  %v6723_v39 = vpop.permute.xlu1 %6722 }
0x1230   :  { %v6502_v50 = vpop.xlane.xlu0 %6501  ;;  %v6530_v20 = vsel %vm185_vm1, %v9868_v35, 0.0 }
0x1231   :  { %9877 = vpow2.f32 %v6522_v3  ;;  %v6512_v8 = vsub.f32 %v6400_v9, %v6502_v50  ;;  %6531 = vadd.xlane.f32.xlu0 %v6530_v20  ;;  %v7218_v50 = vld [vmem:[#allocation2 + $0x188] sm:$0xff]  ;;  %v7219_v20 = vld [vmem:[#allocation2 + $0x190] sm:$0xff] }
0x1233   :  { %v9870_v38 = vpop.eup %9869  ;;  %v6526_v40 = vmul.f32 1.442695, %v6512_v8  ;;  %v6799_v14 = vpop.permute.xlu1 %6798  ;;  %v9477_v8 = vpack.c.bf16 %v7219_v20, %v7218_v50 }
0x1234   :  { %v6571_v53 = vpop.permute.xlu0 %6570  ;;  %v6539_v45 = vsel %vm185_vm1, %v9870_v38, 0.0  ;;  %v9872_v24 = vpop.eup %9871 }
0x1235   :  { %9879 = vpow2.f32 %v6526_v40  ;;  %6540 = vadd.xlane.f32.xlu1 %v6539_v45  ;;  %9150 = vmatpush3.msra.mxu0 %v6571_v53  ;;  %v6545_v60 = vsel %vm185_vm1, %v9872_v24, 0.0  ;;  %v7221_v40 = vld [vmem:[#allocation2 + $0x1a0] sm:$0xff] }
0x1236   :  { %9159 = vmatprep.subr.mxu0 %v9990_v55 }
0x1237   :  { %v9874_v54 = vpop.eup %9873  ;;  %v6951_v59 = vpop.permute.xlu1 %6950 }
0x1238   :  { %v6536_v43 = vsel %vm185_vm1, %v9874_v54, 0.0  ;;  %v9876_v42 = vpop.eup %9875  ;;  %v6875_v23 = vpop.permute.xlu0 %6874 }
0x1239   :  { %6546 = vadd.xlane.f32.xlu1 %v6545_v60  ;;  %6537 = vadd.xlane.f32.xlu0 %v6536_v43  ;;  %v6551_v1 = vsel %vm185_vm1, %v9876_v42, 0.0 }
0x123b   :  { %v9878_v61 = vpop.eup %9877 }
0x123c   :  { %v6542_v34 = vsel %vm185_vm1, %v9878_v61, 0.0 }
0x123d   :  { %6552 = vadd.xlane.f32.xlu1 %v6551_v1  ;;  %6543 = vadd.xlane.f32.xlu0 %v6542_v34 }
0x123f   :  { %v11561_v58 = vpop.eup %9879 }
0x1240   :  { %v6548_v9 = vsel %vm185_vm1, %v11561_v58, 0.0 }
0x1241   :  { %6549 = vadd.xlane.f32.xlu0 %v6548_v9 }
0x124e   :  { %7102 = vrot.lane.b32.xlu1 %v11248_v28, %s9996_s9 }
0x1257   :  { %7026 = vrot.lane.b32.xlu0 %v11252_v48, %s9996_s9 }
0x12b9   :  { %v6535_v57 = vpop.xlane.xlu1 %6534 }
0x12ba   :  { %9881 = vrcp.f32 %v6535_v57 }
0x12be   :  { %v6532_v30 = vpop.xlane.xlu0 %6531 }
0x12bf   :  { %9883 = vrcp.f32 %v6532_v30 }
0x12c2   :  { %v6541_v19 = vpop.xlane.xlu1 %6540 }
0x12c3   :  { %9885 = vrcp.f32 %v6541_v19 }
0x12c4   :  { %v9882_v6 = vpop.eup %9881 }
0x12c5   :  { %v6563_v63 = vmul.f32 %v9882_v6, %v9866_v15 }
0x12c6   :  { %v6547_v22 = vpop.xlane.xlu1 %6546  ;;  %v6538_v12 = vpop.xlane.xlu0 %6537 }
0x12c7   :  { %9887 = vrcp.f32 %v6547_v22  ;;  %9157 = vmatmul.mubr.msk.f32.vlgmr.msra.gmra.mrb[84].mxu1 %vm185_vm1, %v6563_v63 }
0x12c8   :  { %9889 = vrcp.f32 %v6538_v12  ;;  %9165 = vmatpush3.msra.mxu1 %v6799_v14  ;;  %9166 = vmatprep.mubr.msk.f32.mxu1 %vm9989_vm2, %v9990_v55 }
0x12c9   :  { %v9884_v28 = vpop.eup %9883  ;;  %9174 = vmatprep.subr.mxu1 %v9990_v55 }
0x12ca   :  { %v6562_v48 = vmul.f32 %v9884_v28, %v9868_v35  ;;  %v6553_v37 = vpop.xlane.xlu1 %6552  ;;  %v6544_v0 = vpop.xlane.xlu0 %6543 }
0x12cb   :  { %9891 = vrcp.f32 %v6553_v37 }
0x12cc   :  { %9893 = vrcp.f32 %v6544_v0  ;;  %9152 = vmatmul.mubr.msk.f32.vlgmr.msra.gmra.mrb[92].mxu0 %vm185_vm1, %v6562_v48 }
0x12cd   :  { %v9886_v27 = vpop.eup %9885  ;;  %9160 = vmatpush3.msra.mxu0 %v6723_v39  ;;  %9161 = vmatprep.mubr.msk.f32.mxu0 %vm9989_vm2, %v9990_v55 }
0x12ce   :  { %v6565_v4 = vmul.f32 %v9886_v27, %v9870_v38  ;;  %v6550_v36 = vpop.xlane.xlu0 %6549  ;;  %9169 = vmatprep.subr.mxu0 %v9990_v55  ;;  %v7103_v33 = vpop.permute.xlu1 %7102  ;;  %v7220_v38 = vld [vmem:[#allocation2 + $0x198] sm:$0xff] }
0x12cf   :  { %9895 = vrcp.f32 %v6550_v36  ;;  %v9481_v53 = vpack.c.bf16 %v7221_v40, %v7220_v38 }
0x12d0   :  { %9167 = vmatmul.mubr.msk.f32.vlgmr.msra.gmra.mrb[86].mxu1 %vm185_vm1, %v6565_v4 }
0x12d1   :  { %v9888_v13 = vpop.eup %9887  ;;  %9175 = vmatpush3.msra.mxu1 %v6951_v59  ;;  %9176 = vmatprep.mubr.msk.f32.mxu1 %vm9989_vm2, %v9990_v55 }
0x12d2   :  { %v9890_v21 = vpop.eup %9889  ;;  %v6567_v52 = vmul.f32 %v9888_v13, %v9872_v24  ;;  %9184 = vmatprep.subr.mxu1 %v9990_v55  ;;  %v7027_v35 = vpop.permute.xlu0 %7026 }
0x12d3   :  { %v6564_v15 = vmul.f32 %v9890_v21, %v9874_v54 }
0x12d4   :  { %9177 = vmatmul.mubr.msk.f32.vlgmr.msra.gmra.mrb[88].mxu1 %vm185_vm1, %v6567_v52 }
0x12d5   :  { %v9892_v10 = vpop.eup %9891  ;;  %9162 = vmatmul.mubr.msk.f32.vlgmr.msra.gmra.mrb[94].mxu0 %vm185_vm1, %v6564_v15  ;;  %9185 = vmatpush3.msra.mxu1 %v7103_v33 }
0x12d6   :  { %v9894_v62 = vpop.eup %9893  ;;  %v6569_v49 = vmul.f32 %v9892_v10, %v9876_v42  ;;  %9170 = vmatpush3.msra.mxu0 %v6875_v23  ;;  %9171 = vmatprep.mubr.msk.f32.mxu0 %vm9989_vm2, %v9990_v55 }
0x12d7   :  { %v6566_v11 = vmul.f32 %v9894_v62, %v9878_v61  ;;  %9179 = vmatprep.subr.mxu0 %v9990_v55  ;;  %9186 = vmatprep.mubr.msk.f32.mxu1 %vm9989_vm2, %v9990_v55 }
0x12d8   :  { %9187 = vmatmul.mubr.msk.f32.vlgmr.msra.gmra.mrb[90].mxu1 %vm185_vm1, %v6569_v49 }
0x12d9   :  { %v9896_v41 = vpop.eup %9895  ;;  %9172 = vmatmul.mubr.msk.f32.vlgmr.msra.gmra.mrb[96].mxu0 %vm185_vm1, %v6566_v11 }
0x12da   :  { %v6568_v3 = vmul.f32 %v9896_v41, %v11561_v58  ;;  %9180 = vmatpush3.msra.mxu0 %v7027_v35  ;;  %9181 = vmatprep.mubr.msk.f32.mxu0 %vm9989_vm2, %v9990_v55 }
0x12db   :  { %9478 = vmatprep.subr.bf16.mxu0 %v9477_v8 }
0x12dd   :  { %9182 = vmatmul.mubr.msk.f32.vlgmr.msra.gmra.mrb[98].mxu0 %vm185_vm1, %v6568_v3 }
0x12de   :  { %9480 = vmatpush3.bf16.msra.mxu0 %v9477_v8 }
0x12df   :  { %9482 = vmatprep.subr.bf16.mxu0 %v9481_v53 }
0x12e2   :  { %9484 = vmatpush3.bf16.msra.mxu0 %v9481_v53 }
0x139a   :  { %v6718_v45 = vpop.f32.mrb[84].mxu1 }
0x139b   :  { %v9158_v24 = vpop.f32.mrb[85].mxu1  ;;  %7188 = vrot.lane.b32.xlu1 %v6718_v45, %s9994_s20 }
0x139f   :  { %v6642_v54 = vpop.f32.mrb[92].mxu0 }
0x13a0   :  { %7186 = vrot.lane.b32.xlu0 %v6642_v54, %s9994_s20  ;;  %v9153_v55 = vpop.f32.mrb[93].mxu0 }
0x13a3   :  { %v6870_v60 = vpop.f32.mrb[86].mxu1 }
0x13a4   :  { %7192 = vrot.lane.b32.xlu1 %v6870_v60, %s9994_s20  ;;  %v9168_v43 = vpop.f32.mrb[87].mxu1 }
0x13a7   :  { %v7022_v42 = vpop.f32.mrb[88].mxu1 }
0x13a8   :  { %v6794_v61 = vpop.f32.mrb[94].mxu0  ;;  %7196 = vrot.lane.b32.xlu1 %v7022_v42, %s9994_s20  ;;  %v9178_v1 = vpop.f32.mrb[89].mxu1 }
0x13a9   :  { %7190 = vrot.lane.b32.xlu0 %v6794_v61, %s9994_s20  ;;  %v9163_v34 = vpop.f32.mrb[95].mxu0 }
0x13ab   :  { %v7174_v58 = vpop.f32.mrb[90].mxu1 }
0x13ac   :  { %v6946_v9 = vpop.f32.mrb[96].mxu0  ;;  %7200 = vrot.lane.b32.xlu1 %v7174_v58, %s9994_s20  ;;  %v9188_v39 = vpop.f32.mrb[91].mxu1 }
0x13ad   :  { %7194 = vrot.lane.b32.xlu0 %v6946_v9, %s9994_s20  ;;  %v9173_v14 = vpop.f32.mrb[97].mxu0 }
0x13b0   :  { %v7098_v59 = vpop.f32.mrb[98].mxu0 }
0x13b1   :  { %7198 = vrot.lane.b32.xlu0 %v7098_v59, %s9994_s20  ;;  %v9183_v57 = vpop.f32.mrb[99].mxu0 }
0x140d   :  { %v7189_v23 = vpop.permute.xlu1 %7188 }
0x140e   :  { %v7211_v6 = vsel %vm764_vm3, %v11516_v32, %v7189_v23 }
0x1412   :  { %v7187_v30 = vpop.permute.xlu0 %7186 }
0x1413   :  { %v7210_v19 = vsel %vm764_vm3, %v11518_v18, %v7187_v30 }
0x1414   :  { %9197 = vmatprep.mubr.msk.f32.mxu0 %vm53_vm0, %v7210_v19 }
0x1415   :  { %9198 = vmatmul.mubr.msk.f32.vlgmr.msra.gmra.mrb[100].mxu0 %vm53_vm0, %v7211_v6 }
0x1416   :  { %v7193_v63 = vpop.permute.xlu1 %7192 }
0x1417   :  { %v7213_v48 = vsel %vm764_vm3, %v11520_v46, %v7193_v63 }
0x141a   :  { %v7197_v12 = vpop.permute.xlu1 %7196 }
0x141b   :  { %v7191_v22 = vpop.permute.xlu0 %7190  ;;  %v7215_v37 = vsel %vm764_vm3, %v11522_v29, %v7197_v12 }
0x141c   :  { %v7212_v28 = vsel %vm764_vm3, %v11524_v31, %v7191_v22 }
0x141d   :  { %9200 = vmatprep.mubr.msk.f32.mxu0 %vm53_vm0, %v7212_v28 }
0x141e   :  { %9201 = vmatmul.mubr.msk.f32.gmra.mrb[102].mxu0 %vm53_vm0, %v7213_v48  ;;  %v7201_v0 = vpop.permute.xlu1 %7200 }
0x141f   :  { %v7195_v18 = vpop.permute.xlu0 %7194  ;;  %v7217_v27 = vsel %vm764_vm3, %v11528_v17, %v7201_v0 }
0x1420   :  { %v7214_v32 = vsel %vm764_vm3, %v11526_v16, %v7195_v18  ;;  %v8284_v16 = vld [vmem:[#allocation2 + $0x1a8] ss:$0 sm:$0xff] }
0x1421   :  { %9203 = vmatprep.mubr.msk.f32.mxu0 %vm53_vm0, %v7214_v32 }
0x1422   :  { %9204 = vmatmul.mubr.msk.f32.gmra.mrb[104].mxu0 %vm53_vm0, %v7215_v37 }
0x1423   :  { %v7199_v31 = vpop.permute.xlu0 %7198 }
0x1424   :  { %v7216_v46 = vsel %vm764_vm3, %v11530_v44, %v7199_v31 }
0x1425   :  { %9206 = vmatprep.mubr.msk.f32.mxu0 %vm53_vm0, %v7216_v46 }
0x1426   :  { %9207 = vmatmul.mubr.msk.f32.gmra.mrb[106].mxu0 %vm53_vm0, %v7217_v27 }
0x14e8   :  { %v9199_v4 = vpop.f32.mrb[100].mxu0 }
0x14e9   :  { %v7323_v36 = vadd.f32 %v9199_v4, %v8284_v16  ;;  %v7317_v29 = vpop.f32.mrb[101].mxu0 }
0x14ea   :  { %v7318_v13 = vadd.f32 %v8284_v16, %v7317_v29 }
0x14eb   :  { %v11627_v21 = vadd.f32 %v7323_v36, %v11119_v51 }
0x14ec   :  { %v11630_v52 = vadd.f32 %v7318_v13, %v11121_v26 }
0x14ed   :  { %v7367_v44 = vsel %vm53_vm0, %v11627_v21, 0.0 }
0x14ee   :  { %7368 = vadd.xlane.f32.xlu1 %v7367_v44  ;;  %v7364_v17 = vsel %vm53_vm0, %v11630_v52, 0.0 }
0x14ef   :  { %7365 = vadd.xlane.f32.xlu0 %v7364_v17 }
0x14f1   :  { %v9202_v15 = vpop.f32.mrb[102].mxu0 }
0x14f2   :  { %v7333_v33 = vadd.f32 %v9202_v15, %v8284_v16  ;;  %v7327_v10 = vpop.f32.mrb[103].mxu0 }
0x14f3   :  { %v7328_v62 = vadd.f32 %v8284_v16, %v7327_v10  ;;  %v7494_v10 = vld [vmem:[#allocation2 + $0x1c0] sm:$0xff] }
0x14f4   :  { %v11637_v49 = vadd.f32 %v7333_v33, %v11129_v2 }
0x14f5   :  { %v9205_v51 = vpop.f32.mrb[104].mxu0  ;;  %v11640_v11 = vadd.f32 %v7328_v62, %v11131_v7  ;;  %v7495_v62 = vld [vmem:[#allocation2 + $0x1c8] sm:$0xff] }
0x14f6   :  { %v7343_v26 = vadd.f32 %v9205_v51, %v8284_v16  ;;  %v7337_v41 = vpop.f32.mrb[105].mxu0  ;;  %v7373_v35 = vsel %vm53_vm0, %v11637_v49, 0.0  ;;  %v7632_v51 = vld [vmem:[#allocation2 + $0x1e0] sm:$0xff] }
0x14f7   :  { %v7338_v3 = vadd.f32 %v8284_v16, %v7337_v41  ;;  %7374 = vadd.xlane.f32.xlu0 %v7373_v35  ;;  %v7370_v7 = vsel %vm53_vm0, %v11640_v11, 0.0  ;;  %v7633_v41 = vld [vmem:[#allocation2 + $0x1e8] sm:$0xff] }
0x14f8   :  { %v11645_v50 = vadd.f32 %v7343_v26, %v11139_v47  ;;  %v9485_v26 = vpack.c.bf16 %v7495_v62, %v7494_v10  ;;  %v9493_v35 = vpack.c.bf16 %v7633_v41, %v7632_v51 }
0x14f9   :  { %v9208_v20 = vpop.f32.mrb[106].mxu0  ;;  %v11648_v8 = vadd.f32 %v7338_v3, %v11141_v56  ;;  %v7496_v3 = vld [vmem:[#allocation2 + $0x1d0] sm:$0xff] }
0x14fa   :  { %v7353_v2 = vadd.f32 %v9208_v20, %v8284_v16  ;;  %v7347_v38 = vpop.f32.mrb[107].mxu0  ;;  %v7379_v40 = vsel %vm53_vm0, %v11645_v50, 0.0  ;;  %9486 = vmatprep.subr.bf16.mxu1 %v9485_v26  ;;  %9494 = vmatprep.subr.bf16.mxu0 %v9493_v35  ;;  %v7497_v20 = vld [vmem:[#allocation2 + $0x1d8] sm:$0xff] }
0x14fb   :  { %v7348_v53 = vadd.f32 %v8284_v16, %v7347_v38  ;;  %7371 = vadd.xlane.f32.xlu0 %v7370_v7  ;;  %7380 = vadd.xlane.f32.xlu1 %v7379_v40  ;;  %v7376_v56 = vsel %vm53_vm0, %v11648_v8, 0.0  ;;  %v9489_v38 = vpack.c.bf16 %v7497_v20, %v7496_v3  ;;  %v7635_v7 = vld [vmem:[#allocation2 + $0x1f8] sm:$0xff] }
0x14fc   :  { %v11655_v45 = vadd.f32 %v7353_v2, %v11149_v25  ;;  %9488 = vmatpush3.bf16.msra.mxu1 %v9485_v26  ;;  %v7634_v2 = vld [vmem:[#allocation2 + $0x1f0] sm:$0xff]  ;;  %9496 = vmatpush3.bf16.msra.mxu0 %v9493_v35 }
0x14fd   :  { %v11658_v47 = vadd.f32 %v7348_v53, %v11151_v5  ;;  %v9497_v40 = vpack.c.bf16 %v7635_v7, %v7634_v2  ;;  %9490 = vmatprep.subr.bf16.mxu1 %v9489_v38 }
0x14fe   :  { %v7385_v24 = vsel %vm53_vm0, %v11655_v45, 0.0 }
0x14ff   :  { %7377 = vadd.xlane.f32.xlu0 %v7376_v56  ;;  %7386 = vadd.xlane.f32.xlu1 %v7385_v24  ;;  %v7382_v54 = vsel %vm53_vm0, %v11658_v47, 0.0 }
0x1500   :  { %9498 = vmatprep.subr.bf16.mxu0 %v9497_v40  ;;  %9492 = vmatpush3.bf16.msra.mxu1 %v9489_v38 }
0x1501   :  { %9500 = vmatpush3.bf16.msra.mxu0 %v9497_v40 }
0x1503   :  { %7383 = vadd.xlane.f32.xlu0 %v7382_v54 }
0x157b   :  { %v7369_v55 = vpop.xlane.xlu1 %7368 }
0x157c   :  { %v7389_v60 = vmul.f32 0.03125, %v7369_v55  ;;  %v7366_v43 = vpop.xlane.xlu0 %7365 }
0x157d   :  { %v7388_v25 = vmul.f32 0.03125, %v7366_v43 }
0x157e   :  { %v11667_v42 = vsub.f32 %v11627_v21, %v7389_v60 }
0x157f   :  { %v11670_v5 = vsub.f32 %v11630_v52, %v7388_v25 }
0x1580   :  { %v7405_v61 = vmul.f32 %v11667_v42, %v11667_v42 }
0x1581   :  { %v7404_v1 = vmul.f32 %v11670_v5, %v11670_v5 }
0x1582   :  { %v7415_v34 = vsel %vm53_vm0, %v7405_v61, 0.0 }
0x1583   :  { %7416 = vadd.xlane.f32.xlu1 %v7415_v34  ;;  %v7412_v58 = vsel %vm53_vm0, %v7404_v1, 0.0 }
0x1584   :  { %v7375_v9 = vpop.xlane.xlu0 %7374  ;;  %7413 = vadd.xlane.f32.xlu0 %v7412_v58 }
0x1585   :  { %v7391_v39 = vmul.f32 0.03125, %v7375_v9 }
0x1587   :  { %v11679_v14 = vsub.f32 %v11637_v49, %v7391_v39 }
0x1588   :  { %v7381_v59 = vpop.xlane.xlu1 %7380  ;;  %v7372_v57 = vpop.xlane.xlu0 %7371 }
0x1589   :  { %v7393_v23 = vmul.f32 0.03125, %v7381_v59  ;;  %v7390_v30 = vmul.f32 0.03125, %v7372_v57  ;;  %v7407_v19 = vmul.f32 %v11679_v14, %v11679_v14  ;;  %v8293_v59 = vld [vmem:[#allocation2 + $0x1b0] ss:$0 sm:$0xff] }
0x158b   :  { %v11684_v6 = vsub.f32 %v11645_v50, %v7393_v23  ;;  %v11687_v63 = vsub.f32 %v11640_v11, %v7390_v30  ;;  %v7421_v22 = vsel %vm53_vm0, %v7407_v19, 0.0 }
0x158c   :  { %v7387_v12 = vpop.xlane.xlu1 %7386  ;;  %7422 = vadd.xlane.f32.xlu1 %v7421_v22  ;;  %v7378_v28 = vpop.xlane.xlu0 %7377 }
0x158d   :  { %v7395_v48 = vmul.f32 0.03125, %v7387_v12  ;;  %v7392_v18 = vmul.f32 0.03125, %v7378_v28  ;;  %v7409_v32 = vmul.f32 %v11684_v6, %v11684_v6  ;;  %v7406_v37 = vmul.f32 %v11687_v63, %v11687_v63 }
0x158f   :  { %v11695_v0 = vsub.f32 %v11655_v45, %v7395_v48  ;;  %v11698_v31 = vsub.f32 %v11648_v8, %v7392_v18  ;;  %v7427_v46 = vsel %vm53_vm0, %v7409_v32, 0.0  ;;  %v7418_v27 = vsel %vm53_vm0, %v7406_v37, 0.0  ;;  %v8294_v32 = vld [vmem:[#allocation2 + $0x1b8] ss:$0 sm:$0xff] }
0x1590   :  { %7428 = vadd.xlane.f32.xlu1 %v7427_v46  ;;  %7419 = vadd.xlane.f32.xlu0 %v7418_v27  ;;  %v7384_v16 = vpop.xlane.xlu0 %7383 }
0x1591   :  { %v7394_v4 = vmul.f32 0.03125, %v7384_v16  ;;  %v7411_v36 = vmul.f32 %v11695_v0, %v11695_v0  ;;  %v7408_v29 = vmul.f32 %v11698_v31, %v11698_v31 }
0x1593   :  { %v11707_v13 = vsub.f32 %v11658_v47, %v7394_v4  ;;  %v7433_v44 = vsel %vm53_vm0, %v7411_v36, 0.0  ;;  %v7424_v17 = vsel %vm53_vm0, %v7408_v29, 0.0 }
0x1594   :  { %7434 = vadd.xlane.f32.xlu1 %v7433_v44  ;;  %7425 = vadd.xlane.f32.xlu0 %v7424_v17 }
0x1595   :  { %v7410_v15 = vmul.f32 %v11707_v13, %v11707_v13 }
0x1597   :  { %v7430_v33 = vsel %vm53_vm0, %v7410_v15, 0.0 }
0x1598   :  { %7431 = vadd.xlane.f32.xlu0 %v7430_v33 }
0x1610   :  { %v7417_v53 = vpop.xlane.xlu1 %7416 }
0x1611   :  { %v7437_v56 = vmul.f32 0.03125, %v7417_v53  ;;  %v7414_v24 = vpop.xlane.xlu0 %7413 }
0x1612   :  { %v7436_v54 = vmul.f32 0.03125, %v7414_v24 }
0x1613   :  { %v7445_v55 = vadd.f32 1e-05, %v7437_v56 }
0x1614   :  { %v7444_v60 = vadd.f32 1e-05, %v7436_v54  ;;  %v7827_v54 = vld [vmem:[#allocation2 + $0x218] sm:$0xff] }
0x1615   :  { %9897 = vrsqrt.f32 %v7445_v55 }
0x1616   :  { %9899 = vrsqrt.f32 %v7444_v60  ;;  %v7828_v60 = vld [vmem:[#allocation2 + $0x220] sm:$0xff] }
0x1619   :  { %v7423_v43 = vpop.xlane.xlu1 %7422 }
0x161a   :  { %v7439_v25 = vmul.f32 0.03125, %v7423_v43  ;;  %v7829_v43 = vld [vmem:[#allocation2 + $0x228] sm:$0xff] }
0x161c   :  { %v7447_v61 = vadd.f32 1e-05, %v7439_v25  ;;  %v9505_v25 = vpack.c.bf16 %v7829_v43, %v7828_v60 }
0x161d   :  { %v7429_v1 = vpop.xlane.xlu1 %7428  ;;  %v7420_v34 = vpop.xlane.xlu0 %7419 }
0x161e   :  { %9901 = vrsqrt.f32 %v7447_v61  ;;  %v7441_v58 = vmul.f32 0.03125, %v7429_v1  ;;  %v7438_v9 = vmul.f32 0.03125, %v7420_v34  ;;  %v7830_v61 = vld [vmem:[#allocation2 + $0x230] sm:$0xff]  ;;  %v7831_v1 = vld [vmem:[#allocation2 + $0x238] sm:$0xff] }
0x161f   :  { %v9898_v39 = vpop.eup %9897  ;;  %v9509_v34 = vpack.c.bf16 %v7831_v1, %v7830_v61 }
0x1620   :  { %v9900_v57 = vpop.eup %9899  ;;  %v7461_v23 = vmul.f32 %v9898_v39, %v11667_v42  ;;  %v7449_v30 = vadd.f32 1e-05, %v7441_v58  ;;  %v7446_v19 = vadd.f32 1e-05, %v7438_v9  ;;  %v7832_v58 = vld [vmem:[#allocation2 + $0x240] sm:$0xff]  ;;  %v7833_v9 = vld [vmem:[#allocation2 + $0x248] sm:$0xff] }
0x1621   :  { %v7435_v22 = vpop.xlane.xlu1 %7434  ;;  %v7426_v12 = vpop.xlane.xlu0 %7425  ;;  %v7460_v28 = vmul.f32 %v9900_v57, %v11670_v5  ;;  %v9513_v39 = vpack.c.bf16 %v7833_v9, %v7832_v58  ;;  %v7835_v57 = vld [vmem:[#allocation2 + $0x258] sm:$0xff] }
0x1622   :  { %9903 = vrsqrt.f32 %v7449_v30  ;;  %v7443_v48 = vmul.f32 0.03125, %v7435_v22  ;;  %v7440_v18 = vmul.f32 0.03125, %v7426_v12  ;;  %v7474_v37 = vmul.f32 %v8293_v59, %v7461_v23  ;;  %v7836_v30 = vld [vmem:[#allocation2 + $0x260] sm:$0xff]  ;;  %v7838_v12 = vld [vmem:[#allocation2 + $0x270] sm:$0xff] }
0x1623   :  { %9905 = vrsqrt.f32 %v7446_v19  ;;  %v7473_v46 = vmul.f32 %v8293_v59, %v7460_v28  ;;  %v7837_v19 = vld [vmem:[#allocation2 + $0x268] sm:$0xff]  ;;  %v7839_v28 = vld [vmem:[#allocation2 + $0x278] sm:$0xff] }
0x1624   :  { %v7451_v27 = vadd.f32 1e-05, %v7443_v48  ;;  %v7448_v16 = vadd.f32 1e-05, %v7440_v18  ;;  %v7487_v42 = vadd.f32 %v8294_v32, %v7474_v37  ;;  %v9521_v22 = vpack.c.bf16 %v7837_v19, %v7836_v30  ;;  %v7840_v18 = vld [vmem:[#allocation2 + $0x280] sm:$0xff] }
0x1625   :  { %v7432_v4 = vpop.xlane.xlu0 %7431  ;;  %v7486_v36 = vadd.f32 %v8294_v32, %v7473_v46  ;;  %v9525_v48 = vpack.c.bf16 %v7839_v28, %v7838_v12  ;;  %v7968_v46 = vld [vmem:[#allocation2 + $0x298] sm:$0xff]  ;;  %v11788_v19 = vld [vmem:[#allocation2 + $0x200] ss:$0 sm:$0xff] }
0x1626   :  { %9907 = vrsqrt.f32 %v7451_v27  ;;  %v7442_v29 = vmul.f32 0.03125, %v7432_v4  ;;  %v8038_v27 = vld [vmem:[#allocation2 + $0x2a0] sm:$0x1]  ;;  %v8304_v4 = vld [vmem:[#allocation2 + $0x208] ss:$0 sm:$0xff] }
0x1627   :  { %9909 = vrsqrt.f32 %v7448_v16  ;;  %9217 = vmatprep.mubr.msk.f32.mxu1 %vm53_vm0, %v7486_v36  ;;  %9237 = vmatprep.mubr.msk.f32.mxu0 %vm53_vm0, %v7486_v36  ;;  %v9997_v16 = vmov 0   ;;  %9535 = vpush %v8038_v27 }
0x1628   :  { %v9902_v5 = vpop.eup %9901  ;;  %v7450_v44 = vadd.f32 1e-05, %v7442_v29  ;;  %9218 = vmatmul.mubr.msk.f32.vlgmr.msra.gmra.mrb[92].mxu1 %vm53_vm0, %v7487_v42  ;;  %9238 = vmatmul.mubr.msk.f32.vlgmr.msra.gmra.mrb[108].mxu0 %vm53_vm0, %v7487_v42 }
0x1629   :  { %v7463_v17 = vmul.f32 %v9902_v5, %v11679_v14  ;;  %9672 = vset.pattern.permute.xlu0 %v9997_v16 }
0x162a   :  { %9911 = vrsqrt.f32 %v7450_v44  ;;  %7971 = vperm.xlu0 %9672, %v7968_v46  }
0x162b   :  { %v7476_v62 = vmul.f32 %v8293_v59, %v7463_v17 }
0x162c   :  { %v9904_v15 = vpop.eup %9903 }
0x162d   :  { %v9906_v33 = vpop.eup %9905  ;;  %v7465_v51 = vmul.f32 %v9904_v15, %v11684_v6  ;;  %v7489_v2 = vadd.f32 %v8294_v32, %v7476_v62 }
0x162e   :  { %v7462_v10 = vmul.f32 %v9906_v33, %v11687_v63 }
0x162f   :  { %v7478_v38 = vmul.f32 %v8293_v59, %v7465_v51 }
0x1630   :  { %v9908_v26 = vpop.eup %9907  ;;  %v7475_v41 = vmul.f32 %v8293_v59, %v7462_v10 }
0x1631   :  { %v9910_v35 = vpop.eup %9909  ;;  %v7467_v7 = vmul.f32 %v9908_v26, %v11695_v0  ;;  %v7491_v53 = vadd.f32 %v8294_v32, %v7478_v38 }
0x1632   :  { %v7488_v3 = vadd.f32 %v8294_v32, %v7475_v41  ;;  %v7464_v20 = vmul.f32 %v9910_v35, %v11698_v31 }
0x1633   :  { %v7480_v31 = vmul.f32 %v8293_v59, %v7467_v7 }
0x1634   :  { %v9912_v40 = vpop.eup %9911  ;;  %9220 = vmatprep.mubr.msk.f32.mxu1 %vm53_vm0, %v7488_v3  ;;  %9240 = vmatprep.mubr.msk.f32.mxu0 %vm53_vm0, %v7488_v3  ;;  %v7477_v14 = vmul.f32 %v8293_v59, %v7464_v20 }
0x1635   :  { %9221 = vmatmul.mubr.msk.f32.gmra.mrb[94].mxu1 %vm53_vm0, %v7489_v2  ;;  %9241 = vmatmul.mubr.msk.f32.gmra.mrb[110].mxu0 %vm53_vm0, %v7489_v2  ;;  %v7466_v6 = vmul.f32 %v9912_v40, %v11707_v13  ;;  %v7493_v24 = vadd.f32 %v8294_v32, %v7480_v31  ;;  %v7826_v13 = vld [vmem:[#allocation2 + $0x210] sm:$0xff] }
0x1636   :  { %v7490_v63 = vadd.f32 %v8294_v32, %v7477_v14  ;;  %v9501_v55 = vpack.c.bf16 %v7827_v54, %v7826_v13 }
0x1637   :  { %v7479_v56 = vmul.f32 %v8293_v59, %v7466_v6  ;;  %v7834_v59 = vld [vmem:[#allocation2 + $0x250] sm:$0xff] }
0x1638   :  { %9223 = vmatprep.mubr.msk.f32.mxu1 %vm53_vm0, %v7490_v63  ;;  %9243 = vmatprep.mubr.msk.f32.mxu0 %vm53_vm0, %v7490_v63  ;;  %v9517_v23 = vpack.c.bf16 %v7835_v57, %v7834_v59 }
0x1639   :  { %9224 = vmatmul.mubr.msk.f32.gmra.mrb[96].mxu1 %vm53_vm0, %v7491_v53  ;;  %9244 = vmatmul.mubr.msk.f32.gmra.mrb[112].mxu0 %vm53_vm0, %v7491_v53  ;;  %v7492_v0 = vadd.f32 %v8294_v32, %v7479_v56  ;;  %v7841_v32 = vld [vmem:[#allocation2 + $0x288] sm:$0xff] }
0x163a   :  { %9502 = vmatprep.subr.bf16.mxu1 %v9501_v55  ;;  %v9529_v37 = vpack.c.bf16 %v7841_v32, %v7840_v18 }
0x163b   :  { %9226 = vmatprep.mubr.msk.f32.mxu1 %vm53_vm0, %v7492_v0  ;;  %9246 = vmatprep.mubr.msk.f32.mxu0 %vm53_vm0, %v7492_v0 }
0x163c   :  { %9504 = vmatpush3.bf16.msra.mxu1 %v9501_v55 }
0x163d   :  { %9227 = vmatmul.mubr.msk.f32.gmra.mrb[98].mxu1 %vm53_vm0, %v7493_v24  ;;  %9247 = vmatmul.mubr.msk.f32.gmra.mrb[114].mxu0 %vm53_vm0, %v7493_v24 }
0x163e   :  { %9506 = vmatprep.subr.bf16.mxu1 %v9505_v25 }
0x1640   :  { %9508 = vmatpush3.bf16.msra.mxu1 %v9505_v25 }
0x1641   :  { %9510 = vmatprep.subr.bf16.mxu1 %v9509_v34 }
0x1644   :  { %9512 = vmatpush3.bf16.msra.mxu1 %v9509_v34 }
0x1645   :  { %9514 = vmatprep.subr.bf16.mxu1 %v9513_v39 }
0x1648   :  { %9516 = vmatpush3.bf16.msra.mxu1 %v9513_v39 }
0x1649   :  { %9518 = vmatprep.subr.bf16.mxu1 %v9517_v23 }
0x164c   :  { %9520 = vmatpush3.bf16.msra.mxu1 %v9517_v23 }
0x164d   :  { %9522 = vmatprep.subr.bf16.mxu1 %v9521_v22 }
0x1650   :  { %9524 = vmatpush3.bf16.msra.mxu1 %v9521_v22 }
0x1651   :  { %9526 = vmatprep.subr.bf16.mxu1 %v9525_v48 }
0x1654   :  { %9528 = vmatpush3.bf16.msra.mxu1 %v9525_v48 }
0x1655   :  { %9530 = vmatprep.subr.bf16.mxu1 %v9529_v37 }
0x1658   :  { %9532 = vmatpush3.bf16.msra.mxu1 %v9529_v37  ;;  %s9536_s10 = spop %9535 }
0x16fb   :  { %v11738_v36 = vpop.f32.mrb[92].mxu1  ;;  %v9239_v29 = vpop.f32.mrb[108].mxu0 }
0x16fc   :  { %v11740_v42 = vadd.f32 %v9239_v29, %v8304_v4  ;;  %v11742_v5 = vpop.f32.mrb[93].mxu1  ;;  %v7707_v44 = vpop.f32.mrb[109].mxu0 }
0x16fd   :  { %v11744_v17 = vadd.f32 %v8304_v4, %v7707_v44 }
0x16fe   :  { %v7747_v15 = vmul.f32 %v11740_v42, %v11740_v42 }
0x16ff   :  { %v7746_v33 = vmul.f32 %v11744_v17, %v11744_v17 }
0x1700   :  { %v7755_v10 = vmul.f32 %v7747_v15, %v11740_v42 }
0x1701   :  { %v7754_v62 = vmul.f32 %v7746_v33, %v11744_v17 }
0x1702   :  { %v7763_v51 = vmul.f32 0.044715, %v7755_v10 }
0x1703   :  { %v7762_v26 = vmul.f32 0.044715, %v7754_v62 }
0x1704   :  { %v7771_v41 = vadd.f32 %v7763_v51, %v11740_v42 }
0x1705   :  { %v7770_v35 = vadd.f32 %v7762_v26, %v11744_v17  ;;  %v7599_v26 = vadd.f32 %v11738_v36, %v11788_v19 }
0x1706   :  { %v7779_v3 = vmul.f32 0.7978846, %v7771_v41 }
0x1707   :  { %v7778_v20 = vmul.f32 0.7978846, %v7770_v35 }
0x1708   :  { %9913 = vtanh.f32 %v7779_v3  ;;  %v11754_v2 = vpop.f32.mrb[94].mxu1  ;;  %v9242_v38 = vpop.f32.mrb[110].mxu0 }
0x1709   :  { %9915 = vtanh.f32 %v7778_v20  ;;  %v11756_v7 = vadd.f32 %v9242_v38, %v8304_v4  ;;  %v11758_v40 = vpop.f32.mrb[95].mxu1  ;;  %v7717_v14 = vpop.f32.mrb[111].mxu0  ;;  %v7594_v20 = vadd.f32 %v11788_v19, %v11742_v5 }
0x170a   :  { %v11760_v6 = vadd.f32 %v8304_v4, %v7717_v14 }
0x170b   :  { %v7749_v63 = vmul.f32 %v11756_v7, %v11756_v7 }
0x170c   :  { %v7748_v53 = vmul.f32 %v11760_v6, %v11760_v6  ;;  %v11766_v56 = vpop.f32.mrb[96].mxu1  ;;  %v9245_v31 = vpop.f32.mrb[112].mxu0 }
0x170d   :  { %v7757_v0 = vmul.f32 %v7749_v63, %v11756_v7  ;;  %v11769_v24 = vadd.f32 %v9245_v31, %v8304_v4  ;;  %v11771_v13 = vpop.f32.mrb[97].mxu1  ;;  %v7727_v54 = vpop.f32.mrb[113].mxu0 }
0x170e   :  { %v7756_v55 = vmul.f32 %v7748_v53, %v11760_v6  ;;  %v11774_v60 = vadd.f32 %v8304_v4, %v7727_v54 }
0x170f   :  { %v7765_v43 = vmul.f32 0.044715, %v7757_v0  ;;  %v7751_v25 = vmul.f32 %v11769_v24, %v11769_v24 }
0x1710   :  { %v7764_v61 = vmul.f32 0.044715, %v7756_v55  ;;  %v7750_v1 = vmul.f32 %v11774_v60, %v11774_v60  ;;  %v11780_v34 = vpop.f32.mrb[98].mxu1  ;;  %v9248_v58 = vpop.f32.mrb[114].mxu0 }
0x1711   :  { %v7773_v9 = vadd.f32 %v7765_v43, %v11756_v7  ;;  %v7759_v39 = vmul.f32 %v7751_v25, %v11769_v24  ;;  %v11784_v59 = vadd.f32 %v9248_v58, %v8304_v4  ;;  %v11786_v57 = vpop.f32.mrb[99].mxu1  ;;  %v7737_v23 = vpop.f32.mrb[115].mxu0 }
0x1712   :  { %v9914_v30 = vpop.eup %9913  ;;  %v7772_v22 = vadd.f32 %v7764_v61, %v11760_v6  ;;  %v7758_v12 = vmul.f32 %v7750_v1, %v11774_v60  ;;  %v11792_v28 = vadd.f32 %v8304_v4, %v7737_v23 }
0x1713   :  { %v9916_v48 = vpop.eup %9915  ;;  %v7795_v18 = vadd.f32 1.0, %v9914_v30  ;;  %v7781_v32 = vmul.f32 0.7978846, %v7773_v9  ;;  %v7767_v37 = vmul.f32 0.044715, %v7759_v39  ;;  %v7753_v46 = vmul.f32 %v11784_v59, %v11784_v59 }
0x1714   :  { %v7780_v27 = vmul.f32 0.7978846, %v7772_v22  ;;  %v7766_v16 = vmul.f32 0.044715, %v7758_v12  ;;  %v7752_v29 = vmul.f32 %v11792_v28, %v11792_v28  ;;  %v7794_v44 = vadd.f32 1.0, %v9916_v48 }
0x1715   :  { %v7803_v15 = vmul.f32 0.5, %v7795_v18  ;;  %9917 = vtanh.f32 %v7781_v32  ;;  %v7775_v33 = vadd.f32 %v7767_v37, %v11769_v24  ;;  %v7761_v4 = vmul.f32 %v7753_v46, %v11784_v59 }
0x1716   :  { %9919 = vtanh.f32 %v7780_v27  ;;  %v7774_v10 = vadd.f32 %v7766_v16, %v11774_v60  ;;  %v7760_v62 = vmul.f32 %v7752_v29, %v11792_v28  ;;  %v7802_v51 = vmul.f32 0.5, %v7794_v44 }
0x1717   :  { %v7811_v41 = vmul.f32 %v7803_v15, %v11740_v42  ;;  %v7783_v35 = vmul.f32 0.7978846, %v7775_v33  ;;  %v7769_v3 = vmul.f32 0.044715, %v7761_v4  ;;  %v7609_v9 = vadd.f32 %v11754_v2, %v11788_v19 }
0x1718   :  { %v7782_v38 = vmul.f32 0.7978846, %v7774_v10  ;;  %v7768_v14 = vmul.f32 0.044715, %v7760_v62  ;;  %v7810_v63 = vmul.f32 %v7802_v51, %v11744_v17  ;;  %v7604_v30 = vadd.f32 %v11788_v19, %v11758_v40 }
0x1719   :  { %v7819_v53 = vmul.f32 %v7811_v41, %v7599_v26  ;;  %9921 = vtanh.f32 %v7783_v35  ;;  %v7777_v31 = vadd.f32 %v7769_v3, %v11784_v59  ;;  %v7619_v16 = vadd.f32 %v11766_v56, %v11788_v19  ;;  %v8313_v26 = vld [vmem:[#allocation2 + $0x290] ss:$0 sm:$0xff]  ;;  %v7972_v3 = vpop.permute.xlu0 %7971 }
0x171a   :  { %9923 = vtanh.f32 %v7782_v38  ;;  %v7776_v0 = vadd.f32 %v7768_v14, %v11792_v28  ;;  %v7818_v54 = vmul.f32 %v7810_v63, %v7594_v20  ;;  %v7629_v10 = vadd.f32 %v11780_v34, %v11788_v19 }
0x171b   :  { %v7785_v36 = vmul.f32 0.7978846, %v7777_v31 }
0x171c   :  { %v7784_v55 = vmul.f32 0.7978846, %v7776_v0  ;;  %9281 = vmatprep.mubr.f32.mxu1 %v7818_v54 }
0x171d   :  { %9925 = vtanh.f32 %v7785_v36  ;;  %9282 = vmatmul.mubr.f32.vlgmr.msra.gmra.mrb[100].mxu1 %v7819_v53 }
0x171e   :  { %9927 = vtanh.f32 %v7784_v55 }
0x171f   :  { %v9918_v42 = vpop.eup %9917 }
0x1720   :  { %v9920_v5 = vpop.eup %9919  ;;  %v7797_v43 = vadd.f32 1.0, %v9918_v42 }
0x1721   :  { %v7796_v25 = vadd.f32 1.0, %v9920_v5 }
0x1722   :  { %v7805_v61 = vmul.f32 0.5, %v7797_v43 }
0x1723   :  { %v9922_v17 = vpop.eup %9921  ;;  %v7804_v1 = vmul.f32 0.5, %v7796_v25 }
0x1724   :  { %v9924_v58 = vpop.eup %9923  ;;  %v7813_v39 = vmul.f32 %v7805_v61, %v11756_v7  ;;  %v7799_v23 = vadd.f32 1.0, %v9922_v17  ;;  %v7614_v7 = vadd.f32 %v11788_v19, %v11771_v13 }
0x1725   :  { %v7812_v22 = vmul.f32 %v7804_v1, %v11760_v6  ;;  %v7798_v12 = vadd.f32 1.0, %v9924_v58  ;;  %v11834_v1 = vstv %s9536_s10 }
0x1726   :  { %v7821_v48 = vmul.f32 %v7813_v39, %v7609_v9  ;;  %v7807_v18 = vmul.f32 0.5, %v7799_v23 }
0x1727   :  { %v9926_v32 = vpop.eup %9925  ;;  %v7820_v37 = vmul.f32 %v7812_v22, %v7604_v30  ;;  %v7806_v46 = vmul.f32 0.5, %v7798_v12 }
0x1728   :  { %v9928_v27 = vpop.eup %9927  ;;  %v7815_v2 = vmul.f32 %v7807_v18, %v11769_v24  ;;  %v7801_v29 = vadd.f32 1.0, %v9926_v32  ;;  %v7624_v24 = vadd.f32 %v11788_v19, %v11786_v57 }
0x1729   :  { %9284 = vmatprep.mubr.f32.mxu1 %v7820_v37  ;;  %v7814_v40 = vmul.f32 %v7806_v46, %v11774_v60  ;;  %v7800_v6 = vadd.f32 1.0, %v9928_v27 }
0x172a   :  { %9285 = vmatmul.mubr.f32.gmra.mrb[102].mxu1 %v7821_v48  ;;  %v7823_v44 = vmul.f32 %v7815_v2, %v7619_v16  ;;  %v7809_v15 = vmul.f32 0.5, %v7801_v29 }
0x172b   :  { %v7822_v33 = vmul.f32 %v7814_v40, %v7614_v7  ;;  %v7808_v4 = vmul.f32 0.5, %v7800_v6 }
0x172c   :  { %v7817_v56 = vmul.f32 %v7809_v15, %v11784_v59 }
0x172d   :  { %9287 = vmatprep.mubr.f32.mxu1 %v7822_v33  ;;  %v7816_v13 = vmul.f32 %v7808_v4, %v11792_v28 }
0x172e   :  { %9288 = vmatmul.mubr.f32.gmra.mrb[104].mxu1 %v7823_v44  ;;  %v7825_v62 = vmul.f32 %v7817_v56, %v7629_v10 }
0x172f   :  { %v7824_v60 = vmul.f32 %v7816_v13, %v7624_v24 }
0x1731   :  { %9290 = vmatprep.mubr.f32.mxu1 %v7824_v60 }
0x1732   :  { %9291 = vmatmul.mubr.f32.gmra.mrb[106].mxu1 %v7825_v62 }
0x17f0   :  { %v9283_v51 = vpop.f32.mrb[100].mxu1 }
0x17f1   :  { %v7948_v41 = vadd.f32 %v9283_v51, %v11627_v21  ;;  %v7908_v35 = vpop.f32.mrb[101].mxu1 }
0x17f2   :  { %v7947_v34 = vadd.f32 %v7908_v35, %v11630_v52 }
0x17f3   :  { %v7961_v59 = vadd.f32 %v8313_v26, %v7948_v41 }
0x17f4   :  { %v7960_v20 = vadd.f32 %v8313_v26, %v7947_v34 }
0x17f5   :  { %v7975_v38 = vmul.f32 %v7972_v3, %v7961_v59 }
0x17f6   :  { %v7974_v57 = vmul.f32 %v7972_v3, %v7960_v20 }
0x17f7   :  { %v7989_v19 = vsel %vm53_vm0, %v7975_v38, 0.0 }
0x17f8   :  { %v7990_v28 = vrot.slane %v7989_v19, 4  ;;  %v7982_v14 = vsel %vm53_vm0, %v7974_v57, 0.0 }
0x17f9   :  { %v7983_v63 = vrot.slane %v7982_v14, 4 }
0x17fa   :  { %v7991_v53 = vadd.f32 %v7990_v28, %v7989_v19 }
0x17fb   :  { %v7984_v31 = vadd.f32 %v7983_v63, %v7982_v14 }
0x17fc   :  { %v7992_v0 = vrot.slane %v7991_v53, 2 }
0x17fd   :  { %v9286_v54 = vpop.f32.mrb[102].mxu1  ;;  %v7985_v36 = vrot.slane %v7984_v31, 2 }
0x17fe   :  { %v7950_v21 = vadd.f32 %v9286_v54, %v11637_v49  ;;  %v7918_v55 = vpop.f32.mrb[103].mxu1  ;;  %v7993_v52 = vadd.f32 %v7992_v0, %v7991_v53 }
0x17ff   :  { %v7949_v42 = vadd.f32 %v7918_v55, %v11640_v11  ;;  %v7986_v5 = vadd.f32 %v7985_v36, %v7984_v31 }
0x1800   :  { %v7963_v43 = vadd.f32 %v8313_v26, %v7950_v21  ;;  %v7994_v25 = vrot.slane %v7993_v52, 1 }
0x1801   :  { %v7962_v61 = vadd.f32 %v8313_v26, %v7949_v42  ;;  %v9289_v17 = vpop.f32.mrb[104].mxu1  ;;  %v7987_v58 = vrot.slane %v7986_v5, 1 }
0x1802   :  { %v7952_v9 = vadd.f32 %v9289_v17, %v11645_v50  ;;  %v7928_v39 = vpop.f32.mrb[105].mxu1  ;;  %v7995_v23 = vadd.f32 %v7994_v25, %v7993_v52  ;;  %v7977_v30 = vmul.f32 %v7972_v3, %v7963_v43 }
0x1803   :  { %v7976_v22 = vmul.f32 %v7972_v3, %v7962_v61  ;;  %v7951_v49 = vadd.f32 %v7928_v39, %v11648_v8  ;;  %v7988_v12 = vadd.f32 %v7987_v58, %v7986_v5 }
0x1804   :  { %v7965_v48 = vadd.f32 %v8313_v26, %v7952_v9  ;;  %v8044_v11 = vadd.f32 %v11834_v1, %v7995_v23  ;;  %v8003_v8 = vsel %vm53_vm0, %v7977_v30, 0.0 }
0x1805   :  { %v7996_v18 = vsel %vm53_vm0, %v7976_v22, 0.0  ;;  %v7964_v32 = vadd.f32 %v8313_v26, %v7951_v49  ;;  %v9292_v37 = vpop.f32.mrb[106].mxu1  ;;  %v11841_v46 = vadd.f32 %v11834_v1, %v7988_v12  ;;  %v8004_v10 = vrot.slane %v8003_v8, 4 }
0x1806   :  { %v7997_v27 = vrot.slane %v7996_v18, 4  ;;  %v7979_v16 = vmul.f32 %v7972_v3, %v7965_v48  ;;  %v7954_v50 = vadd.f32 %v9292_v37, %v11655_v45  ;;  %v7938_v2 = vpop.f32.mrb[107].mxu1  ;;  %8052 = vrot.lane.b32.xlu1 %v8044_v11, %s9998_s11 }
0x1807   :  { %v7978_v29 = vmul.f32 %v7972_v3, %v7964_v32  ;;  %v7953_v7 = vadd.f32 %v7938_v2, %v11658_v47  ;;  %v8005_v59 = vadd.f32 %v8004_v10, %v8003_v8 }
0x1808   :  { %v7998_v40 = vadd.f32 %v7997_v27, %v7996_v18  ;;  %v8017_v6 = vsel %vm53_vm0, %v7979_v16, 0.0  ;;  %v7967_v44 = vadd.f32 %v8313_v26, %v7954_v50 }
0x1809   :  { %v8018_v15 = vrot.slane %v8017_v6, 4  ;;  %v8010_v33 = vsel %vm53_vm0, %v7978_v29, 0.0  ;;  %v7966_v4 = vadd.f32 %v8313_v26, %v7953_v7 }
0x180a   :  { %v7999_v56 = vrot.slane %v7998_v40, 2  ;;  %v8011_v45 = vrot.slane %v8010_v33, 4  ;;  %v7981_v24 = vmul.f32 %v7972_v3, %v7967_v44 }
0x180b   :  { %v8019_v13 = vadd.f32 %v8018_v15, %v8017_v6  ;;  %v7980_v62 = vmul.f32 %v7972_v3, %v7966_v4  ;;  %v8006_v3 = vrot.slane %v8005_v59, 2 }
0x180c   :  { %v8000_v60 = vadd.f32 %v7999_v56, %v7998_v40  ;;  %v8012_v51 = vadd.f32 %v8011_v45, %v8010_v33  ;;  %v8031_v41 = vsel %vm53_vm0, %v7981_v24, 0.0 }
0x180d   :  { %v8020_v35 = vrot.slane %v8019_v13, 2  ;;  %v8032_v47 = vrot.slane %v8031_v41, 4  ;;  %v8024_v34 = vsel %vm53_vm0, %v7980_v62, 0.0  ;;  %v8007_v25 = vadd.f32 %v8006_v3, %v8005_v59 }
0x180e   :  { %v8013_v20 = vrot.slane %v8012_v51, 2  ;;  %v8025_v38 = vrot.slane %v8024_v34, 4  ;;  %v8001_v57 = vrot.slane %v8000_v60, 1 }
0x180f   :  { %v8021_v19 = vadd.f32 %v8020_v35, %v8019_v13  ;;  %v8033_v26 = vadd.f32 %v8032_v47, %v8031_v41  ;;  %v8008_v23 = vrot.slane %v8007_v25, 1 }
0x1810   :  { %v8014_v28 = vadd.f32 %v8013_v20, %v8012_v51  ;;  %v8026_v14 = vadd.f32 %v8025_v38, %v8024_v34  ;;  %v8002_v63 = vadd.f32 %v8001_v57, %v8000_v60 }
0x1811   :  { %v8034_v53 = vrot.slane %v8033_v26, 2  ;;  %v8022_v31 = vrot.slane %v8021_v19, 1  ;;  %v8009_v22 = vadd.f32 %v8008_v23, %v8007_v25 }
0x1812   :  { %v8027_v0 = vrot.slane %v8026_v14, 2  ;;  %v8045_v54 = vadd.f32 %v11834_v1, %v8002_v63  ;;  %v8015_v36 = vrot.slane %v8014_v28, 1 }
0x1813   :  { %v8035_v21 = vadd.f32 %v8034_v53, %v8033_v26  ;;  %v8023_v55 = vadd.f32 %v8022_v31, %v8021_v19  ;;  %v8046_v49 = vadd.f32 %v11834_v1, %v8009_v22 }
0x1814   :  { %v8028_v52 = vadd.f32 %v8027_v0, %v8026_v14  ;;  %8056 = vrot.lane.b32.xlu1 %v8045_v54, %s9995_s0  ;;  %v8016_v42 = vadd.f32 %v8015_v36, %v8014_v28 }
0x1815   :  { %v8048_v5 = vadd.f32 %v11834_v1, %v8023_v55  ;;  %v8036_v43 = vrot.slane %v8035_v21, 1 }
0x1816   :  { %v8029_v61 = vrot.slane %v8028_v52, 1  ;;  %v8047_v17 = vadd.f32 %v11834_v1, %v8016_v42 }
0x1817   :  { %v8037_v58 = vadd.f32 %v8036_v43, %v8035_v21 }
0x1818   :  { %8069 = vrot.lane.b32.xlu1 %v8048_v5, %s9998_s11  ;;  %v8030_v39 = vadd.f32 %v8029_v61, %v8028_v52 }
0x1819   :  { %v8050_v9 = vadd.f32 %v11834_v1, %v8037_v58 }
0x181a   :  { %v8049_v30 = vadd.f32 %v11834_v1, %v8030_v39 }
0x181c   :  { %8077 = vrot.lane.b32.xlu1 %v8050_v9, %s9991_s1 }
0x1820   :  { %8073 = vrot.lane.b32.xlu1 %v8049_v30, %s9995_s0 }
0x1824   :  { %8060 = vrot.lane.b32.xlu1 %v8046_v49, %s9991_s1 }
0x1878   :  { %v8053_v12 = vpop.permute.xlu1 %8052 }
0x1879   :  { %v8063_v50 = vsel %vm53_vm0, %v11841_v46, %v8053_v12 }
0x1886   :  { %v8057_v48 = vpop.permute.xlu1 %8056 }
0x1887   :  { %v8065_v1 = vsel %vm8064_vm6, %v8063_v50, %v8057_v48 }
0x188a   :  { %v8070_v11 = vpop.permute.xlu1 %8069 }
0x188b   :  { %v8080_v32 = vsel %vm53_vm0, %v8047_v17, %v8070_v11 }
0x188e   :  { %v8078_v18 = vpop.permute.xlu1 %8077 }
0x1892   :  { %v8074_v37 = vpop.permute.xlu1 %8073 }
0x1893   :  { %v8081_v27 = vsel %vm8064_vm6, %v8080_v32, %v8074_v37 }
0x1894   :  { %v8082_v16 = vsel %vm8066_vm5, %v8081_v27, %v8078_v18 }
0x1895   :  { %v8084_v2 = vrot.slane %v8082_v16, 7 }
0x1896   :  { %v8061_v8 = vpop.permute.xlu1 %8060 }
0x1897   :  { %v8067_v29 = vsel %vm8066_vm5, %v8065_v1, %v8061_v8 }
0x1898   :  { %v8087_v7 = vsel %vm8086_vm7, %v8067_v29, %v8084_v2 }
0x1899   :  { %8088 = vst [vmem:[#allocation5] sm:$0x3] %v8087_v7 }
0x189a   :  { %9970 = shalt.err (!%p9967_p12)
}
0x189b   :  { %s9971_s17 = scalar_lea.hbm %s11880_s3, 32 }
0x189c   :  { %p9972_p13 = scmp.ne.s32.totalorder %s11880_s3, %s9971_s17  ;;  %p9975_p0 = scmp.lt.u32.totalorder %s9971_s17, %s11880_s3 }
0x189e   :  { %p9977_p1 = pnand %p9975_p0, %p9972_p13 }
0x18a0   :  { %9980 = shalt.err (!%p9977_p1)
}
0x18a1   :  { %8098 = dma.vmem_to_hbm [thread:$0]  %s8096_s13, 32, %s11880_s3, [#allocation4]  }
0x18a2   :  { %9983 = dma.done.wait [#allocation4], 32  }
0x18a3   :  { %9984 = vsyncadd [#allocation4], 4294967264 }
0x18a4   :  { %8102 = vsyncpa [#allocation3], 1 }
0x18a5   :  { %8103 = vsyncpa [#allocation4], 1 }

</bundles_post_ra>
